<compile_context>
chip_gen: v6e
topology: v6e:2x2x1
jax: 0.10.0
libtpu: 0.0.40
codegen_flags: <defaults>
</compile_context>

<pallas_src>
import math
import functools

import jax
import jax.numpy as jnp
import numpy as np
from jax.experimental import pallas as pl
from jax.experimental.pallas import tpu as pltpu

# ----------------------------- config (small) -------------------------------
B = 2            # batch
LS = 8           # source sequence length
LT = 8           # target sequence length
D = 32           # d_model
H = 4            # n_heads
DH = D // H      # dim per head
DFF = 64         # d_ff
NLAYERS = 2
VOCAB = 16
PAD = 1          # dictionary.pad()
EPS = 1e-6
BLS = B * LS
BLT = B * LT


# ------------------------------ shared math ----------------------------------
def _layernorm(x, g, b):
    mu = jnp.mean(x, axis=-1, keepdims=True)
    var = jnp.mean((x - mu) ** 2, axis=-1, keepdims=True)
    return (x - mu) * jax.lax.rsqrt(var + EPS) * g + b


def _attend(q, k, v, mask):
    """Multi-head attention over flattened rows. q:(Nq,D) k,v:(Nk,D) mask:(Nq,Nk) bool."""
    scale = 1.0 / math.sqrt(DH)
    ctx_heads = []
    for hd in range(H):                       # static unroll over heads (tiny)
        lo = hd * DH
        qh = q[:, lo:lo + DH] * scale
        kh = k[:, lo:lo + DH]
        vh = v[:, lo:lo + DH]
        s = jnp.dot(qh, kh.T, preferred_element_type=jnp.float32)   # (Nq, Nk)
        s = jnp.where(mask, -1e18, s)
        s = s - jnp.max(s, axis=-1, keepdims=True)
        e = jnp.exp(s)
        a = e * pl.reciprocal(jnp.sum(e, axis=-1, keepdims=True), approx=True)
        ctx_heads.append(jnp.dot(a, vh, preferred_element_type=jnp.float32))
    return jnp.concatenate(ctx_heads, axis=-1)                      # (Nq, D)


def _self_attention(h, wqkv, mask):
    qkv = jnp.dot(h, wqkv, preferred_element_type=jnp.float32)      # (N, 3D) fused QKV
    return _attend(qkv[:, :D], qkv[:, D:2 * D], qkv[:, 2 * D:], mask)


def _cross_attention(h_q, enc, wq, wkv, mask):
    q = jnp.dot(h_q, wq, preferred_element_type=jnp.float32)        # (Nq, D)
    kv = jnp.dot(enc, wkv, preferred_element_type=jnp.float32)      # (Nk, 2D) fused KV
    return _attend(q, kv[:, :D], kv[:, D:], mask)


# ------------------------ fused encoder+decoder kernel -----------------------
def transformer_kernel(src_ref, tgt_ref, em_ref, dsm_ref, dcm_ref,
                       eln1g, eln1b, ewqkv, ewo, eln2g, eln2b, ew1, eb1, ew2, eb2,
                       elng, elnb,
                       dln1g, dln1b, dwqkv, dwo,
                       dln2g, dln2b, dwq, dwkv, dwoc,
                       dln3g, dln3b, dw1, db1, dw2, db2,
                       dlng, dlnb, wout, bout,
                       out_ref):
    enc_mask = em_ref[...] > 0.5       # (BLS, BLS) True -> masked (cross-batch or src pad key)
    self_mask = dsm_ref[...] > 0.5     # (BLT, BLT) cross-batch | causal | tgt pad key
    cross_mask = dcm_ref[...] > 0.5    # (BLT, BLS) cross-batch | src pad key

    # ------------------------------- encoder --------------------------------
    x = src_ref[...]                   # (BLS, D)
    for i in range(NLAYERS):           # static unroll: all weights VMEM-resident
        h = _layernorm(x, eln1g[i], eln1b[i])
        ctx = _self_attention(h, ewqkv[i], enc_mask)
        x = x + jnp.dot(ctx, ewo[i], preferred_element_type=jnp.float32)
        h2 = _layernorm(x, eln2g[i], eln2b[i])
        f = jnp.dot(h2, ew1[i], preferred_element_type=jnp.float32) + eb1[i]
        f = jnp.maximum(f, 0.0)
        x = x + jnp.dot(f, ew2[i], preferred_element_type=jnp.float32) + eb2[i]
    enc_out = _layernorm(x, elng[...], elnb[...])                    # final encoder LN

    # ------------------------------- decoder --------------------------------
    y = tgt_ref[...]                   # (BLT, D)
    for i in range(NLAYERS):
        # masked self-attention sublayer
        h = _layernorm(y, dln1g[i], dln1b[i])
        ctx = _self_attention(h, dwqkv[i], self_mask)
        y = y + jnp.dot(ctx, dwo[i], preferred_element_type=jnp.float32)
        # encoder-decoder cross-attention sublayer
        h2 = _layernorm(y, dln2g[i], dln2b[i])
        ctx2 = _cross_attention(h2, enc_out, dwq[i], dwkv[i], cross_mask)
        y = y + jnp.dot(ctx2, dwoc[i], preferred_element_type=jnp.float32)
        # position-wise feed-forward sublayer
        h3 = _layernorm(y, dln3g[i], dln3b[i])
        f = jnp.dot(h3, dw1[i], preferred_element_type=jnp.float32) + db1[i]
        f = jnp.maximum(f, 0.0)
        y = y + jnp.dot(f, dw2[i], preferred_element_type=jnp.float32) + db2[i]

    y = _layernorm(y, dlng[...], dlnb[...])                          # final decoder LN
    # output projection to vocab -> flattened (B*LT, V), matches decoder_out.view(-1, V)
    out_ref[...] = jnp.dot(y, wout[...], preferred_element_type=jnp.float32) + bout[...]


def transformer_pallas(src_x, tgt_x, enc_mask, self_mask, cross_mask, p):
    args = (src_x, tgt_x, enc_mask, self_mask, cross_mask,
            p["e_ln1_g"], p["e_ln1_b"], p["e_wqkv"], p["e_wo"],
            p["e_ln2_g"], p["e_ln2_b"], p["e_w1"], p["e_b1"], p["e_w2"], p["e_b2"],
            p["e_ln_g"], p["e_ln_b"],
            p["d_ln1_g"], p["d_ln1_b"], p["d_wqkv"], p["d_wo"],
            p["d_ln2_g"], p["d_ln2_b"], p["d_wq"], p["d_wkv"], p["d_wo_c"],
            p["d_ln3_g"], p["d_ln3_b"], p["d_w1"], p["d_b1"], p["d_w2"], p["d_b2"],
            p["d_ln_g"], p["d_ln_b"], p["w_out"], p["b_out"])
    vmem = pl.BlockSpec(memory_space=pltpu.MemorySpace.VMEM)  # whole array in VMEM, no grid
    return pl.pallas_call(
        transformer_kernel,
        out_shape=jax.ShapeDtypeStruct((BLT, VOCAB), jnp.float32),
        in_specs=[vmem] * len(args),
        out_specs=vmem,
    )(*args)


# ----------------------------- params / glue ---------------------------------
def init_params(key):
    std = D ** (-0.5)
    k_src, k_dst = jax.random.split(jax.random.fold_in(key, 1), 2)
    src_emb = (jax.random.normal(k_src, (VOCAB, D)) * std).astype(jnp.float32).at[PAD].set(0.0)
    dst_emb = (jax.random.normal(k_dst, (VOCAB, D)) * std).astype(jnp.float32).at[PAD].set(0.0)

    # Sinusoidal positional-encoding table; rows indexed by position id (PAD row zeroed).
    max_pos = max(LS, LT) + PAD + 2
    pos = np.arange(max_pos)[:, None].astype(np.float32)
    div = np.exp(np.arange(0, D, 2).astype(np.float32) * (-math.log(10000.0) / D))
    table = np.zeros((max_pos, D), np.float32)
    table[:, 0::2] = np.sin(pos * div)
    table[:, 1::2] = np.cos(pos * div)
    table[PAD] = 0.0
    pos_table = jnp.asarray(table)

    def draw(k, shape, scale=std):
        return (jax.random.normal(k, shape) * scale).astype(jnp.float32)

    # encoder layers
    e_wqkv, e_wo, e_w1, e_w2 = [], [], [], []
    for i in range(NLAYERS):
        ks = jax.random.split(jax.random.fold_in(key, 100 + i), 6)
        e_wqkv.append(jnp.concatenate(
            [draw(ks[0], (D, D)), draw(ks[1], (D, D)), draw(ks[2], (D, D))], axis=1))
        e_wo.append(draw(ks[3], (D, D)))
        e_w1.append(draw(ks[4], (D, DFF)))
        e_w2.append(draw(ks[5], (DFF, D), DFF ** -0.5))

    # decoder layers
    d_wqkv, d_wo, d_wq, d_wkv, d_wo_c, d_w1, d_w2 = [], [], [], [], [], [], []
    for i in range(NLAYERS):
        ks = jax.random.split(jax.random.fold_in(key, 200 + i), 10)
        d_wqkv.append(jnp.concatenate(
            [draw(ks[0], (D, D)), draw(ks[1], (D, D)), draw(ks[2], (D, D))], axis=1))
        d_wo.append(draw(ks[3], (D, D)))
        d_wq.append(draw(ks[4], (D, D)))
        d_wkv.append(jnp.concatenate([draw(ks[5], (D, D)), draw(ks[6], (D, D))], axis=1))
        d_wo_c.append(draw(ks[7], (D, D)))
        d_w1.append(draw(ks[8], (D, DFF)))
        d_w2.append(draw(ks[9], (DFF, D), DFF ** -0.5))

    w_out = draw(jax.random.fold_in(key, 300), (D, VOCAB))

    z = lambda s: jnp.zeros(s, jnp.float32)
    o = lambda s: jnp.ones(s, jnp.float32)

    return dict(
        src_emb=src_emb, dst_emb=dst_emb, pos_table=pos_table,
        # encoder
        e_wqkv=jnp.stack(e_wqkv), e_wo=jnp.stack(e_wo),
        e_w1=jnp.stack(e_w1), e_b1=z((NLAYERS, 1, DFF)),
        e_w2=jnp.stack(e_w2), e_b2=z((NLAYERS, 1, D)),
        e_ln1_g=o((NLAYERS, 1, D)), e_ln1_b=z((NLAYERS, 1, D)),
        e_ln2_g=o((NLAYERS, 1, D)), e_ln2_b=z((NLAYERS, 1, D)),
        e_ln_g=o((1, D)), e_ln_b=z((1, D)),
        # decoder
        d_wqkv=jnp.stack(d_wqkv), d_wo=jnp.stack(d_wo),
        d_wq=jnp.stack(d_wq), d_wkv=jnp.stack(d_wkv), d_wo_c=jnp.stack(d_wo_c),
        d_w1=jnp.stack(d_w1), d_b1=z((NLAYERS, 1, DFF)),
        d_w2=jnp.stack(d_w2), d_b2=z((NLAYERS, 1, D)),
        d_ln1_g=o((NLAYERS, 1, D)), d_ln1_b=z((NLAYERS, 1, D)),
        d_ln2_g=o((NLAYERS, 1, D)), d_ln2_b=z((NLAYERS, 1, D)),
        d_ln3_g=o((NLAYERS, 1, D)), d_ln3_b=z((NLAYERS, 1, D)),
        d_ln_g=o((1, D)), d_ln_b=z((1, D)),
        # output projection
        w_out=w_out, b_out=z((1, VOCAB)),
    )


def embed_tokens(tokens, emb, pos_table):
    # emb(tokens) * sqrt(d_model) + pos_table(make_positions(tokens))
    # TODO(synk): make_positions/LEFT_PAD left-padding semantics simplified to
    # right-padded sequences: position = PAD+1+t for real tokens, PAD for pad tokens.
    seq = tokens.shape[1]
    x = emb[tokens] * math.sqrt(D)
    positions = jnp.where(tokens != PAD, PAD + 1 + jnp.arange(seq)[None, :], PAD)
    return x + pos_table[positions]


@functools.partial(jax.jit, static_argnames=())
def transformer_forward(src_tokens, tgt_tokens, params):
    """Transformer.forward: encoder(src) -> decoder(tgt, enc_out) -> (B*LT, V)."""
    src_x = embed_tokens(src_tokens, params["src_emb"], params["pos_table"]).reshape(BLS, D)
    tgt_x = embed_tokens(tgt_tokens, params["dst_emb"], params["pos_table"]).reshape(BLT, D)

    src_pad = (src_tokens == PAD).reshape(BLS)
    tgt_pad = (tgt_tokens == PAD).reshape(BLT)
    src_b = jnp.repeat(jnp.arange(B), LS)
    tgt_b = jnp.repeat(jnp.arange(B), LT)
    pos_t = jnp.tile(jnp.arange(LT), B)          # within-batch target position

    # Encoder self-attn: key-pad + block-diagonal (rows only attend within own batch).
    enc_mask = ((src_b[:, None] != src_b[None, :]) | src_pad[None, :]).astype(jnp.float32)
    # Decoder self-attn: block-diagonal + causal + tgt key-pad.
    self_mask = ((tgt_b[:, None] != tgt_b[None, :]) | tgt_pad[None, :]
                 | (pos_t[None, :] > pos_t[:, None])).astype(jnp.float32)
    # Decoder cross-attn: block-diagonal + src key-pad.
    cross_mask = ((tgt_b[:, None] != src_b[None, :]) | src_pad[None, :]).astype(jnp.float32)

    return transformer_pallas(src_x, tgt_x, enc_mask, self_mask, cross_mask, params)


# ----------------------------- pure-JAX reference ----------------------------
def _ref_mha(q, k, v, mask):
    # q: (B, Lq, D), k/v: (B, Lk, D), mask: (B, Lq, Lk) bool
    lq, lk = q.shape[1], k.shape[1]
    qh = q.reshape(B, lq, H, DH).transpose(0, 2, 1, 3) / math.sqrt(DH)
    kh = k.reshape(B, lk, H, DH).transpose(0, 2, 1, 3)
    vh = v.reshape(B, lk, H, DH).transpose(0, 2, 1, 3)
    s = jnp.einsum("bhqd,bhkd->bhqk", qh, kh)
    s = jnp.where(mask[:, None, :, :], -1e18, s)
    a = jax.nn.softmax(s, axis=-1)
    return jnp.einsum("bhqk,bhkd->bhqd", a, vh).transpose(0, 2, 1, 3).reshape(B, lq, D)


def _ref_enc_layer(x, src_pad, i, p):
    h = _layernorm(x, p["e_ln1_g"][i], p["e_ln1_b"][i])
    qkv = h @ p["e_wqkv"][i]
    mask = jnp.broadcast_to(src_pad[:, None, :], (B, LS, LS))
    ctx = _ref_mha(qkv[..., :D], qkv[..., D:2 * D], qkv[..., 2 * D:], mask)
    y = x + ctx @ p["e_wo"][i]
    h2 = _layernorm(y, p["e_ln2_g"][i], p["e_ln2_b"][i])
    f = jnp.maximum(h2 @ p["e_w1"][i] + p["e_b1"][i], 0.0) @ p["e_w2"][i] + p["e_b2"][i]
    return y + f


def _ref_dec_layer(y, enc, tgt_pad, src_pad, i, p):
    causal = jnp.triu(jnp.ones((LT, LT), bool), k=1)
    self_mask = causal[None, :, :] | tgt_pad[:, None, :]
    h = _layernorm(y, p["d_ln1_g"][i], p["d_ln1_b"][i])
    qkv = h @ p["d_wqkv"][i]
    ctx = _ref_mha(qkv[..., :D], qkv[..., D:2 * D], qkv[..., 2 * D:], self_mask)
    y = y + ctx @ p["d_wo"][i]
    h2 = _layernorm(y, p["d_ln2_g"][i], p["d_ln2_b"][i])
    q = h2 @ p["d_wq"][i]
    kv = enc @ p["d_wkv"][i]
    cross_mask = jnp.broadcast_to(src_pad[:, None, :], (B, LT, LS))
    ctx2 = _ref_mha(q, kv[..., :D], kv[..., D:], cross_mask)
    y = y + ctx2 @ p["d_wo_c"][i]
    h3 = _layernorm(y, p["d_ln3_g"][i], p["d_ln3_b"][i])
    f = jnp.maximum(h3 @ p["d_w1"][i] + p["d_b1"][i], 0.0) @ p["d_w2"][i] + p["d_b2"][i]
    return y + f


def ref_forward(src_tokens, tgt_tokens, params):
    x = embed_tokens(src_tokens, params["src_emb"], params["pos_table"])
    src_pad = (src_tokens == PAD)
    for i in range(NLAYERS):
        x = _ref_enc_layer(x, src_pad, i, params)
    enc = _layernorm(x, params["e_ln_g"], params["e_ln_b"])

    y = embed_tokens(tgt_tokens, params["dst_emb"], params["pos_table"])
    tgt_pad = (tgt_tokens == PAD)
    for i in range(NLAYERS):
        y = _ref_dec_layer(y, enc, tgt_pad, src_pad, i, params)
    y = _layernorm(y, params["d_ln_g"], params["d_ln_b"])
    logits = y @ params["w_out"] + params["b_out"]
    return logits.reshape(-1, VOCAB)


# --------------------------------- main ---------------------------------------
if __name__ == "__main__":
    key = jax.random.PRNGKey(0)
    params = init_params(key)

    src_tokens = jax.random.randint(jax.random.fold_in(key, 999), (B, LS), 2, VOCAB, dtype=jnp.int32)
    src_tokens = src_tokens.at[1, LS - 2:].set(PAD)   # some padding to exercise the pad masks
    tgt_tokens = jax.random.randint(jax.random.fold_in(key, 998), (B, LT), 2, VOCAB, dtype=jnp.int32)
    tgt_tokens = tgt_tokens.at[0, LT - 3:].set(PAD)

    out = transformer_forward(src_tokens, tgt_tokens, params)
    out = jax.block_until_ready(out)

    ref = jax.block_until_ready(ref_forward(src_tokens, tgt_tokens, params))
    assert out.shape == (BLT, VOCAB) and out.dtype == jnp.float32
    assert np.allclose(np.asarray(out), np.asarray(ref), atol=5e-2, rtol=5e-2), (
        "Pallas output mismatch vs reference")

    print("KERNEL_OK")
</pallas_src>

<mosaic_0001>
module attributes {stable_mosaic.version = 11 : i64} {
  func.func @transformer_kernel(%arg0: memref<16x32xf32, #tpu.memory_space<vmem>>, %arg1: memref<16x32xf32, #tpu.memory_space<vmem>>, %arg2: memref<16x16xf32, #tpu.memory_space<vmem>>, %arg3: memref<16x16xf32, #tpu.memory_space<vmem>>, %arg4: memref<16x16xf32, #tpu.memory_space<vmem>>, %arg5: memref<2x1x32xf32, #tpu.memory_space<vmem>>, %arg6: memref<2x1x32xf32, #tpu.memory_space<vmem>>, %arg7: memref<2x32x96xf32, #tpu.memory_space<vmem>>, %arg8: memref<2x32x32xf32, #tpu.memory_space<vmem>>, %arg9: memref<2x1x32xf32, #tpu.memory_space<vmem>>, %arg10: memref<2x1x32xf32, #tpu.memory_space<vmem>>, %arg11: memref<2x32x64xf32, #tpu.memory_space<vmem>>, %arg12: memref<2x1x64xf32, #tpu.memory_space<vmem>>, %arg13: memref<2x64x32xf32, #tpu.memory_space<vmem>>, %arg14: memref<2x1x32xf32, #tpu.memory_space<vmem>>, %arg15: memref<1x32xf32, #tpu.memory_space<vmem>>, %arg16: memref<1x32xf32, #tpu.memory_space<vmem>>, %arg17: memref<2x1x32xf32, #tpu.memory_space<vmem>>, %arg18: memref<2x1x32xf32, #tpu.memory_space<vmem>>, %arg19: memref<2x32x96xf32, #tpu.memory_space<vmem>>, %arg20: memref<2x32x32xf32, #tpu.memory_space<vmem>>, %arg21: memref<2x1x32xf32, #tpu.memory_space<vmem>>, %arg22: memref<2x1x32xf32, #tpu.memory_space<vmem>>, %arg23: memref<2x32x32xf32, #tpu.memory_space<vmem>>, %arg24: memref<2x32x64xf32, #tpu.memory_space<vmem>>, %arg25: memref<2x32x32xf32, #tpu.memory_space<vmem>>, %arg26: memref<2x1x32xf32, #tpu.memory_space<vmem>>, %arg27: memref<2x1x32xf32, #tpu.memory_space<vmem>>, %arg28: memref<2x32x64xf32, #tpu.memory_space<vmem>>, %arg29: memref<2x1x64xf32, #tpu.memory_space<vmem>>, %arg30: memref<2x64x32xf32, #tpu.memory_space<vmem>>, %arg31: memref<2x1x32xf32, #tpu.memory_space<vmem>>, %arg32: memref<1x32xf32, #tpu.memory_space<vmem>>, %arg33: memref<1x32xf32, #tpu.memory_space<vmem>>, %arg34: memref<32x16xf32, #tpu.memory_space<vmem>>, %arg35: memref<1x16xf32, #tpu.memory_space<vmem>>, %arg36: memref<16x16xf32, #tpu.memory_space<vmem>>) attributes {dimension_semantics = [], scalar_prefetch = 0 : i64, scratch_operands = 0 : i64, tpu.core_type = #tpu.core_type<tc>} {
    %c0 = arith.constant 0 : index
    %c0_0 = arith.constant 0 : index
    %0 = vector.load %arg2[%c0, %c0_0] : memref<16x16xf32, #tpu.memory_space<vmem>>, vector<16x16xf32>
    %cst = arith.constant 5.000000e-01 : f32
    %1 = vector.broadcast %cst : f32 to vector<16x16xf32>
    %2 = arith.cmpf ogt, %0, %1 : vector<16x16xf32>
    %c0_1 = arith.constant 0 : index
    %c0_2 = arith.constant 0 : index
    %3 = vector.load %arg3[%c0_1, %c0_2] : memref<16x16xf32, #tpu.memory_space<vmem>>, vector<16x16xf32>
    %cst_3 = arith.constant 5.000000e-01 : f32
    %4 = vector.broadcast %cst_3 : f32 to vector<16x16xf32>
    %5 = arith.cmpf ogt, %3, %4 : vector<16x16xf32>
    %c0_4 = arith.constant 0 : index
    %c0_5 = arith.constant 0 : index
    %6 = vector.load %arg4[%c0_4, %c0_5] : memref<16x16xf32, #tpu.memory_space<vmem>>, vector<16x16xf32>
    %cst_6 = arith.constant 5.000000e-01 : f32
    %7 = vector.broadcast %cst_6 : f32 to vector<16x16xf32>
    %8 = arith.cmpf ogt, %6, %7 : vector<16x16xf32>
    %c0_7 = arith.constant 0 : index
    %c0_8 = arith.constant 0 : index
    %9 = vector.load %arg0[%c0_7, %c0_8] : memref<16x32xf32, #tpu.memory_space<vmem>>, vector<16x32xf32>
    %c0_9 = arith.constant 0 : index
    %c0_10 = arith.constant 0 : index
    %c0_11 = arith.constant 0 : index
    %10 = vector.load %arg5[%c0_9, %c0_10, %c0_11] : memref<2x1x32xf32, #tpu.memory_space<vmem>>, vector<1x1x32xf32>
    %11 = vector.shape_cast %10 : vector<1x1x32xf32> to vector<1x32xf32>
    %c0_12 = arith.constant 0 : index
    %c0_13 = arith.constant 0 : index
    %c0_14 = arith.constant 0 : index
    %12 = vector.load %arg6[%c0_12, %c0_13, %c0_14] : memref<2x1x32xf32, #tpu.memory_space<vmem>>, vector<1x1x32xf32>
    %13 = vector.shape_cast %12 : vector<1x1x32xf32> to vector<1x32xf32>
    %cst_15 = arith.constant dense<0.000000e+00> : vector<16xf32>
    %14 = vector.multi_reduction <add>, %9, %cst_15 [1] : vector<16x32xf32> to vector<16xf32>
    %15 = vector.shape_cast %14 : vector<16xf32> to vector<16x1xf32>
    %cst_16 = arith.constant 3.200000e+01 : f32
    %16 = vector.broadcast %cst_16 : f32 to vector<16x1xf32>
    %17 = arith.divf %15, %16 : vector<16x1xf32>
    %18 = vector.broadcast %17 : vector<16x1xf32> to vector<16x32xf32>
    %19 = arith.subf %9, %18 : vector<16x32xf32>
    %20 = arith.mulf %19, %19 : vector<16x32xf32>
    %cst_17 = arith.constant dense<0.000000e+00> : vector<16xf32>
    %21 = vector.multi_reduction <add>, %20, %cst_17 [1] : vector<16x32xf32> to vector<16xf32>
    %22 = vector.shape_cast %21 : vector<16xf32> to vector<16x1xf32>
    %cst_18 = arith.constant 3.200000e+01 : f32
    %23 = vector.broadcast %cst_18 : f32 to vector<16x1xf32>
    %24 = arith.divf %22, %23 : vector<16x1xf32>
    %25 = vector.broadcast %17 : vector<16x1xf32> to vector<16x32xf32>
    %26 = arith.subf %9, %25 : vector<16x32xf32>
    %cst_19 = arith.constant 9.99999997E-7 : f32
    %27 = vector.broadcast %cst_19 : f32 to vector<16x1xf32>
    %28 = arith.addf %24, %27 : vector<16x1xf32>
    %29 = math.rsqrt %28 : vector<16x1xf32>
    %30 = vector.broadcast %29 : vector<16x1xf32> to vector<16x32xf32>
    %31 = arith.mulf %26, %30 : vector<16x32xf32>
    %32 = vector.broadcast %11 : vector<1x32xf32> to vector<16x32xf32>
    %33 = arith.mulf %31, %32 : vector<16x32xf32>
    %34 = vector.broadcast %13 : vector<1x32xf32> to vector<16x32xf32>
    %35 = arith.addf %33, %34 : vector<16x32xf32>
    %c0_20 = arith.constant 0 : index
    %c0_21 = arith.constant 0 : index
    %c0_22 = arith.constant 0 : index
    %36 = vector.load %arg7[%c0_20, %c0_21, %c0_22] : memref<2x32x96xf32, #tpu.memory_space<vmem>>, vector<1x32x96xf32>
    %37 = vector.shape_cast %36 : vector<1x32x96xf32> to vector<32x96xf32>
    %cst_23 = arith.constant dense<0.000000e+00> : vector<16x96xf32>
    %38 = tpu.matmul %35, %37, %cst_23 {dimension_numbers = #tpu.dot_dimension_numbers<[1], [0], [0], [1], [0, 0, 1, 1], [], []>} : vector<16x32xf32>, vector<32x96xf32>, vector<16x96xf32> -> vector<16x96xf32>
    %39 = vector.extract_strided_slice %38 {offsets = [0, 0], sizes = [16, 32], strides = [1, 1]} : vector<16x96xf32> to vector<16x32xf32>
    %40 = vector.extract_strided_slice %38 {offsets = [0, 32], sizes = [16, 32], strides = [1, 1]} : vector<16x96xf32> to vector<16x32xf32>
    %41 = vector.extract_strided_slice %38 {offsets = [0, 64], sizes = [16, 32], strides = [1, 1]} : vector<16x96xf32> to vector<16x32xf32>
    %42 = vector.extract_strided_slice %39 {offsets = [0, 0], sizes = [16, 8], strides = [1, 1]} : vector<16x32xf32> to vector<16x8xf32>
    %cst_24 = arith.constant 0.353553385 : f32
    %43 = vector.broadcast %cst_24 : f32 to vector<16x8xf32>
    %44 = arith.mulf %42, %43 : vector<16x8xf32>
    %45 = vector.extract_strided_slice %40 {offsets = [0, 0], sizes = [16, 8], strides = [1, 1]} : vector<16x32xf32> to vector<16x8xf32>
    %46 = vector.extract_strided_slice %41 {offsets = [0, 0], sizes = [16, 8], strides = [1, 1]} : vector<16x32xf32> to vector<16x8xf32>
    %47 = tpu.transpose %45, [1, 0] : vector<16x8xf32> -> vector<8x16xf32>
    %cst_25 = arith.constant dense<0.000000e+00> : vector<16x16xf32>
    %48 = tpu.matmul %44, %47, %cst_25 {dimension_numbers = #tpu.dot_dimension_numbers<[1], [0], [0], [1], [0, 0, 1, 1], [], []>} : vector<16x8xf32>, vector<8x16xf32>, vector<16x16xf32> -> vector<16x16xf32>
    %cst_26 = arith.constant -9.99999984E+17 : f32
    %49 = vector.broadcast %cst_26 : f32 to vector<16x16xf32>
    %50 = arith.select %2, %49, %48 : vector<16x16xi1>, vector<16x16xf32>
    %cst_27 = arith.constant dense<0xFF800000> : vector<16xf32>
    %51 = vector.multi_reduction <maximumf>, %50, %cst_27 [1] : vector<16x16xf32> to vector<16xf32>
    %52 = vector.shape_cast %51 : vector<16xf32> to vector<16x1xf32>
    %53 = vector.broadcast %52 : vector<16x1xf32> to vector<16x16xf32>
    %54 = arith.subf %50, %53 : vector<16x16xf32>
    %55 = math.exp %54 : vector<16x16xf32>
    %cst_28 = arith.constant dense<0.000000e+00> : vector<16xf32>
    %56 = vector.multi_reduction <add>, %55, %cst_28 [1] : vector<16x16xf32> to vector<16xf32>
    %57 = vector.shape_cast %56 : vector<16xf32> to vector<16x1xf32>
    %58 = tpu.reciprocal %57 {approx = true} : vector<16x1xf32> -> vector<16x1xf32>
    %59 = vector.broadcast %58 : vector<16x1xf32> to vector<16x16xf32>
    %60 = arith.mulf %55, %59 : vector<16x16xf32>
    %cst_29 = arith.constant dense<0.000000e+00> : vector<16x8xf32>
    %61 = tpu.matmul %60, %46, %cst_29 {dimension_numbers = #tpu.dot_dimension_numbers<[1], [0], [0], [1], [0, 0, 1, 1], [], []>} : vector<16x16xf32>, vector<16x8xf32>, vector<16x8xf32> -> vector<16x8xf32>
    %62 = vector.extract_strided_slice %39 {offsets = [0, 8], sizes = [16, 8], strides = [1, 1]} : vector<16x32xf32> to vector<16x8xf32>
    %cst_30 = arith.constant 0.353553385 : f32
    %63 = vector.broadcast %cst_30 : f32 to vector<16x8xf32>
    %64 = arith.mulf %62, %63 : vector<16x8xf32>
    %65 = vector.extract_strided_slice %40 {offsets = [0, 8], sizes = [16, 8], strides = [1, 1]} : vector<16x32xf32> to vector<16x8xf32>
    %66 = vector.extract_strided_slice %41 {offsets = [0, 8], sizes = [16, 8], strides = [1, 1]} : vector<16x32xf32> to vector<16x8xf32>
    %67 = tpu.transpose %65, [1, 0] : vector<16x8xf32> -> vector<8x16xf32>
    %cst_31 = arith.constant dense<0.000000e+00> : vector<16x16xf32>
    %68 = tpu.matmul %64, %67, %cst_31 {dimension_numbers = #tpu.dot_dimension_numbers<[1], [0], [0], [1], [0, 0, 1, 1], [], []>} : vector<16x8xf32>, vector<8x16xf32>, vector<16x16xf32> -> vector<16x16xf32>
    %cst_32 = arith.constant -9.99999984E+17 : f32
    %69 = vector.broadcast %cst_32 : f32 to vector<16x16xf32>
    %70 = arith.select %2, %69, %68 : vector<16x16xi1>, vector<16x16xf32>
    %cst_33 = arith.constant dense<0xFF800000> : vector<16xf32>
    %71 = vector.multi_reduction <maximumf>, %70, %cst_33 [1] : vector<16x16xf32> to vector<16xf32>
    %72 = vector.shape_cast %71 : vector<16xf32> to vector<16x1xf32>
    %73 = vector.broadcast %72 : vector<16x1xf32> to vector<16x16xf32>
    %74 = arith.subf %70, %73 : vector<16x16xf32>
    %75 = math.exp %74 : vector<16x16xf32>
    %cst_34 = arith.constant dense<0.000000e+00> : vector<16xf32>
    %76 = vector.multi_reduction <add>, %75, %cst_34 [1] : vector<16x16xf32> to vector<16xf32>
    %77 = vector.shape_cast %76 : vector<16xf32> to vector<16x1xf32>
    %78 = tpu.reciprocal %77 {approx = true} : vector<16x1xf32> -> vector<16x1xf32>
    %79 = vector.broadcast %78 : vector<16x1xf32> to vector<16x16xf32>
    %80 = arith.mulf %75, %79 : vector<16x16xf32>
    %cst_35 = arith.constant dense<0.000000e+00> : vector<16x8xf32>
    %81 = tpu.matmul %80, %66, %cst_35 {dimension_numbers = #tpu.dot_dimension_numbers<[1], [0], [0], [1], [0, 0, 1, 1], [], []>} : vector<16x16xf32>, vector<16x8xf32>, vector<16x8xf32> -> vector<16x8xf32>
    %82 = vector.extract_strided_slice %39 {offsets = [0, 16], sizes = [16, 8], strides = [1, 1]} : vector<16x32xf32> to vector<16x8xf32>
    %cst_36 = arith.constant 0.353553385 : f32
    %83 = vector.broadcast %cst_36 : f32 to vector<16x8xf32>
    %84 = arith.mulf %82, %83 : vector<16x8xf32>
    %85 = vector.extract_strided_slice %40 {offsets = [0, 16], sizes = [16, 8], strides = [1, 1]} : vector<16x32xf32> to vector<16x8xf32>
    %86 = vector.extract_strided_slice %41 {offsets = [0, 16], sizes = [16, 8], strides = [1, 1]} : vector<16x32xf32> to vector<16x8xf32>
    %87 = tpu.transpose %85, [1, 0] : vector<16x8xf32> -> vector<8x16xf32>
    %cst_37 = arith.constant dense<0.000000e+00> : vector<16x16xf32>
    %88 = tpu.matmul %84, %87, %cst_37 {dimension_numbers = #tpu.dot_dimension_numbers<[1], [0], [0], [1], [0, 0, 1, 1], [], []>} : vector<16x8xf32>, vector<8x16xf32>, vector<16x16xf32> -> vector<16x16xf32>
    %cst_38 = arith.constant -9.99999984E+17 : f32
    %89 = vector.broadcast %cst_38 : f32 to vector<16x16xf32>
    %90 = arith.select %2, %89, %88 : vector<16x16xi1>, vector<16x16xf32>
    %cst_39 = arith.constant dense<0xFF800000> : vector<16xf32>
    %91 = vector.multi_reduction <maximumf>, %90, %cst_39 [1] : vector<16x16xf32> to vector<16xf32>
    %92 = vector.shape_cast %91 : vector<16xf32> to vector<16x1xf32>
    %93 = vector.broadcast %92 : vector<16x1xf32> to vector<16x16xf32>
    %94 = arith.subf %90, %93 : vector<16x16xf32>
    %95 = math.exp %94 : vector<16x16xf32>
    %cst_40 = arith.constant dense<0.000000e+00> : vector<16xf32>
    %96 = vector.multi_reduction <add>, %95, %cst_40 [1] : vector<16x16xf32> to vector<16xf32>
    %97 = vector.shape_cast %96 : vector<16xf32> to vector<16x1xf32>
    %98 = tpu.reciprocal %97 {approx = true} : vector<16x1xf32> -> vector<16x1xf32>
    %99 = vector.broadcast %98 : vector<16x1xf32> to vector<16x16xf32>
    %100 = arith.mulf %95, %99 : vector<16x16xf32>
    %cst_41 = arith.constant dense<0.000000e+00> : vector<16x8xf32>
    %101 = tpu.matmul %100, %86, %cst_41 {dimension_numbers = #tpu.dot_dimension_numbers<[1], [0], [0], [1], [0, 0, 1, 1], [], []>} : vector<16x16xf32>, vector<16x8xf32>, vector<16x8xf32> -> vector<16x8xf32>
    %102 = vector.extract_strided_slice %39 {offsets = [0, 24], sizes = [16, 8], strides = [1, 1]} : vector<16x32xf32> to vector<16x8xf32>
    %cst_42 = arith.constant 0.353553385 : f32
    %103 = vector.broadcast %cst_42 : f32 to vector<16x8xf32>
    %104 = arith.mulf %102, %103 : vector<16x8xf32>
    %105 = vector.extract_strided_slice %40 {offsets = [0, 24], sizes = [16, 8], strides = [1, 1]} : vector<16x32xf32> to vector<16x8xf32>
    %106 = vector.extract_strided_slice %41 {offsets = [0, 24], sizes = [16, 8], strides = [1, 1]} : vector<16x32xf32> to vector<16x8xf32>
    %107 = tpu.transpose %105, [1, 0] : vector<16x8xf32> -> vector<8x16xf32>
    %cst_43 = arith.constant dense<0.000000e+00> : vector<16x16xf32>
    %108 = tpu.matmul %104, %107, %cst_43 {dimension_numbers = #tpu.dot_dimension_numbers<[1], [0], [0], [1], [0, 0, 1, 1], [], []>} : vector<16x8xf32>, vector<8x16xf32>, vector<16x16xf32> -> vector<16x16xf32>
    %cst_44 = arith.constant -9.99999984E+17 : f32
    %109 = vector.broadcast %cst_44 : f32 to vector<16x16xf32>
    %110 = arith.select %2, %109, %108 : vector<16x16xi1>, vector<16x16xf32>
    %cst_45 = arith.constant dense<0xFF800000> : vector<16xf32>
    %111 = vector.multi_reduction <maximumf>, %110, %cst_45 [1] : vector<16x16xf32> to vector<16xf32>
    %112 = vector.shape_cast %111 : vector<16xf32> to vector<16x1xf32>
    %113 = vector.broadcast %112 : vector<16x1xf32> to vector<16x16xf32>
    %114 = arith.subf %110, %113 : vector<16x16xf32>
    %115 = math.exp %114 : vector<16x16xf32>
    %cst_46 = arith.constant dense<0.000000e+00> : vector<16xf32>
    %116 = vector.multi_reduction <add>, %115, %cst_46 [1] : vector<16x16xf32> to vector<16xf32>
    %117 = vector.shape_cast %116 : vector<16xf32> to vector<16x1xf32>
    %118 = tpu.reciprocal %117 {approx = true} : vector<16x1xf32> -> vector<16x1xf32>
    %119 = vector.broadcast %118 : vector<16x1xf32> to vector<16x16xf32>
    %120 = arith.mulf %115, %119 : vector<16x16xf32>
    %cst_47 = arith.constant dense<0.000000e+00> : vector<16x8xf32>
    %121 = tpu.matmul %120, %106, %cst_47 {dimension_numbers = #tpu.dot_dimension_numbers<[1], [0], [0], [1], [0, 0, 1, 1], [], []>} : vector<16x16xf32>, vector<16x8xf32>, vector<16x8xf32> -> vector<16x8xf32>
    %122 = tpu.concatenate %61, %81, %101, %121 in 1 : vector<16x8xf32>, vector<16x8xf32>, vector<16x8xf32>, vector<16x8xf32> -> vector<16x32xf32>
    %c0_48 = arith.constant 0 : index
    %c0_49 = arith.constant 0 : index
    %c0_50 = arith.constant 0 : index
    %123 = vector.load %arg8[%c0_48, %c0_49, %c0_50] : memref<2x32x32xf32, #tpu.memory_space<vmem>>, vector<1x32x32xf32>
    %124 = vector.shape_cast %123 : vector<1x32x32xf32> to vector<32x32xf32>
    %cst_51 = arith.constant dense<0.000000e+00> : vector<16x32xf32>
    %125 = tpu.matmul %122, %124, %cst_51 {dimension_numbers = #tpu.dot_dimension_numbers<[1], [0], [0], [1], [0, 0, 1, 1], [], []>} : vector<16x32xf32>, vector<32x32xf32>, vector<16x32xf32> -> vector<16x32xf32>
    %126 = arith.addf %9, %125 : vector<16x32xf32>
    %c0_52 = arith.constant 0 : index
    %c0_53 = arith.constant 0 : index
    %c0_54 = arith.constant 0 : index
    %127 = vector.load %arg9[%c0_52, %c0_53, %c0_54] : memref<2x1x32xf32, #tpu.memory_space<vmem>>, vector<1x1x32xf32>
    %128 = vector.shape_cast %127 : vector<1x1x32xf32> to vector<1x32xf32>
    %c0_55 = arith.constant 0 : index
    %c0_56 = arith.constant 0 : index
    %c0_57 = arith.constant 0 : index
    %129 = vector.load %arg10[%c0_55, %c0_56, %c0_57] : memref<2x1x32xf32, #tpu.memory_space<vmem>>, vector<1x1x32xf32>
    %130 = vector.shape_cast %129 : vector<1x1x32xf32> to vector<1x32xf32>
    %cst_58 = arith.constant dense<0.000000e+00> : vector<16xf32>
    %131 = vector.multi_reduction <add>, %126, %cst_58 [1] : vector<16x32xf32> to vector<16xf32>
    %132 = vector.shape_cast %131 : vector<16xf32> to vector<16x1xf32>
    %cst_59 = arith.constant 3.200000e+01 : f32
    %133 = vector.broadcast %cst_59 : f32 to vector<16x1xf32>
    %134 = arith.divf %132, %133 : vector<16x1xf32>
    %135 = vector.broadcast %134 : vector<16x1xf32> to vector<16x32xf32>
    %136 = arith.subf %126, %135 : vector<16x32xf32>
    %137 = arith.mulf %136, %136 : vector<16x32xf32>
    %cst_60 = arith.constant dense<0.000000e+00> : vector<16xf32>
    %138 = vector.multi_reduction <add>, %137, %cst_60 [1] : vector<16x32xf32> to vector<16xf32>
    %139 = vector.shape_cast %138 : vector<16xf32> to vector<16x1xf32>
    %cst_61 = arith.constant 3.200000e+01 : f32
    %140 = vector.broadcast %cst_61 : f32 to vector<16x1xf32>
    %141 = arith.divf %139, %140 : vector<16x1xf32>
    %142 = vector.broadcast %134 : vector<16x1xf32> to vector<16x32xf32>
    %143 = arith.subf %126, %142 : vector<16x32xf32>
    %cst_62 = arith.constant 9.99999997E-7 : f32
    %144 = vector.broadcast %cst_62 : f32 to vector<16x1xf32>
    %145 = arith.addf %141, %144 : vector<16x1xf32>
    %146 = math.rsqrt %145 : vector<16x1xf32>
    %147 = vector.broadcast %146 : vector<16x1xf32> to vector<16x32xf32>
    %148 = arith.mulf %143, %147 : vector<16x32xf32>
    %149 = vector.broadcast %128 : vector<1x32xf32> to vector<16x32xf32>
    %150 = arith.mulf %148, %149 : vector<16x32xf32>
    %151 = vector.broadcast %130 : vector<1x32xf32> to vector<16x32xf32>
    %152 = arith.addf %150, %151 : vector<16x32xf32>
    %c0_63 = arith.constant 0 : index
    %c0_64 = arith.constant 0 : index
    %c0_65 = arith.constant 0 : index
    %153 = vector.load %arg11[%c0_63, %c0_64, %c0_65] : memref<2x32x64xf32, #tpu.memory_space<vmem>>, vector<1x32x64xf32>
    %154 = vector.shape_cast %153 : vector<1x32x64xf32> to vector<32x64xf32>
    %cst_66 = arith.constant dense<0.000000e+00> : vector<16x64xf32>
    %155 = tpu.matmul %152, %154, %cst_66 {dimension_numbers = #tpu.dot_dimension_numbers<[1], [0], [0], [1], [0, 0, 1, 1], [], []>} : vector<16x32xf32>, vector<32x64xf32>, vector<16x64xf32> -> vector<16x64xf32>
    %c0_67 = arith.constant 0 : index
    %c0_68 = arith.constant 0 : index
    %c0_69 = arith.constant 0 : index
    %156 = vector.load %arg12[%c0_67, %c0_68, %c0_69] : memref<2x1x64xf32, #tpu.memory_space<vmem>>, vector<1x1x64xf32>
    %157 = vector.shape_cast %156 : vector<1x1x64xf32> to vector<1x64xf32>
    %158 = vector.broadcast %157 : vector<1x64xf32> to vector<16x64xf32>
    %159 = arith.addf %155, %158 : vector<16x64xf32>
    %cst_70 = arith.constant 0.000000e+00 : f32
    %160 = vector.broadcast %cst_70 : f32 to vector<16x64xf32>
    %161 = arith.maximumf %159, %160 : vector<16x64xf32>
    %c0_71 = arith.constant 0 : index
    %c0_72 = arith.constant 0 : index
    %c0_73 = arith.constant 0 : index
    %162 = vector.load %arg13[%c0_71, %c0_72, %c0_73] : memref<2x64x32xf32, #tpu.memory_space<vmem>>, vector<1x64x32xf32>
    %163 = vector.shape_cast %162 : vector<1x64x32xf32> to vector<64x32xf32>
    %cst_74 = arith.constant dense<0.000000e+00> : vector<16x32xf32>
    %164 = tpu.matmul %161, %163, %cst_74 {dimension_numbers = #tpu.dot_dimension_numbers<[1], [0], [0], [1], [0, 0, 1, 1], [], []>} : vector<16x64xf32>, vector<64x32xf32>, vector<16x32xf32> -> vector<16x32xf32>
    %165 = arith.addf %126, %164 : vector<16x32xf32>
    %c0_75 = arith.constant 0 : index
    %c0_76 = arith.constant 0 : index
    %c0_77 = arith.constant 0 : index
    %166 = vector.load %arg14[%c0_75, %c0_76, %c0_77] : memref<2x1x32xf32, #tpu.memory_space<vmem>>, vector<1x1x32xf32>
    %167 = vector.shape_cast %166 : vector<1x1x32xf32> to vector<1x32xf32>
    %168 = vector.broadcast %167 : vector<1x32xf32> to vector<16x32xf32>
    %169 = arith.addf %165, %168 : vector<16x32xf32>
    %c1 = arith.constant 1 : index
    %c0_78 = arith.constant 0 : index
    %c0_79 = arith.constant 0 : index
    %170 = vector.load %arg5[%c1, %c0_78, %c0_79] : memref<2x1x32xf32, #tpu.memory_space<vmem>>, vector<1x1x32xf32>
    %171 = vector.shape_cast %170 : vector<1x1x32xf32> to vector<1x32xf32>
    %c1_80 = arith.constant 1 : index
    %c0_81 = arith.constant 0 : index
    %c0_82 = arith.constant 0 : index
    %172 = vector.load %arg6[%c1_80, %c0_81, %c0_82] : memref<2x1x32xf32, #tpu.memory_space<vmem>>, vector<1x1x32xf32>
    %173 = vector.shape_cast %172 : vector<1x1x32xf32> to vector<1x32xf32>
    %cst_83 = arith.constant dense<0.000000e+00> : vector<16xf32>
    %174 = vector.multi_reduction <add>, %169, %cst_83 [1] : vector<16x32xf32> to vector<16xf32>
    %175 = vector.shape_cast %174 : vector<16xf32> to vector<16x1xf32>
    %cst_84 = arith.constant 3.200000e+01 : f32
    %176 = vector.broadcast %cst_84 : f32 to vector<16x1xf32>
    %177 = arith.divf %175, %176 : vector<16x1xf32>
    %178 = vector.broadcast %177 : vector<16x1xf32> to vector<16x32xf32>
    %179 = arith.subf %169, %178 : vector<16x32xf32>
    %180 = arith.mulf %179, %179 : vector<16x32xf32>
    %cst_85 = arith.constant dense<0.000000e+00> : vector<16xf32>
    %181 = vector.multi_reduction <add>, %180, %cst_85 [1] : vector<16x32xf32> to vector<16xf32>
    %182 = vector.shape_cast %181 : vector<16xf32> to vector<16x1xf32>
    %cst_86 = arith.constant 3.200000e+01 : f32
    %183 = vector.broadcast %cst_86 : f32 to vector<16x1xf32>
    %184 = arith.divf %182, %183 : vector<16x1xf32>
    %185 = vector.broadcast %177 : vector<16x1xf32> to vector<16x32xf32>
    %186 = arith.subf %169, %185 : vector<16x32xf32>
    %cst_87 = arith.constant 9.99999997E-7 : f32
    %187 = vector.broadcast %cst_87 : f32 to vector<16x1xf32>
    %188 = arith.addf %184, %187 : vector<16x1xf32>
    %189 = math.rsqrt %188 : vector<16x1xf32>
    %190 = vector.broadcast %189 : vector<16x1xf32> to vector<16x32xf32>
    %191 = arith.mulf %186, %190 : vector<16x32xf32>
    %192 = vector.broadcast %171 : vector<1x32xf32> to vector<16x32xf32>
    %193 = arith.mulf %191, %192 : vector<16x32xf32>
    %194 = vector.broadcast %173 : vector<1x32xf32> to vector<16x32xf32>
    %195 = arith.addf %193, %194 : vector<16x32xf32>
    %c1_88 = arith.constant 1 : index
    %c0_89 = arith.constant 0 : index
    %c0_90 = arith.constant 0 : index
    %196 = vector.load %arg7[%c1_88, %c0_89, %c0_90] : memref<2x32x96xf32, #tpu.memory_space<vmem>>, vector<1x32x96xf32>
    %197 = vector.shape_cast %196 : vector<1x32x96xf32> to vector<32x96xf32>
    %cst_91 = arith.constant dense<0.000000e+00> : vector<16x96xf32>
    %198 = tpu.matmul %195, %197, %cst_91 {dimension_numbers = #tpu.dot_dimension_numbers<[1], [0], [0], [1], [0, 0, 1, 1], [], []>} : vector<16x32xf32>, vector<32x96xf32>, vector<16x96xf32> -> vector<16x96xf32>
    %199 = vector.extract_strided_slice %198 {offsets = [0, 0], sizes = [16, 32], strides = [1, 1]} : vector<16x96xf32> to vector<16x32xf32>
    %200 = vector.extract_strided_slice %198 {offsets = [0, 32], sizes = [16, 32], strides = [1, 1]} : vector<16x96xf32> to vector<16x32xf32>
    %201 = vector.extract_strided_slice %198 {offsets = [0, 64], sizes = [16, 32], strides = [1, 1]} : vector<16x96xf32> to vector<16x32xf32>
    %202 = vector.extract_strided_slice %199 {offsets = [0, 0], sizes = [16, 8], strides = [1, 1]} : vector<16x32xf32> to vector<16x8xf32>
    %cst_92 = arith.constant 0.353553385 : f32
    %203 = vector.broadcast %cst_92 : f32 to vector<16x8xf32>
    %204 = arith.mulf %202, %203 : vector<16x8xf32>
    %205 = vector.extract_strided_slice %200 {offsets = [0, 0], sizes = [16, 8], strides = [1, 1]} : vector<16x32xf32> to vector<16x8xf32>
    %206 = vector.extract_strided_slice %201 {offsets = [0, 0], sizes = [16, 8], strides = [1, 1]} : vector<16x32xf32> to vector<16x8xf32>
    %207 = tpu.transpose %205, [1, 0] : vector<16x8xf32> -> vector<8x16xf32>
    %cst_93 = arith.constant dense<0.000000e+00> : vector<16x16xf32>
    %208 = tpu.matmul %204, %207, %cst_93 {dimension_numbers = #tpu.dot_dimension_numbers<[1], [0], [0], [1], [0, 0, 1, 1], [], []>} : vector<16x8xf32>, vector<8x16xf32>, vector<16x16xf32> -> vector<16x16xf32>
    %cst_94 = arith.constant -9.99999984E+17 : f32
    %209 = vector.broadcast %cst_94 : f32 to vector<16x16xf32>
    %210 = arith.select %2, %209, %208 : vector<16x16xi1>, vector<16x16xf32>
    %cst_95 = arith.constant dense<0xFF800000> : vector<16xf32>
    %211 = vector.multi_reduction <maximumf>, %210, %cst_95 [1] : vector<16x16xf32> to vector<16xf32>
    %212 = vector.shape_cast %211 : vector<16xf32> to vector<16x1xf32>
    %213 = vector.broadcast %212 : vector<16x1xf32> to vector<16x16xf32>
    %214 = arith.subf %210, %213 : vector<16x16xf32>
    %215 = math.exp %214 : vector<16x16xf32>
    %cst_96 = arith.constant dense<0.000000e+00> : vector<16xf32>
    %216 = vector.multi_reduction <add>, %215, %cst_96 [1] : vector<16x16xf32> to vector<16xf32>
    %217 = vector.shape_cast %216 : vector<16xf32> to vector<16x1xf32>
    %218 = tpu.reciprocal %217 {approx = true} : vector<16x1xf32> -> vector<16x1xf32>
    %219 = vector.broadcast %218 : vector<16x1xf32> to vector<16x16xf32>
    %220 = arith.mulf %215, %219 : vector<16x16xf32>
    %cst_97 = arith.constant dense<0.000000e+00> : vector<16x8xf32>
    %221 = tpu.matmul %220, %206, %cst_97 {dimension_numbers = #tpu.dot_dimension_numbers<[1], [0], [0], [1], [0, 0, 1, 1], [], []>} : vector<16x16xf32>, vector<16x8xf32>, vector<16x8xf32> -> vector<16x8xf32>
    %222 = vector.extract_strided_slice %199 {offsets = [0, 8], sizes = [16, 8], strides = [1, 1]} : vector<16x32xf32> to vector<16x8xf32>
    %cst_98 = arith.constant 0.353553385 : f32
    %223 = vector.broadcast %cst_98 : f32 to vector<16x8xf32>
    %224 = arith.mulf %222, %223 : vector<16x8xf32>
    %225 = vector.extract_strided_slice %200 {offsets = [0, 8], sizes = [16, 8], strides = [1, 1]} : vector<16x32xf32> to vector<16x8xf32>
    %226 = vector.extract_strided_slice %201 {offsets = [0, 8], sizes = [16, 8], strides = [1, 1]} : vector<16x32xf32> to vector<16x8xf32>
    %227 = tpu.transpose %225, [1, 0] : vector<16x8xf32> -> vector<8x16xf32>
    %cst_99 = arith.constant dense<0.000000e+00> : vector<16x16xf32>
    %228 = tpu.matmul %224, %227, %cst_99 {dimension_numbers = #tpu.dot_dimension_numbers<[1], [0], [0], [1], [0, 0, 1, 1], [], []>} : vector<16x8xf32>, vector<8x16xf32>, vector<16x16xf32> -> vector<16x16xf32>
    %cst_100 = arith.constant -9.99999984E+17 : f32
    %229 = vector.broadcast %cst_100 : f32 to vector<16x16xf32>
    %230 = arith.select %2, %229, %228 : vector<16x16xi1>, vector<16x16xf32>
    %cst_101 = arith.constant dense<0xFF800000> : vector<16xf32>
    %231 = vector.multi_reduction <maximumf>, %230, %cst_101 [1] : vector<16x16xf32> to vector<16xf32>
    %232 = vector.shape_cast %231 : vector<16xf32> to vector<16x1xf32>
    %233 = vector.broadcast %232 : vector<16x1xf32> to vector<16x16xf32>
    %234 = arith.subf %230, %233 : vector<16x16xf32>
    %235 = math.exp %234 : vector<16x16xf32>
    %cst_102 = arith.constant dense<0.000000e+00> : vector<16xf32>
    %236 = vector.multi_reduction <add>, %235, %cst_102 [1] : vector<16x16xf32> to vector<16xf32>
    %237 = vector.shape_cast %236 : vector<16xf32> to vector<16x1xf32>
    %238 = tpu.reciprocal %237 {approx = true} : vector<16x1xf32> -> vector<16x1xf32>
    %239 = vector.broadcast %238 : vector<16x1xf32> to vector<16x16xf32>
    %240 = arith.mulf %235, %239 : vector<16x16xf32>
    %cst_103 = arith.constant dense<0.000000e+00> : vector<16x8xf32>
    %241 = tpu.matmul %240, %226, %cst_103 {dimension_numbers = #tpu.dot_dimension_numbers<[1], [0], [0], [1], [0, 0, 1, 1], [], []>} : vector<16x16xf32>, vector<16x8xf32>, vector<16x8xf32> -> vector<16x8xf32>
    %242 = vector.extract_strided_slice %199 {offsets = [0, 16], sizes = [16, 8], strides = [1, 1]} : vector<16x32xf32> to vector<16x8xf32>
    %cst_104 = arith.constant 0.353553385 : f32
    %243 = vector.broadcast %cst_104 : f32 to vector<16x8xf32>
    %244 = arith.mulf %242, %243 : vector<16x8xf32>
    %245 = vector.extract_strided_slice %200 {offsets = [0, 16], sizes = [16, 8], strides = [1, 1]} : vector<16x32xf32> to vector<16x8xf32>
    %246 = vector.extract_strided_slice %201 {offsets = [0, 16], sizes = [16, 8], strides = [1, 1]} : vector<16x32xf32> to vector<16x8xf32>
    %247 = tpu.transpose %245, [1, 0] : vector<16x8xf32> -> vector<8x16xf32>
    %cst_105 = arith.constant dense<0.000000e+00> : vector<16x16xf32>
    %248 = tpu.matmul %244, %247, %cst_105 {dimension_numbers = #tpu.dot_dimension_numbers<[1], [0], [0], [1], [0, 0, 1, 1], [], []>} : vector<16x8xf32>, vector<8x16xf32>, vector<16x16xf32> -> vector<16x16xf32>
    %cst_106 = arith.constant -9.99999984E+17 : f32
    %249 = vector.broadcast %cst_106 : f32 to vector<16x16xf32>
    %250 = arith.select %2, %249, %248 : vector<16x16xi1>, vector<16x16xf32>
    %cst_107 = arith.constant dense<0xFF800000> : vector<16xf32>
    %251 = vector.multi_reduction <maximumf>, %250, %cst_107 [1] : vector<16x16xf32> to vector<16xf32>
    %252 = vector.shape_cast %251 : vector<16xf32> to vector<16x1xf32>
    %253 = vector.broadcast %252 : vector<16x1xf32> to vector<16x16xf32>
    %254 = arith.subf %250, %253 : vector<16x16xf32>
    %255 = math.exp %254 : vector<16x16xf32>
    %cst_108 = arith.constant dense<0.000000e+00> : vector<16xf32>
    %256 = vector.multi_reduction <add>, %255, %cst_108 [1] : vector<16x16xf32> to vector<16xf32>
    %257 = vector.shape_cast %256 : vector<16xf32> to vector<16x1xf32>
    %258 = tpu.reciprocal %257 {approx = true} : vector<16x1xf32> -> vector<16x1xf32>
    %259 = vector.broadcast %258 : vector<16x1xf32> to vector<16x16xf32>
    %260 = arith.mulf %255, %259 : vector<16x16xf32>
    %cst_109 = arith.constant dense<0.000000e+00> : vector<16x8xf32>
    %261 = tpu.matmul %260, %246, %cst_109 {dimension_numbers = #tpu.dot_dimension_numbers<[1], [0], [0], [1], [0, 0, 1, 1], [], []>} : vector<16x16xf32>, vector<16x8xf32>, vector<16x8xf32> -> vector<16x8xf32>
    %262 = vector.extract_strided_slice %199 {offsets = [0, 24], sizes = [16, 8], strides = [1, 1]} : vector<16x32xf32> to vector<16x8xf32>
    %cst_110 = arith.constant 0.353553385 : f32
    %263 = vector.broadcast %cst_110 : f32 to vector<16x8xf32>
    %264 = arith.mulf %262, %263 : vector<16x8xf32>
    %265 = vector.extract_strided_slice %200 {offsets = [0, 24], sizes = [16, 8], strides = [1, 1]} : vector<16x32xf32> to vector<16x8xf32>
    %266 = vector.extract_strided_slice %201 {offsets = [0, 24], sizes = [16, 8], strides = [1, 1]} : vector<16x32xf32> to vector<16x8xf32>
    %267 = tpu.transpose %265, [1, 0] : vector<16x8xf32> -> vector<8x16xf32>
    %cst_111 = arith.constant dense<0.000000e+00> : vector<16x16xf32>
    %268 = tpu.matmul %264, %267, %cst_111 {dimension_numbers = #tpu.dot_dimension_numbers<[1], [0], [0], [1], [0, 0, 1, 1], [], []>} : vector<16x8xf32>, vector<8x16xf32>, vector<16x16xf32> -> vector<16x16xf32>
    %cst_112 = arith.constant -9.99999984E+17 : f32
    %269 = vector.broadcast %cst_112 : f32 to vector<16x16xf32>
    %270 = arith.select %2, %269, %268 : vector<16x16xi1>, vector<16x16xf32>
    %cst_113 = arith.constant dense<0xFF800000> : vector<16xf32>
    %271 = vector.multi_reduction <maximumf>, %270, %cst_113 [1] : vector<16x16xf32> to vector<16xf32>
    %272 = vector.shape_cast %271 : vector<16xf32> to vector<16x1xf32>
    %273 = vector.broadcast %272 : vector<16x1xf32> to vector<16x16xf32>
    %274 = arith.subf %270, %273 : vector<16x16xf32>
    %275 = math.exp %274 : vector<16x16xf32>
    %cst_114 = arith.constant dense<0.000000e+00> : vector<16xf32>
    %276 = vector.multi_reduction <add>, %275, %cst_114 [1] : vector<16x16xf32> to vector<16xf32>
    %277 = vector.shape_cast %276 : vector<16xf32> to vector<16x1xf32>
    %278 = tpu.reciprocal %277 {approx = true} : vector<16x1xf32> -> vector<16x1xf32>
    %279 = vector.broadcast %278 : vector<16x1xf32> to vector<16x16xf32>
    %280 = arith.mulf %275, %279 : vector<16x16xf32>
    %cst_115 = arith.constant dense<0.000000e+00> : vector<16x8xf32>
    %281 = tpu.matmul %280, %266, %cst_115 {dimension_numbers = #tpu.dot_dimension_numbers<[1], [0], [0], [1], [0, 0, 1, 1], [], []>} : vector<16x16xf32>, vector<16x8xf32>, vector<16x8xf32> -> vector<16x8xf32>
    %282 = tpu.concatenate %221, %241, %261, %281 in 1 : vector<16x8xf32>, vector<16x8xf32>, vector<16x8xf32>, vector<16x8xf32> -> vector<16x32xf32>
    %c1_116 = arith.constant 1 : index
    %c0_117 = arith.constant 0 : index
    %c0_118 = arith.constant 0 : index
    %283 = vector.load %arg8[%c1_116, %c0_117, %c0_118] : memref<2x32x32xf32, #tpu.memory_space<vmem>>, vector<1x32x32xf32>
    %284 = vector.shape_cast %283 : vector<1x32x32xf32> to vector<32x32xf32>
    %cst_119 = arith.constant dense<0.000000e+00> : vector<16x32xf32>
    %285 = tpu.matmul %282, %284, %cst_119 {dimension_numbers = #tpu.dot_dimension_numbers<[1], [0], [0], [1], [0, 0, 1, 1], [], []>} : vector<16x32xf32>, vector<32x32xf32>, vector<16x32xf32> -> vector<16x32xf32>
    %286 = arith.addf %169, %285 : vector<16x32xf32>
    %c1_120 = arith.constant 1 : index
    %c0_121 = arith.constant 0 : index
    %c0_122 = arith.constant 0 : index
    %287 = vector.load %arg9[%c1_120, %c0_121, %c0_122] : memref<2x1x32xf32, #tpu.memory_space<vmem>>, vector<1x1x32xf32>
    %288 = vector.shape_cast %287 : vector<1x1x32xf32> to vector<1x32xf32>
    %c1_123 = arith.constant 1 : index
    %c0_124 = arith.constant 0 : index
    %c0_125 = arith.constant 0 : index
    %289 = vector.load %arg10[%c1_123, %c0_124, %c0_125] : memref<2x1x32xf32, #tpu.memory_space<vmem>>, vector<1x1x32xf32>
    %290 = vector.shape_cast %289 : vector<1x1x32xf32> to vector<1x32xf32>
    %cst_126 = arith.constant dense<0.000000e+00> : vector<16xf32>
    %291 = vector.multi_reduction <add>, %286, %cst_126 [1] : vector<16x32xf32> to vector<16xf32>
    %292 = vector.shape_cast %291 : vector<16xf32> to vector<16x1xf32>
    %cst_127 = arith.constant 3.200000e+01 : f32
    %293 = vector.broadcast %cst_127 : f32 to vector<16x1xf32>
    %294 = arith.divf %292, %293 : vector<16x1xf32>
    %295 = vector.broadcast %294 : vector<16x1xf32> to vector<16x32xf32>
    %296 = arith.subf %286, %295 : vector<16x32xf32>
    %297 = arith.mulf %296, %296 : vector<16x32xf32>
    %cst_128 = arith.constant dense<0.000000e+00> : vector<16xf32>
    %298 = vector.multi_reduction <add>, %297, %cst_128 [1] : vector<16x32xf32> to vector<16xf32>
    %299 = vector.shape_cast %298 : vector<16xf32> to vector<16x1xf32>
    %cst_129 = arith.constant 3.200000e+01 : f32
    %300 = vector.broadcast %cst_129 : f32 to vector<16x1xf32>
    %301 = arith.divf %299, %300 : vector<16x1xf32>
    %302 = vector.broadcast %294 : vector<16x1xf32> to vector<16x32xf32>
    %303 = arith.subf %286, %302 : vector<16x32xf32>
    %cst_130 = arith.constant 9.99999997E-7 : f32
    %304 = vector.broadcast %cst_130 : f32 to vector<16x1xf32>
    %305 = arith.addf %301, %304 : vector<16x1xf32>
    %306 = math.rsqrt %305 : vector<16x1xf32>
    %307 = vector.broadcast %306 : vector<16x1xf32> to vector<16x32xf32>
    %308 = arith.mulf %303, %307 : vector<16x32xf32>
    %309 = vector.broadcast %288 : vector<1x32xf32> to vector<16x32xf32>
    %310 = arith.mulf %308, %309 : vector<16x32xf32>
    %311 = vector.broadcast %290 : vector<1x32xf32> to vector<16x32xf32>
    %312 = arith.addf %310, %311 : vector<16x32xf32>
    %c1_131 = arith.constant 1 : index
    %c0_132 = arith.constant 0 : index
    %c0_133 = arith.constant 0 : index
    %313 = vector.load %arg11[%c1_131, %c0_132, %c0_133] : memref<2x32x64xf32, #tpu.memory_space<vmem>>, vector<1x32x64xf32>
    %314 = vector.shape_cast %313 : vector<1x32x64xf32> to vector<32x64xf32>
    %cst_134 = arith.constant dense<0.000000e+00> : vector<16x64xf32>
    %315 = tpu.matmul %312, %314, %cst_134 {dimension_numbers = #tpu.dot_dimension_numbers<[1], [0], [0], [1], [0, 0, 1, 1], [], []>} : vector<16x32xf32>, vector<32x64xf32>, vector<16x64xf32> -> vector<16x64xf32>
    %c1_135 = arith.constant 1 : index
    %c0_136 = arith.constant 0 : index
    %c0_137 = arith.constant 0 : index
    %316 = vector.load %arg12[%c1_135, %c0_136, %c0_137] : memref<2x1x64xf32, #tpu.memory_space<vmem>>, vector<1x1x64xf32>
    %317 = vector.shape_cast %316 : vector<1x1x64xf32> to vector<1x64xf32>
    %318 = vector.broadcast %317 : vector<1x64xf32> to vector<16x64xf32>
    %319 = arith.addf %315, %318 : vector<16x64xf32>
    %cst_138 = arith.constant 0.000000e+00 : f32
    %320 = vector.broadcast %cst_138 : f32 to vector<16x64xf32>
    %321 = arith.maximumf %319, %320 : vector<16x64xf32>
    %c1_139 = arith.constant 1 : index
    %c0_140 = arith.constant 0 : index
    %c0_141 = arith.constant 0 : index
    %322 = vector.load %arg13[%c1_139, %c0_140, %c0_141] : memref<2x64x32xf32, #tpu.memory_space<vmem>>, vector<1x64x32xf32>
    %323 = vector.shape_cast %322 : vector<1x64x32xf32> to vector<64x32xf32>
    %cst_142 = arith.constant dense<0.000000e+00> : vector<16x32xf32>
    %324 = tpu.matmul %321, %323, %cst_142 {dimension_numbers = #tpu.dot_dimension_numbers<[1], [0], [0], [1], [0, 0, 1, 1], [], []>} : vector<16x64xf32>, vector<64x32xf32>, vector<16x32xf32> -> vector<16x32xf32>
    %325 = arith.addf %286, %324 : vector<16x32xf32>
    %c1_143 = arith.constant 1 : index
    %c0_144 = arith.constant 0 : index
    %c0_145 = arith.constant 0 : index
    %326 = vector.load %arg14[%c1_143, %c0_144, %c0_145] : memref<2x1x32xf32, #tpu.memory_space<vmem>>, vector<1x1x32xf32>
    %327 = vector.shape_cast %326 : vector<1x1x32xf32> to vector<1x32xf32>
    %328 = vector.broadcast %327 : vector<1x32xf32> to vector<16x32xf32>
    %329 = arith.addf %325, %328 : vector<16x32xf32>
    %c0_146 = arith.constant 0 : index
    %c0_147 = arith.constant 0 : index
    %330 = vector.load %arg15[%c0_146, %c0_147] : memref<1x32xf32, #tpu.memory_space<vmem>>, vector<1x32xf32>
    %c0_148 = arith.constant 0 : index
    %c0_149 = arith.constant 0 : index
    %331 = vector.load %arg16[%c0_148, %c0_149] : memref<1x32xf32, #tpu.memory_space<vmem>>, vector<1x32xf32>
    %cst_150 = arith.constant dense<0.000000e+00> : vector<16xf32>
    %332 = vector.multi_reduction <add>, %329, %cst_150 [1] : vector<16x32xf32> to vector<16xf32>
    %333 = vector.shape_cast %332 : vector<16xf32> to vector<16x1xf32>
    %cst_151 = arith.constant 3.200000e+01 : f32
    %334 = vector.broadcast %cst_151 : f32 to vector<16x1xf32>
    %335 = arith.divf %333, %334 : vector<16x1xf32>
    %336 = vector.broadcast %335 : vector<16x1xf32> to vector<16x32xf32>
    %337 = arith.subf %329, %336 : vector<16x32xf32>
    %338 = arith.mulf %337, %337 : vector<16x32xf32>
    %cst_152 = arith.constant dense<0.000000e+00> : vector<16xf32>
    %339 = vector.multi_reduction <add>, %338, %cst_152 [1] : vector<16x32xf32> to vector<16xf32>
    %340 = vector.shape_cast %339 : vector<16xf32> to vector<16x1xf32>
    %cst_153 = arith.constant 3.200000e+01 : f32
    %341 = vector.broadcast %cst_153 : f32 to vector<16x1xf32>
    %342 = arith.divf %340, %341 : vector<16x1xf32>
    %343 = vector.broadcast %335 : vector<16x1xf32> to vector<16x32xf32>
    %344 = arith.subf %329, %343 : vector<16x32xf32>
    %cst_154 = arith.constant 9.99999997E-7 : f32
    %345 = vector.broadcast %cst_154 : f32 to vector<16x1xf32>
    %346 = arith.addf %342, %345 : vector<16x1xf32>
    %347 = math.rsqrt %346 : vector<16x1xf32>
    %348 = vector.broadcast %347 : vector<16x1xf32> to vector<16x32xf32>
    %349 = arith.mulf %344, %348 : vector<16x32xf32>
    %350 = vector.broadcast %330 : vector<1x32xf32> to vector<16x32xf32>
    %351 = arith.mulf %349, %350 : vector<16x32xf32>
    %352 = vector.broadcast %331 : vector<1x32xf32> to vector<16x32xf32>
    %353 = arith.addf %351, %352 : vector<16x32xf32>
    %c0_155 = arith.constant 0 : index
    %c0_156 = arith.constant 0 : index
    %354 = vector.load %arg1[%c0_155, %c0_156] : memref<16x32xf32, #tpu.memory_space<vmem>>, vector<16x32xf32>
    %c0_157 = arith.constant 0 : index
    %c0_158 = arith.constant 0 : index
    %c0_159 = arith.constant 0 : index
    %355 = vector.load %arg17[%c0_157, %c0_158, %c0_159] : memref<2x1x32xf32, #tpu.memory_space<vmem>>, vector<1x1x32xf32>
    %356 = vector.shape_cast %355 : vector<1x1x32xf32> to vector<1x32xf32>
    %c0_160 = arith.constant 0 : index
    %c0_161 = arith.constant 0 : index
    %c0_162 = arith.constant 0 : index
    %357 = vector.load %arg18[%c0_160, %c0_161, %c0_162] : memref<2x1x32xf32, #tpu.memory_space<vmem>>, vector<1x1x32xf32>
    %358 = vector.shape_cast %357 : vector<1x1x32xf32> to vector<1x32xf32>
    %cst_163 = arith.constant dense<0.000000e+00> : vector<16xf32>
    %359 = vector.multi_reduction <add>, %354, %cst_163 [1] : vector<16x32xf32> to vector<16xf32>
    %360 = vector.shape_cast %359 : vector<16xf32> to vector<16x1xf32>
    %cst_164 = arith.constant 3.200000e+01 : f32
    %361 = vector.broadcast %cst_164 : f32 to vector<16x1xf32>
    %362 = arith.divf %360, %361 : vector<16x1xf32>
    %363 = vector.broadcast %362 : vector<16x1xf32> to vector<16x32xf32>
    %364 = arith.subf %354, %363 : vector<16x32xf32>
    %365 = arith.mulf %364, %364 : vector<16x32xf32>
    %cst_165 = arith.constant dense<0.000000e+00> : vector<16xf32>
    %366 = vector.multi_reduction <add>, %365, %cst_165 [1] : vector<16x32xf32> to vector<16xf32>
    %367 = vector.shape_cast %366 : vector<16xf32> to vector<16x1xf32>
    %cst_166 = arith.constant 3.200000e+01 : f32
    %368 = vector.broadcast %cst_166 : f32 to vector<16x1xf32>
    %369 = arith.divf %367, %368 : vector<16x1xf32>
    %370 = vector.broadcast %362 : vector<16x1xf32> to vector<16x32xf32>
    %371 = arith.subf %354, %370 : vector<16x32xf32>
    %cst_167 = arith.constant 9.99999997E-7 : f32
    %372 = vector.broadcast %cst_167 : f32 to vector<16x1xf32>
    %373 = arith.addf %369, %372 : vector<16x1xf32>
    %374 = math.rsqrt %373 : vector<16x1xf32>
    %375 = vector.broadcast %374 : vector<16x1xf32> to vector<16x32xf32>
    %376 = arith.mulf %371, %375 : vector<16x32xf32>
    %377 = vector.broadcast %356 : vector<1x32xf32> to vector<16x32xf32>
    %378 = arith.mulf %376, %377 : vector<16x32xf32>
    %379 = vector.broadcast %358 : vector<1x32xf32> to vector<16x32xf32>
    %380 = arith.addf %378, %379 : vector<16x32xf32>
    %c0_168 = arith.constant 0 : index
    %c0_169 = arith.constant 0 : index
    %c0_170 = arith.constant 0 : index
    %381 = vector.load %arg19[%c0_168, %c0_169, %c0_170] : memref<2x32x96xf32, #tpu.memory_space<vmem>>, vector<1x32x96xf32>
    %382 = vector.shape_cast %381 : vector<1x32x96xf32> to vector<32x96xf32>
    %cst_171 = arith.constant dense<0.000000e+00> : vector<16x96xf32>
    %383 = tpu.matmul %380, %382, %cst_171 {dimension_numbers = #tpu.dot_dimension_numbers<[1], [0], [0], [1], [0, 0, 1, 1], [], []>} : vector<16x32xf32>, vector<32x96xf32>, vector<16x96xf32> -> vector<16x96xf32>
    %384 = vector.extract_strided_slice %383 {offsets = [0, 0], sizes = [16, 32], strides = [1, 1]} : vector<16x96xf32> to vector<16x32xf32>
    %385 = vector.extract_strided_slice %383 {offsets = [0, 32], sizes = [16, 32], strides = [1, 1]} : vector<16x96xf32> to vector<16x32xf32>
    %386 = vector.extract_strided_slice %383 {offsets = [0, 64], sizes = [16, 32], strides = [1, 1]} : vector<16x96xf32> to vector<16x32xf32>
    %387 = vector.extract_strided_slice %384 {offsets = [0, 0], sizes = [16, 8], strides = [1, 1]} : vector<16x32xf32> to vector<16x8xf32>
    %cst_172 = arith.constant 0.353553385 : f32
    %388 = vector.broadcast %cst_172 : f32 to vector<16x8xf32>
    %389 = arith.mulf %387, %388 : vector<16x8xf32>
    %390 = vector.extract_strided_slice %385 {offsets = [0, 0], sizes = [16, 8], strides = [1, 1]} : vector<16x32xf32> to vector<16x8xf32>
    %391 = vector.extract_strided_slice %386 {offsets = [0, 0], sizes = [16, 8], strides = [1, 1]} : vector<16x32xf32> to vector<16x8xf32>
    %392 = tpu.transpose %390, [1, 0] : vector<16x8xf32> -> vector<8x16xf32>
    %cst_173 = arith.constant dense<0.000000e+00> : vector<16x16xf32>
    %393 = tpu.matmul %389, %392, %cst_173 {dimension_numbers = #tpu.dot_dimension_numbers<[1], [0], [0], [1], [0, 0, 1, 1], [], []>} : vector<16x8xf32>, vector<8x16xf32>, vector<16x16xf32> -> vector<16x16xf32>
    %cst_174 = arith.constant -9.99999984E+17 : f32
    %394 = vector.broadcast %cst_174 : f32 to vector<16x16xf32>
    %395 = arith.select %5, %394, %393 : vector<16x16xi1>, vector<16x16xf32>
    %cst_175 = arith.constant dense<0xFF800000> : vector<16xf32>
    %396 = vector.multi_reduction <maximumf>, %395, %cst_175 [1] : vector<16x16xf32> to vector<16xf32>
    %397 = vector.shape_cast %396 : vector<16xf32> to vector<16x1xf32>
    %398 = vector.broadcast %397 : vector<16x1xf32> to vector<16x16xf32>
    %399 = arith.subf %395, %398 : vector<16x16xf32>
    %400 = math.exp %399 : vector<16x16xf32>
    %cst_176 = arith.constant dense<0.000000e+00> : vector<16xf32>
    %401 = vector.multi_reduction <add>, %400, %cst_176 [1] : vector<16x16xf32> to vector<16xf32>
    %402 = vector.shape_cast %401 : vector<16xf32> to vector<16x1xf32>
    %403 = tpu.reciprocal %402 {approx = true} : vector<16x1xf32> -> vector<16x1xf32>
    %404 = vector.broadcast %403 : vector<16x1xf32> to vector<16x16xf32>
    %405 = arith.mulf %400, %404 : vector<16x16xf32>
    %cst_177 = arith.constant dense<0.000000e+00> : vector<16x8xf32>
    %406 = tpu.matmul %405, %391, %cst_177 {dimension_numbers = #tpu.dot_dimension_numbers<[1], [0], [0], [1], [0, 0, 1, 1], [], []>} : vector<16x16xf32>, vector<16x8xf32>, vector<16x8xf32> -> vector<16x8xf32>
    %407 = vector.extract_strided_slice %384 {offsets = [0, 8], sizes = [16, 8], strides = [1, 1]} : vector<16x32xf32> to vector<16x8xf32>
    %cst_178 = arith.constant 0.353553385 : f32
    %408 = vector.broadcast %cst_178 : f32 to vector<16x8xf32>
    %409 = arith.mulf %407, %408 : vector<16x8xf32>
    %410 = vector.extract_strided_slice %385 {offsets = [0, 8], sizes = [16, 8], strides = [1, 1]} : vector<16x32xf32> to vector<16x8xf32>
    %411 = vector.extract_strided_slice %386 {offsets = [0, 8], sizes = [16, 8], strides = [1, 1]} : vector<16x32xf32> to vector<16x8xf32>
    %412 = tpu.transpose %410, [1, 0] : vector<16x8xf32> -> vector<8x16xf32>
    %cst_179 = arith.constant dense<0.000000e+00> : vector<16x16xf32>
    %413 = tpu.matmul %409, %412, %cst_179 {dimension_numbers = #tpu.dot_dimension_numbers<[1], [0], [0], [1], [0, 0, 1, 1], [], []>} : vector<16x8xf32>, vector<8x16xf32>, vector<16x16xf32> -> vector<16x16xf32>
    %cst_180 = arith.constant -9.99999984E+17 : f32
    %414 = vector.broadcast %cst_180 : f32 to vector<16x16xf32>
    %415 = arith.select %5, %414, %413 : vector<16x16xi1>, vector<16x16xf32>
    %cst_181 = arith.constant dense<0xFF800000> : vector<16xf32>
    %416 = vector.multi_reduction <maximumf>, %415, %cst_181 [1] : vector<16x16xf32> to vector<16xf32>
    %417 = vector.shape_cast %416 : vector<16xf32> to vector<16x1xf32>
    %418 = vector.broadcast %417 : vector<16x1xf32> to vector<16x16xf32>
    %419 = arith.subf %415, %418 : vector<16x16xf32>
    %420 = math.exp %419 : vector<16x16xf32>
    %cst_182 = arith.constant dense<0.000000e+00> : vector<16xf32>
    %421 = vector.multi_reduction <add>, %420, %cst_182 [1] : vector<16x16xf32> to vector<16xf32>
    %422 = vector.shape_cast %421 : vector<16xf32> to vector<16x1xf32>
    %423 = tpu.reciprocal %422 {approx = true} : vector<16x1xf32> -> vector<16x1xf32>
    %424 = vector.broadcast %423 : vector<16x1xf32> to vector<16x16xf32>
    %425 = arith.mulf %420, %424 : vector<16x16xf32>
    %cst_183 = arith.constant dense<0.000000e+00> : vector<16x8xf32>
    %426 = tpu.matmul %425, %411, %cst_183 {dimension_numbers = #tpu.dot_dimension_numbers<[1], [0], [0], [1], [0, 0, 1, 1], [], []>} : vector<16x16xf32>, vector<16x8xf32>, vector<16x8xf32> -> vector<16x8xf32>
    %427 = vector.extract_strided_slice %384 {offsets = [0, 16], sizes = [16, 8], strides = [1, 1]} : vector<16x32xf32> to vector<16x8xf32>
    %cst_184 = arith.constant 0.353553385 : f32
    %428 = vector.broadcast %cst_184 : f32 to vector<16x8xf32>
    %429 = arith.mulf %427, %428 : vector<16x8xf32>
    %430 = vector.extract_strided_slice %385 {offsets = [0, 16], sizes = [16, 8], strides = [1, 1]} : vector<16x32xf32> to vector<16x8xf32>
    %431 = vector.extract_strided_slice %386 {offsets = [0, 16], sizes = [16, 8], strides = [1, 1]} : vector<16x32xf32> to vector<16x8xf32>
    %432 = tpu.transpose %430, [1, 0] : vector<16x8xf32> -> vector<8x16xf32>
    %cst_185 = arith.constant dense<0.000000e+00> : vector<16x16xf32>
    %433 = tpu.matmul %429, %432, %cst_185 {dimension_numbers = #tpu.dot_dimension_numbers<[1], [0], [0], [1], [0, 0, 1, 1], [], []>} : vector<16x8xf32>, vector<8x16xf32>, vector<16x16xf32> -> vector<16x16xf32>
    %cst_186 = arith.constant -9.99999984E+17 : f32
    %434 = vector.broadcast %cst_186 : f32 to vector<16x16xf32>
    %435 = arith.select %5, %434, %433 : vector<16x16xi1>, vector<16x16xf32>
    %cst_187 = arith.constant dense<0xFF800000> : vector<16xf32>
    %436 = vector.multi_reduction <maximumf>, %435, %cst_187 [1] : vector<16x16xf32> to vector<16xf32>
    %437 = vector.shape_cast %436 : vector<16xf32> to vector<16x1xf32>
    %438 = vector.broadcast %437 : vector<16x1xf32> to vector<16x16xf32>
    %439 = arith.subf %435, %438 : vector<16x16xf32>
    %440 = math.exp %439 : vector<16x16xf32>
    %cst_188 = arith.constant dense<0.000000e+00> : vector<16xf32>
    %441 = vector.multi_reduction <add>, %440, %cst_188 [1] : vector<16x16xf32> to vector<16xf32>
    %442 = vector.shape_cast %441 : vector<16xf32> to vector<16x1xf32>
    %443 = tpu.reciprocal %442 {approx = true} : vector<16x1xf32> -> vector<16x1xf32>
    %444 = vector.broadcast %443 : vector<16x1xf32> to vector<16x16xf32>
    %445 = arith.mulf %440, %444 : vector<16x16xf32>
    %cst_189 = arith.constant dense<0.000000e+00> : vector<16x8xf32>
    %446 = tpu.matmul %445, %431, %cst_189 {dimension_numbers = #tpu.dot_dimension_numbers<[1], [0], [0], [1], [0, 0, 1, 1], [], []>} : vector<16x16xf32>, vector<16x8xf32>, vector<16x8xf32> -> vector<16x8xf32>
    %447 = vector.extract_strided_slice %384 {offsets = [0, 24], sizes = [16, 8], strides = [1, 1]} : vector<16x32xf32> to vector<16x8xf32>
    %cst_190 = arith.constant 0.353553385 : f32
    %448 = vector.broadcast %cst_190 : f32 to vector<16x8xf32>
    %449 = arith.mulf %447, %448 : vector<16x8xf32>
    %450 = vector.extract_strided_slice %385 {offsets = [0, 24], sizes = [16, 8], strides = [1, 1]} : vector<16x32xf32> to vector<16x8xf32>
    %451 = vector.extract_strided_slice %386 {offsets = [0, 24], sizes = [16, 8], strides = [1, 1]} : vector<16x32xf32> to vector<16x8xf32>
    %452 = tpu.transpose %450, [1, 0] : vector<16x8xf32> -> vector<8x16xf32>
    %cst_191 = arith.constant dense<0.000000e+00> : vector<16x16xf32>
    %453 = tpu.matmul %449, %452, %cst_191 {dimension_numbers = #tpu.dot_dimension_numbers<[1], [0], [0], [1], [0, 0, 1, 1], [], []>} : vector<16x8xf32>, vector<8x16xf32>, vector<16x16xf32> -> vector<16x16xf32>
    %cst_192 = arith.constant -9.99999984E+17 : f32
    %454 = vector.broadcast %cst_192 : f32 to vector<16x16xf32>
    %455 = arith.select %5, %454, %453 : vector<16x16xi1>, vector<16x16xf32>
    %cst_193 = arith.constant dense<0xFF800000> : vector<16xf32>
    %456 = vector.multi_reduction <maximumf>, %455, %cst_193 [1] : vector<16x16xf32> to vector<16xf32>
    %457 = vector.shape_cast %456 : vector<16xf32> to vector<16x1xf32>
    %458 = vector.broadcast %457 : vector<16x1xf32> to vector<16x16xf32>
    %459 = arith.subf %455, %458 : vector<16x16xf32>
    %460 = math.exp %459 : vector<16x16xf32>
    %cst_194 = arith.constant dense<0.000000e+00> : vector<16xf32>
    %461 = vector.multi_reduction <add>, %460, %cst_194 [1] : vector<16x16xf32> to vector<16xf32>
    %462 = vector.shape_cast %461 : vector<16xf32> to vector<16x1xf32>
    %463 = tpu.reciprocal %462 {approx = true} : vector<16x1xf32> -> vector<16x1xf32>
    %464 = vector.broadcast %463 : vector<16x1xf32> to vector<16x16xf32>
    %465 = arith.mulf %460, %464 : vector<16x16xf32>
    %cst_195 = arith.constant dense<0.000000e+00> : vector<16x8xf32>
    %466 = tpu.matmul %465, %451, %cst_195 {dimension_numbers = #tpu.dot_dimension_numbers<[1], [0], [0], [1], [0, 0, 1, 1], [], []>} : vector<16x16xf32>, vector<16x8xf32>, vector<16x8xf32> -> vector<16x8xf32>
    %467 = tpu.concatenate %406, %426, %446, %466 in 1 : vector<16x8xf32>, vector<16x8xf32>, vector<16x8xf32>, vector<16x8xf32> -> vector<16x32xf32>
    %c0_196 = arith.constant 0 : index
    %c0_197 = arith.constant 0 : index
    %c0_198 = arith.constant 0 : index
    %468 = vector.load %arg20[%c0_196, %c0_197, %c0_198] : memref<2x32x32xf32, #tpu.memory_space<vmem>>, vector<1x32x32xf32>
    %469 = vector.shape_cast %468 : vector<1x32x32xf32> to vector<32x32xf32>
    %cst_199 = arith.constant dense<0.000000e+00> : vector<16x32xf32>
    %470 = tpu.matmul %467, %469, %cst_199 {dimension_numbers = #tpu.dot_dimension_numbers<[1], [0], [0], [1], [0, 0, 1, 1], [], []>} : vector<16x32xf32>, vector<32x32xf32>, vector<16x32xf32> -> vector<16x32xf32>
    %471 = arith.addf %354, %470 : vector<16x32xf32>
    %c0_200 = arith.constant 0 : index
    %c0_201 = arith.constant 0 : index
    %c0_202 = arith.constant 0 : index
    %472 = vector.load %arg21[%c0_200, %c0_201, %c0_202] : memref<2x1x32xf32, #tpu.memory_space<vmem>>, vector<1x1x32xf32>
    %473 = vector.shape_cast %472 : vector<1x1x32xf32> to vector<1x32xf32>
    %c0_203 = arith.constant 0 : index
    %c0_204 = arith.constant 0 : index
    %c0_205 = arith.constant 0 : index
    %474 = vector.load %arg22[%c0_203, %c0_204, %c0_205] : memref<2x1x32xf32, #tpu.memory_space<vmem>>, vector<1x1x32xf32>
    %475 = vector.shape_cast %474 : vector<1x1x32xf32> to vector<1x32xf32>
    %cst_206 = arith.constant dense<0.000000e+00> : vector<16xf32>
    %476 = vector.multi_reduction <add>, %471, %cst_206 [1] : vector<16x32xf32> to vector<16xf32>
    %477 = vector.shape_cast %476 : vector<16xf32> to vector<16x1xf32>
    %cst_207 = arith.constant 3.200000e+01 : f32
    %478 = vector.broadcast %cst_207 : f32 to vector<16x1xf32>
    %479 = arith.divf %477, %478 : vector<16x1xf32>
    %480 = vector.broadcast %479 : vector<16x1xf32> to vector<16x32xf32>
    %481 = arith.subf %471, %480 : vector<16x32xf32>
    %482 = arith.mulf %481, %481 : vector<16x32xf32>
    %cst_208 = arith.constant dense<0.000000e+00> : vector<16xf32>
    %483 = vector.multi_reduction <add>, %482, %cst_208 [1] : vector<16x32xf32> to vector<16xf32>
    %484 = vector.shape_cast %483 : vector<16xf32> to vector<16x1xf32>
    %cst_209 = arith.constant 3.200000e+01 : f32
    %485 = vector.broadcast %cst_209 : f32 to vector<16x1xf32>
    %486 = arith.divf %484, %485 : vector<16x1xf32>
    %487 = vector.broadcast %479 : vector<16x1xf32> to vector<16x32xf32>
    %488 = arith.subf %471, %487 : vector<16x32xf32>
    %cst_210 = arith.constant 9.99999997E-7 : f32
    %489 = vector.broadcast %cst_210 : f32 to vector<16x1xf32>
    %490 = arith.addf %486, %489 : vector<16x1xf32>
    %491 = math.rsqrt %490 : vector<16x1xf32>
    %492 = vector.broadcast %491 : vector<16x1xf32> to vector<16x32xf32>
    %493 = arith.mulf %488, %492 : vector<16x32xf32>
    %494 = vector.broadcast %473 : vector<1x32xf32> to vector<16x32xf32>
    %495 = arith.mulf %493, %494 : vector<16x32xf32>
    %496 = vector.broadcast %475 : vector<1x32xf32> to vector<16x32xf32>
    %497 = arith.addf %495, %496 : vector<16x32xf32>
    %c0_211 = arith.constant 0 : index
    %c0_212 = arith.constant 0 : index
    %c0_213 = arith.constant 0 : index
    %498 = vector.load %arg23[%c0_211, %c0_212, %c0_213] : memref<2x32x32xf32, #tpu.memory_space<vmem>>, vector<1x32x32xf32>
    %499 = vector.shape_cast %498 : vector<1x32x32xf32> to vector<32x32xf32>
    %c0_214 = arith.constant 0 : index
    %c0_215 = arith.constant 0 : index
    %c0_216 = arith.constant 0 : index
    %500 = vector.load %arg24[%c0_214, %c0_215, %c0_216] : memref<2x32x64xf32, #tpu.memory_space<vmem>>, vector<1x32x64xf32>
    %501 = vector.shape_cast %500 : vector<1x32x64xf32> to vector<32x64xf32>
    %cst_217 = arith.constant dense<0.000000e+00> : vector<16x32xf32>
    %502 = tpu.matmul %497, %499, %cst_217 {dimension_numbers = #tpu.dot_dimension_numbers<[1], [0], [0], [1], [0, 0, 1, 1], [], []>} : vector<16x32xf32>, vector<32x32xf32>, vector<16x32xf32> -> vector<16x32xf32>
    %cst_218 = arith.constant dense<0.000000e+00> : vector<16x64xf32>
    %503 = tpu.matmul %353, %501, %cst_218 {dimension_numbers = #tpu.dot_dimension_numbers<[1], [0], [0], [1], [0, 0, 1, 1], [], []>} : vector<16x32xf32>, vector<32x64xf32>, vector<16x64xf32> -> vector<16x64xf32>
    %504 = vector.extract_strided_slice %503 {offsets = [0, 0], sizes = [16, 32], strides = [1, 1]} : vector<16x64xf32> to vector<16x32xf32>
    %505 = vector.extract_strided_slice %503 {offsets = [0, 32], sizes = [16, 32], strides = [1, 1]} : vector<16x64xf32> to vector<16x32xf32>
    %506 = vector.extract_strided_slice %502 {offsets = [0, 0], sizes = [16, 8], strides = [1, 1]} : vector<16x32xf32> to vector<16x8xf32>
    %cst_219 = arith.constant 0.353553385 : f32
    %507 = vector.broadcast %cst_219 : f32 to vector<16x8xf32>
    %508 = arith.mulf %506, %507 : vector<16x8xf32>
    %509 = vector.extract_strided_slice %504 {offsets = [0, 0], sizes = [16, 8], strides = [1, 1]} : vector<16x32xf32> to vector<16x8xf32>
    %510 = vector.extract_strided_slice %505 {offsets = [0, 0], sizes = [16, 8], strides = [1, 1]} : vector<16x32xf32> to vector<16x8xf32>
    %511 = tpu.transpose %509, [1, 0] : vector<16x8xf32> -> vector<8x16xf32>
    %cst_220 = arith.constant dense<0.000000e+00> : vector<16x16xf32>
    %512 = tpu.matmul %508, %511, %cst_220 {dimension_numbers = #tpu.dot_dimension_numbers<[1], [0], [0], [1], [0, 0, 1, 1], [], []>} : vector<16x8xf32>, vector<8x16xf32>, vector<16x16xf32> -> vector<16x16xf32>
    %cst_221 = arith.constant -9.99999984E+17 : f32
    %513 = vector.broadcast %cst_221 : f32 to vector<16x16xf32>
    %514 = arith.select %8, %513, %512 : vector<16x16xi1>, vector<16x16xf32>
    %cst_222 = arith.constant dense<0xFF800000> : vector<16xf32>
    %515 = vector.multi_reduction <maximumf>, %514, %cst_222 [1] : vector<16x16xf32> to vector<16xf32>
    %516 = vector.shape_cast %515 : vector<16xf32> to vector<16x1xf32>
    %517 = vector.broadcast %516 : vector<16x1xf32> to vector<16x16xf32>
    %518 = arith.subf %514, %517 : vector<16x16xf32>
    %519 = math.exp %518 : vector<16x16xf32>
    %cst_223 = arith.constant dense<0.000000e+00> : vector<16xf32>
    %520 = vector.multi_reduction <add>, %519, %cst_223 [1] : vector<16x16xf32> to vector<16xf32>
    %521 = vector.shape_cast %520 : vector<16xf32> to vector<16x1xf32>
    %522 = tpu.reciprocal %521 {approx = true} : vector<16x1xf32> -> vector<16x1xf32>
    %523 = vector.broadcast %522 : vector<16x1xf32> to vector<16x16xf32>
    %524 = arith.mulf %519, %523 : vector<16x16xf32>
    %cst_224 = arith.constant dense<0.000000e+00> : vector<16x8xf32>
    %525 = tpu.matmul %524, %510, %cst_224 {dimension_numbers = #tpu.dot_dimension_numbers<[1], [0], [0], [1], [0, 0, 1, 1], [], []>} : vector<16x16xf32>, vector<16x8xf32>, vector<16x8xf32> -> vector<16x8xf32>
    %526 = vector.extract_strided_slice %502 {offsets = [0, 8], sizes = [16, 8], strides = [1, 1]} : vector<16x32xf32> to vector<16x8xf32>
    %cst_225 = arith.constant 0.353553385 : f32
    %527 = vector.broadcast %cst_225 : f32 to vector<16x8xf32>
    %528 = arith.mulf %526, %527 : vector<16x8xf32>
    %529 = vector.extract_strided_slice %504 {offsets = [0, 8], sizes = [16, 8], strides = [1, 1]} : vector<16x32xf32> to vector<16x8xf32>
    %530 = vector.extract_strided_slice %505 {offsets = [0, 8], sizes = [16, 8], strides = [1, 1]} : vector<16x32xf32> to vector<16x8xf32>
    %531 = tpu.transpose %529, [1, 0] : vector<16x8xf32> -> vector<8x16xf32>
    %cst_226 = arith.constant dense<0.000000e+00> : vector<16x16xf32>
    %532 = tpu.matmul %528, %531, %cst_226 {dimension_numbers = #tpu.dot_dimension_numbers<[1], [0], [0], [1], [0, 0, 1, 1], [], []>} : vector<16x8xf32>, vector<8x16xf32>, vector<16x16xf32> -> vector<16x16xf32>
    %cst_227 = arith.constant -9.99999984E+17 : f32
    %533 = vector.broadcast %cst_227 : f32 to vector<16x16xf32>
    %534 = arith.select %8, %533, %532 : vector<16x16xi1>, vector<16x16xf32>
    %cst_228 = arith.constant dense<0xFF800000> : vector<16xf32>
    %535 = vector.multi_reduction <maximumf>, %534, %cst_228 [1] : vector<16x16xf32> to vector<16xf32>
    %536 = vector.shape_cast %535 : vector<16xf32> to vector<16x1xf32>
    %537 = vector.broadcast %536 : vector<16x1xf32> to vector<16x16xf32>
    %538 = arith.subf %534, %537 : vector<16x16xf32>
    %539 = math.exp %538 : vector<16x16xf32>
    %cst_229 = arith.constant dense<0.000000e+00> : vector<16xf32>
    %540 = vector.multi_reduction <add>, %539, %cst_229 [1] : vector<16x16xf32> to vector<16xf32>
    %541 = vector.shape_cast %540 : vector<16xf32> to vector<16x1xf32>
    %542 = tpu.reciprocal %541 {approx = true} : vector<16x1xf32> -> vector<16x1xf32>
    %543 = vector.broadcast %542 : vector<16x1xf32> to vector<16x16xf32>
    %544 = arith.mulf %539, %543 : vector<16x16xf32>
    %cst_230 = arith.constant dense<0.000000e+00> : vector<16x8xf32>
    %545 = tpu.matmul %544, %530, %cst_230 {dimension_numbers = #tpu.dot_dimension_numbers<[1], [0], [0], [1], [0, 0, 1, 1], [], []>} : vector<16x16xf32>, vector<16x8xf32>, vector<16x8xf32> -> vector<16x8xf32>
    %546 = vector.extract_strided_slice %502 {offsets = [0, 16], sizes = [16, 8], strides = [1, 1]} : vector<16x32xf32> to vector<16x8xf32>
    %cst_231 = arith.constant 0.353553385 : f32
    %547 = vector.broadcast %cst_231 : f32 to vector<16x8xf32>
    %548 = arith.mulf %546, %547 : vector<16x8xf32>
    %549 = vector.extract_strided_slice %504 {offsets = [0, 16], sizes = [16, 8], strides = [1, 1]} : vector<16x32xf32> to vector<16x8xf32>
    %550 = vector.extract_strided_slice %505 {offsets = [0, 16], sizes = [16, 8], strides = [1, 1]} : vector<16x32xf32> to vector<16x8xf32>
    %551 = tpu.transpose %549, [1, 0] : vector<16x8xf32> -> vector<8x16xf32>
    %cst_232 = arith.constant dense<0.000000e+00> : vector<16x16xf32>
    %552 = tpu.matmul %548, %551, %cst_232 {dimension_numbers = #tpu.dot_dimension_numbers<[1], [0], [0], [1], [0, 0, 1, 1], [], []>} : vector<16x8xf32>, vector<8x16xf32>, vector<16x16xf32> -> vector<16x16xf32>
    %cst_233 = arith.constant -9.99999984E+17 : f32
    %553 = vector.broadcast %cst_233 : f32 to vector<16x16xf32>
    %554 = arith.select %8, %553, %552 : vector<16x16xi1>, vector<16x16xf32>
    %cst_234 = arith.constant dense<0xFF800000> : vector<16xf32>
    %555 = vector.multi_reduction <maximumf>, %554, %cst_234 [1] : vector<16x16xf32> to vector<16xf32>
    %556 = vector.shape_cast %555 : vector<16xf32> to vector<16x1xf32>
    %557 = vector.broadcast %556 : vector<16x1xf32> to vector<16x16xf32>
    %558 = arith.subf %554, %557 : vector<16x16xf32>
    %559 = math.exp %558 : vector<16x16xf32>
    %cst_235 = arith.constant dense<0.000000e+00> : vector<16xf32>
    %560 = vector.multi_reduction <add>, %559, %cst_235 [1] : vector<16x16xf32> to vector<16xf32>
    %561 = vector.shape_cast %560 : vector<16xf32> to vector<16x1xf32>
    %562 = tpu.reciprocal %561 {approx = true} : vector<16x1xf32> -> vector<16x1xf32>
    %563 = vector.broadcast %562 : vector<16x1xf32> to vector<16x16xf32>
    %564 = arith.mulf %559, %563 : vector<16x16xf32>
    %cst_236 = arith.constant dense<0.000000e+00> : vector<16x8xf32>
    %565 = tpu.matmul %564, %550, %cst_236 {dimension_numbers = #tpu.dot_dimension_numbers<[1], [0], [0], [1], [0, 0, 1, 1], [], []>} : vector<16x16xf32>, vector<16x8xf32>, vector<16x8xf32> -> vector<16x8xf32>
    %566 = vector.extract_strided_slice %502 {offsets = [0, 24], sizes = [16, 8], strides = [1, 1]} : vector<16x32xf32> to vector<16x8xf32>
    %cst_237 = arith.constant 0.353553385 : f32
    %567 = vector.broadcast %cst_237 : f32 to vector<16x8xf32>
    %568 = arith.mulf %566, %567 : vector<16x8xf32>
    %569 = vector.extract_strided_slice %504 {offsets = [0, 24], sizes = [16, 8], strides = [1, 1]} : vector<16x32xf32> to vector<16x8xf32>
    %570 = vector.extract_strided_slice %505 {offsets = [0, 24], sizes = [16, 8], strides = [1, 1]} : vector<16x32xf32> to vector<16x8xf32>
    %571 = tpu.transpose %569, [1, 0] : vector<16x8xf32> -> vector<8x16xf32>
    %cst_238 = arith.constant dense<0.000000e+00> : vector<16x16xf32>
    %572 = tpu.matmul %568, %571, %cst_238 {dimension_numbers = #tpu.dot_dimension_numbers<[1], [0], [0], [1], [0, 0, 1, 1], [], []>} : vector<16x8xf32>, vector<8x16xf32>, vector<16x16xf32> -> vector<16x16xf32>
    %cst_239 = arith.constant -9.99999984E+17 : f32
    %573 = vector.broadcast %cst_239 : f32 to vector<16x16xf32>
    %574 = arith.select %8, %573, %572 : vector<16x16xi1>, vector<16x16xf32>
    %cst_240 = arith.constant dense<0xFF800000> : vector<16xf32>
    %575 = vector.multi_reduction <maximumf>, %574, %cst_240 [1] : vector<16x16xf32> to vector<16xf32>
    %576 = vector.shape_cast %575 : vector<16xf32> to vector<16x1xf32>
    %577 = vector.broadcast %576 : vector<16x1xf32> to vector<16x16xf32>
    %578 = arith.subf %574, %577 : vector<16x16xf32>
    %579 = math.exp %578 : vector<16x16xf32>
    %cst_241 = arith.constant dense<0.000000e+00> : vector<16xf32>
    %580 = vector.multi_reduction <add>, %579, %cst_241 [1] : vector<16x16xf32> to vector<16xf32>
    %581 = vector.shape_cast %580 : vector<16xf32> to vector<16x1xf32>
    %582 = tpu.reciprocal %581 {approx = true} : vector<16x1xf32> -> vector<16x1xf32>
    %583 = vector.broadcast %582 : vector<16x1xf32> to vector<16x16xf32>
    %584 = arith.mulf %579, %583 : vector<16x16xf32>
    %cst_242 = arith.constant dense<0.000000e+00> : vector<16x8xf32>
    %585 = tpu.matmul %584, %570, %cst_242 {dimension_numbers = #tpu.dot_dimension_numbers<[1], [0], [0], [1], [0, 0, 1, 1], [], []>} : vector<16x16xf32>, vector<16x8xf32>, vector<16x8xf32> -> vector<16x8xf32>
    %586 = tpu.concatenate %525, %545, %565, %585 in 1 : vector<16x8xf32>, vector<16x8xf32>, vector<16x8xf32>, vector<16x8xf32> -> vector<16x32xf32>
    %c0_243 = arith.constant 0 : index
    %c0_244 = arith.constant 0 : index
    %c0_245 = arith.constant 0 : index
    %587 = vector.load %arg25[%c0_243, %c0_244, %c0_245] : memref<2x32x32xf32, #tpu.memory_space<vmem>>, vector<1x32x32xf32>
    %588 = vector.shape_cast %587 : vector<1x32x32xf32> to vector<32x32xf32>
    %cst_246 = arith.constant dense<0.000000e+00> : vector<16x32xf32>
    %589 = tpu.matmul %586, %588, %cst_246 {dimension_numbers = #tpu.dot_dimension_numbers<[1], [0], [0], [1], [0, 0, 1, 1], [], []>} : vector<16x32xf32>, vector<32x32xf32>, vector<16x32xf32> -> vector<16x32xf32>
    %590 = arith.addf %471, %589 : vector<16x32xf32>
    %c0_247 = arith.constant 0 : index
    %c0_248 = arith.constant 0 : index
    %c0_249 = arith.constant 0 : index
    %591 = vector.load %arg26[%c0_247, %c0_248, %c0_249] : memref<2x1x32xf32, #tpu.memory_space<vmem>>, vector<1x1x32xf32>
    %592 = vector.shape_cast %591 : vector<1x1x32xf32> to vector<1x32xf32>
    %c0_250 = arith.constant 0 : index
    %c0_251 = arith.constant 0 : index
    %c0_252 = arith.constant 0 : index
    %593 = vector.load %arg27[%c0_250, %c0_251, %c0_252] : memref<2x1x32xf32, #tpu.memory_space<vmem>>, vector<1x1x32xf32>
    %594 = vector.shape_cast %593 : vector<1x1x32xf32> to vector<1x32xf32>
    %cst_253 = arith.constant dense<0.000000e+00> : vector<16xf32>
    %595 = vector.multi_reduction <add>, %590, %cst_253 [1] : vector<16x32xf32> to vector<16xf32>
    %596 = vector.shape_cast %595 : vector<16xf32> to vector<16x1xf32>
    %cst_254 = arith.constant 3.200000e+01 : f32
    %597 = vector.broadcast %cst_254 : f32 to vector<16x1xf32>
    %598 = arith.divf %596, %597 : vector<16x1xf32>
    %599 = vector.broadcast %598 : vector<16x1xf32> to vector<16x32xf32>
    %600 = arith.subf %590, %599 : vector<16x32xf32>
    %601 = arith.mulf %600, %600 : vector<16x32xf32>
    %cst_255 = arith.constant dense<0.000000e+00> : vector<16xf32>
    %602 = vector.multi_reduction <add>, %601, %cst_255 [1] : vector<16x32xf32> to vector<16xf32>
    %603 = vector.shape_cast %602 : vector<16xf32> to vector<16x1xf32>
    %cst_256 = arith.constant 3.200000e+01 : f32
    %604 = vector.broadcast %cst_256 : f32 to vector<16x1xf32>
    %605 = arith.divf %603, %604 : vector<16x1xf32>
    %606 = vector.broadcast %598 : vector<16x1xf32> to vector<16x32xf32>
    %607 = arith.subf %590, %606 : vector<16x32xf32>
    %cst_257 = arith.constant 9.99999997E-7 : f32
    %608 = vector.broadcast %cst_257 : f32 to vector<16x1xf32>
    %609 = arith.addf %605, %608 : vector<16x1xf32>
    %610 = math.rsqrt %609 : vector<16x1xf32>
    %611 = vector.broadcast %610 : vector<16x1xf32> to vector<16x32xf32>
    %612 = arith.mulf %607, %611 : vector<16x32xf32>
    %613 = vector.broadcast %592 : vector<1x32xf32> to vector<16x32xf32>
    %614 = arith.mulf %612, %613 : vector<16x32xf32>
    %615 = vector.broadcast %594 : vector<1x32xf32> to vector<16x32xf32>
    %616 = arith.addf %614, %615 : vector<16x32xf32>
    %c0_258 = arith.constant 0 : index
    %c0_259 = arith.constant 0 : index
    %c0_260 = arith.constant 0 : index
    %617 = vector.load %arg28[%c0_258, %c0_259, %c0_260] : memref<2x32x64xf32, #tpu.memory_space<vmem>>, vector<1x32x64xf32>
    %618 = vector.shape_cast %617 : vector<1x32x64xf32> to vector<32x64xf32>
    %cst_261 = arith.constant dense<0.000000e+00> : vector<16x64xf32>
    %619 = tpu.matmul %616, %618, %cst_261 {dimension_numbers = #tpu.dot_dimension_numbers<[1], [0], [0], [1], [0, 0, 1, 1], [], []>} : vector<16x32xf32>, vector<32x64xf32>, vector<16x64xf32> -> vector<16x64xf32>
    %c0_262 = arith.constant 0 : index
    %c0_263 = arith.constant 0 : index
    %c0_264 = arith.constant 0 : index
    %620 = vector.load %arg29[%c0_262, %c0_263, %c0_264] : memref<2x1x64xf32, #tpu.memory_space<vmem>>, vector<1x1x64xf32>
    %621 = vector.shape_cast %620 : vector<1x1x64xf32> to vector<1x64xf32>
    %622 = vector.broadcast %621 : vector<1x64xf32> to vector<16x64xf32>
    %623 = arith.addf %619, %622 : vector<16x64xf32>
    %cst_265 = arith.constant 0.000000e+00 : f32
    %624 = vector.broadcast %cst_265 : f32 to vector<16x64xf32>
    %625 = arith.maximumf %623, %624 : vector<16x64xf32>
    %c0_266 = arith.constant 0 : index
    %c0_267 = arith.constant 0 : index
    %c0_268 = arith.constant 0 : index
    %626 = vector.load %arg30[%c0_266, %c0_267, %c0_268] : memref<2x64x32xf32, #tpu.memory_space<vmem>>, vector<1x64x32xf32>
    %627 = vector.shape_cast %626 : vector<1x64x32xf32> to vector<64x32xf32>
    %cst_269 = arith.constant dense<0.000000e+00> : vector<16x32xf32>
    %628 = tpu.matmul %625, %627, %cst_269 {dimension_numbers = #tpu.dot_dimension_numbers<[1], [0], [0], [1], [0, 0, 1, 1], [], []>} : vector<16x64xf32>, vector<64x32xf32>, vector<16x32xf32> -> vector<16x32xf32>
    %629 = arith.addf %590, %628 : vector<16x32xf32>
    %c0_270 = arith.constant 0 : index
    %c0_271 = arith.constant 0 : index
    %c0_272 = arith.constant 0 : index
    %630 = vector.load %arg31[%c0_270, %c0_271, %c0_272] : memref<2x1x32xf32, #tpu.memory_space<vmem>>, vector<1x1x32xf32>
    %631 = vector.shape_cast %630 : vector<1x1x32xf32> to vector<1x32xf32>
    %632 = vector.broadcast %631 : vector<1x32xf32> to vector<16x32xf32>
    %633 = arith.addf %629, %632 : vector<16x32xf32>
    %c1_273 = arith.constant 1 : index
    %c0_274 = arith.constant 0 : index
    %c0_275 = arith.constant 0 : index
    %634 = vector.load %arg17[%c1_273, %c0_274, %c0_275] : memref<2x1x32xf32, #tpu.memory_space<vmem>>, vector<1x1x32xf32>
    %635 = vector.shape_cast %634 : vector<1x1x32xf32> to vector<1x32xf32>
    %c1_276 = arith.constant 1 : index
    %c0_277 = arith.constant 0 : index
    %c0_278 = arith.constant 0 : index
    %636 = vector.load %arg18[%c1_276, %c0_277, %c0_278] : memref<2x1x32xf32, #tpu.memory_space<vmem>>, vector<1x1x32xf32>
    %637 = vector.shape_cast %636 : vector<1x1x32xf32> to vector<1x32xf32>
    %cst_279 = arith.constant dense<0.000000e+00> : vector<16xf32>
    %638 = vector.multi_reduction <add>, %633, %cst_279 [1] : vector<16x32xf32> to vector<16xf32>
    %639 = vector.shape_cast %638 : vector<16xf32> to vector<16x1xf32>
    %cst_280 = arith.constant 3.200000e+01 : f32
    %640 = vector.broadcast %cst_280 : f32 to vector<16x1xf32>
    %641 = arith.divf %639, %640 : vector<16x1xf32>
    %642 = vector.broadcast %641 : vector<16x1xf32> to vector<16x32xf32>
    %643 = arith.subf %633, %642 : vector<16x32xf32>
    %644 = arith.mulf %643, %643 : vector<16x32xf32>
    %cst_281 = arith.constant dense<0.000000e+00> : vector<16xf32>
    %645 = vector.multi_reduction <add>, %644, %cst_281 [1] : vector<16x32xf32> to vector<16xf32>
    %646 = vector.shape_cast %645 : vector<16xf32> to vector<16x1xf32>
    %cst_282 = arith.constant 3.200000e+01 : f32
    %647 = vector.broadcast %cst_282 : f32 to vector<16x1xf32>
    %648 = arith.divf %646, %647 : vector<16x1xf32>
    %649 = vector.broadcast %641 : vector<16x1xf32> to vector<16x32xf32>
    %650 = arith.subf %633, %649 : vector<16x32xf32>
    %cst_283 = arith.constant 9.99999997E-7 : f32
    %651 = vector.broadcast %cst_283 : f32 to vector<16x1xf32>
    %652 = arith.addf %648, %651 : vector<16x1xf32>
    %653 = math.rsqrt %652 : vector<16x1xf32>
    %654 = vector.broadcast %653 : vector<16x1xf32> to vector<16x32xf32>
    %655 = arith.mulf %650, %654 : vector<16x32xf32>
    %656 = vector.broadcast %635 : vector<1x32xf32> to vector<16x32xf32>
    %657 = arith.mulf %655, %656 : vector<16x32xf32>
    %658 = vector.broadcast %637 : vector<1x32xf32> to vector<16x32xf32>
    %659 = arith.addf %657, %658 : vector<16x32xf32>
    %c1_284 = arith.constant 1 : index
    %c0_285 = arith.constant 0 : index
    %c0_286 = arith.constant 0 : index
    %660 = vector.load %arg19[%c1_284, %c0_285, %c0_286] : memref<2x32x96xf32, #tpu.memory_space<vmem>>, vector<1x32x96xf32>
    %661 = vector.shape_cast %660 : vector<1x32x96xf32> to vector<32x96xf32>
    %cst_287 = arith.constant dense<0.000000e+00> : vector<16x96xf32>
    %662 = tpu.matmul %659, %661, %cst_287 {dimension_numbers = #tpu.dot_dimension_numbers<[1], [0], [0], [1], [0, 0, 1, 1], [], []>} : vector<16x32xf32>, vector<32x96xf32>, vector<16x96xf32> -> vector<16x96xf32>
    %663 = vector.extract_strided_slice %662 {offsets = [0, 0], sizes = [16, 32], strides = [1, 1]} : vector<16x96xf32> to vector<16x32xf32>
    %664 = vector.extract_strided_slice %662 {offsets = [0, 32], sizes = [16, 32], strides = [1, 1]} : vector<16x96xf32> to vector<16x32xf32>
    %665 = vector.extract_strided_slice %662 {offsets = [0, 64], sizes = [16, 32], strides = [1, 1]} : vector<16x96xf32> to vector<16x32xf32>
    %666 = vector.extract_strided_slice %663 {offsets = [0, 0], sizes = [16, 8], strides = [1, 1]} : vector<16x32xf32> to vector<16x8xf32>
    %cst_288 = arith.constant 0.353553385 : f32
    %667 = vector.broadcast %cst_288 : f32 to vector<16x8xf32>
    %668 = arith.mulf %666, %667 : vector<16x8xf32>
    %669 = vector.extract_strided_slice %664 {offsets = [0, 0], sizes = [16, 8], strides = [1, 1]} : vector<16x32xf32> to vector<16x8xf32>
    %670 = vector.extract_strided_slice %665 {offsets = [0, 0], sizes = [16, 8], strides = [1, 1]} : vector<16x32xf32> to vector<16x8xf32>
    %671 = tpu.transpose %669, [1, 0] : vector<16x8xf32> -> vector<8x16xf32>
    %cst_289 = arith.constant dense<0.000000e+00> : vector<16x16xf32>
    %672 = tpu.matmul %668, %671, %cst_289 {dimension_numbers = #tpu.dot_dimension_numbers<[1], [0], [0], [1], [0, 0, 1, 1], [], []>} : vector<16x8xf32>, vector<8x16xf32>, vector<16x16xf32> -> vector<16x16xf32>
    %cst_290 = arith.constant -9.99999984E+17 : f32
    %673 = vector.broadcast %cst_290 : f32 to vector<16x16xf32>
    %674 = arith.select %5, %673, %672 : vector<16x16xi1>, vector<16x16xf32>
    %cst_291 = arith.constant dense<0xFF800000> : vector<16xf32>
    %675 = vector.multi_reduction <maximumf>, %674, %cst_291 [1] : vector<16x16xf32> to vector<16xf32>
    %676 = vector.shape_cast %675 : vector<16xf32> to vector<16x1xf32>
    %677 = vector.broadcast %676 : vector<16x1xf32> to vector<16x16xf32>
    %678 = arith.subf %674, %677 : vector<16x16xf32>
    %679 = math.exp %678 : vector<16x16xf32>
    %cst_292 = arith.constant dense<0.000000e+00> : vector<16xf32>
    %680 = vector.multi_reduction <add>, %679, %cst_292 [1] : vector<16x16xf32> to vector<16xf32>
    %681 = vector.shape_cast %680 : vector<16xf32> to vector<16x1xf32>
    %682 = tpu.reciprocal %681 {approx = true} : vector<16x1xf32> -> vector<16x1xf32>
    %683 = vector.broadcast %682 : vector<16x1xf32> to vector<16x16xf32>
    %684 = arith.mulf %679, %683 : vector<16x16xf32>
    %cst_293 = arith.constant dense<0.000000e+00> : vector<16x8xf32>
    %685 = tpu.matmul %684, %670, %cst_293 {dimension_numbers = #tpu.dot_dimension_numbers<[1], [0], [0], [1], [0, 0, 1, 1], [], []>} : vector<16x16xf32>, vector<16x8xf32>, vector<16x8xf32> -> vector<16x8xf32>
    %686 = vector.extract_strided_slice %663 {offsets = [0, 8], sizes = [16, 8], strides = [1, 1]} : vector<16x32xf32> to vector<16x8xf32>
    %cst_294 = arith.constant 0.353553385 : f32
    %687 = vector.broadcast %cst_294 : f32 to vector<16x8xf32>
    %688 = arith.mulf %686, %687 : vector<16x8xf32>
    %689 = vector.extract_strided_slice %664 {offsets = [0, 8], sizes = [16, 8], strides = [1, 1]} : vector<16x32xf32> to vector<16x8xf32>
    %690 = vector.extract_strided_slice %665 {offsets = [0, 8], sizes = [16, 8], strides = [1, 1]} : vector<16x32xf32> to vector<16x8xf32>
    %691 = tpu.transpose %689, [1, 0] : vector<16x8xf32> -> vector<8x16xf32>
    %cst_295 = arith.constant dense<0.000000e+00> : vector<16x16xf32>
    %692 = tpu.matmul %688, %691, %cst_295 {dimension_numbers = #tpu.dot_dimension_numbers<[1], [0], [0], [1], [0, 0, 1, 1], [], []>} : vector<16x8xf32>, vector<8x16xf32>, vector<16x16xf32> -> vector<16x16xf32>
    %cst_296 = arith.constant -9.99999984E+17 : f32
    %693 = vector.broadcast %cst_296 : f32 to vector<16x16xf32>
    %694 = arith.select %5, %693, %692 : vector<16x16xi1>, vector<16x16xf32>
    %cst_297 = arith.constant dense<0xFF800000> : vector<16xf32>
    %695 = vector.multi_reduction <maximumf>, %694, %cst_297 [1] : vector<16x16xf32> to vector<16xf32>
    %696 = vector.shape_cast %695 : vector<16xf32> to vector<16x1xf32>
    %697 = vector.broadcast %696 : vector<16x1xf32> to vector<16x16xf32>
    %698 = arith.subf %694, %697 : vector<16x16xf32>
    %699 = math.exp %698 : vector<16x16xf32>
    %cst_298 = arith.constant dense<0.000000e+00> : vector<16xf32>
    %700 = vector.multi_reduction <add>, %699, %cst_298 [1] : vector<16x16xf32> to vector<16xf32>
    %701 = vector.shape_cast %700 : vector<16xf32> to vector<16x1xf32>
    %702 = tpu.reciprocal %701 {approx = true} : vector<16x1xf32> -> vector<16x1xf32>
    %703 = vector.broadcast %702 : vector<16x1xf32> to vector<16x16xf32>
    %704 = arith.mulf %699, %703 : vector<16x16xf32>
    %cst_299 = arith.constant dense<0.000000e+00> : vector<16x8xf32>
    %705 = tpu.matmul %704, %690, %cst_299 {dimension_numbers = #tpu.dot_dimension_numbers<[1], [0], [0], [1], [0, 0, 1, 1], [], []>} : vector<16x16xf32>, vector<16x8xf32>, vector<16x8xf32> -> vector<16x8xf32>
    %706 = vector.extract_strided_slice %663 {offsets = [0, 16], sizes = [16, 8], strides = [1, 1]} : vector<16x32xf32> to vector<16x8xf32>
    %cst_300 = arith.constant 0.353553385 : f32
    %707 = vector.broadcast %cst_300 : f32 to vector<16x8xf32>
    %708 = arith.mulf %706, %707 : vector<16x8xf32>
    %709 = vector.extract_strided_slice %664 {offsets = [0, 16], sizes = [16, 8], strides = [1, 1]} : vector<16x32xf32> to vector<16x8xf32>
    %710 = vector.extract_strided_slice %665 {offsets = [0, 16], sizes = [16, 8], strides = [1, 1]} : vector<16x32xf32> to vector<16x8xf32>
    %711 = tpu.transpose %709, [1, 0] : vector<16x8xf32> -> vector<8x16xf32>
    %cst_301 = arith.constant dense<0.000000e+00> : vector<16x16xf32>
    %712 = tpu.matmul %708, %711, %cst_301 {dimension_numbers = #tpu.dot_dimension_numbers<[1], [0], [0], [1], [0, 0, 1, 1], [], []>} : vector<16x8xf32>, vector<8x16xf32>, vector<16x16xf32> -> vector<16x16xf32>
    %cst_302 = arith.constant -9.99999984E+17 : f32
    %713 = vector.broadcast %cst_302 : f32 to vector<16x16xf32>
    %714 = arith.select %5, %713, %712 : vector<16x16xi1>, vector<16x16xf32>
    %cst_303 = arith.constant dense<0xFF800000> : vector<16xf32>
    %715 = vector.multi_reduction <maximumf>, %714, %cst_303 [1] : vector<16x16xf32> to vector<16xf32>
    %716 = vector.shape_cast %715 : vector<16xf32> to vector<16x1xf32>
    %717 = vector.broadcast %716 : vector<16x1xf32> to vector<16x16xf32>
    %718 = arith.subf %714, %717 : vector<16x16xf32>
    %719 = math.exp %718 : vector<16x16xf32>
    %cst_304 = arith.constant dense<0.000000e+00> : vector<16xf32>
    %720 = vector.multi_reduction <add>, %719, %cst_304 [1] : vector<16x16xf32> to vector<16xf32>
    %721 = vector.shape_cast %720 : vector<16xf32> to vector<16x1xf32>
    %722 = tpu.reciprocal %721 {approx = true} : vector<16x1xf32> -> vector<16x1xf32>
    %723 = vector.broadcast %722 : vector<16x1xf32> to vector<16x16xf32>
    %724 = arith.mulf %719, %723 : vector<16x16xf32>
    %cst_305 = arith.constant dense<0.000000e+00> : vector<16x8xf32>
    %725 = tpu.matmul %724, %710, %cst_305 {dimension_numbers = #tpu.dot_dimension_numbers<[1], [0], [0], [1], [0, 0, 1, 1], [], []>} : vector<16x16xf32>, vector<16x8xf32>, vector<16x8xf32> -> vector<16x8xf32>
    %726 = vector.extract_strided_slice %663 {offsets = [0, 24], sizes = [16, 8], strides = [1, 1]} : vector<16x32xf32> to vector<16x8xf32>
    %cst_306 = arith.constant 0.353553385 : f32
    %727 = vector.broadcast %cst_306 : f32 to vector<16x8xf32>
    %728 = arith.mulf %726, %727 : vector<16x8xf32>
    %729 = vector.extract_strided_slice %664 {offsets = [0, 24], sizes = [16, 8], strides = [1, 1]} : vector<16x32xf32> to vector<16x8xf32>
    %730 = vector.extract_strided_slice %665 {offsets = [0, 24], sizes = [16, 8], strides = [1, 1]} : vector<16x32xf32> to vector<16x8xf32>
    %731 = tpu.transpose %729, [1, 0] : vector<16x8xf32> -> vector<8x16xf32>
    %cst_307 = arith.constant dense<0.000000e+00> : vector<16x16xf32>
    %732 = tpu.matmul %728, %731, %cst_307 {dimension_numbers = #tpu.dot_dimension_numbers<[1], [0], [0], [1], [0, 0, 1, 1], [], []>} : vector<16x8xf32>, vector<8x16xf32>, vector<16x16xf32> -> vector<16x16xf32>
    %cst_308 = arith.constant -9.99999984E+17 : f32
    %733 = vector.broadcast %cst_308 : f32 to vector<16x16xf32>
    %734 = arith.select %5, %733, %732 : vector<16x16xi1>, vector<16x16xf32>
    %cst_309 = arith.constant dense<0xFF800000> : vector<16xf32>
    %735 = vector.multi_reduction <maximumf>, %734, %cst_309 [1] : vector<16x16xf32> to vector<16xf32>
    %736 = vector.shape_cast %735 : vector<16xf32> to vector<16x1xf32>
    %737 = vector.broadcast %736 : vector<16x1xf32> to vector<16x16xf32>
    %738 = arith.subf %734, %737 : vector<16x16xf32>
    %739 = math.exp %738 : vector<16x16xf32>
    %cst_310 = arith.constant dense<0.000000e+00> : vector<16xf32>
    %740 = vector.multi_reduction <add>, %739, %cst_310 [1] : vector<16x16xf32> to vector<16xf32>
    %741 = vector.shape_cast %740 : vector<16xf32> to vector<16x1xf32>
    %742 = tpu.reciprocal %741 {approx = true} : vector<16x1xf32> -> vector<16x1xf32>
    %743 = vector.broadcast %742 : vector<16x1xf32> to vector<16x16xf32>
    %744 = arith.mulf %739, %743 : vector<16x16xf32>
    %cst_311 = arith.constant dense<0.000000e+00> : vector<16x8xf32>
    %745 = tpu.matmul %744, %730, %cst_311 {dimension_numbers = #tpu.dot_dimension_numbers<[1], [0], [0], [1], [0, 0, 1, 1], [], []>} : vector<16x16xf32>, vector<16x8xf32>, vector<16x8xf32> -> vector<16x8xf32>
    %746 = tpu.concatenate %685, %705, %725, %745 in 1 : vector<16x8xf32>, vector<16x8xf32>, vector<16x8xf32>, vector<16x8xf32> -> vector<16x32xf32>
    %c1_312 = arith.constant 1 : index
    %c0_313 = arith.constant 0 : index
    %c0_314 = arith.constant 0 : index
    %747 = vector.load %arg20[%c1_312, %c0_313, %c0_314] : memref<2x32x32xf32, #tpu.memory_space<vmem>>, vector<1x32x32xf32>
    %748 = vector.shape_cast %747 : vector<1x32x32xf32> to vector<32x32xf32>
    %cst_315 = arith.constant dense<0.000000e+00> : vector<16x32xf32>
    %749 = tpu.matmul %746, %748, %cst_315 {dimension_numbers = #tpu.dot_dimension_numbers<[1], [0], [0], [1], [0, 0, 1, 1], [], []>} : vector<16x32xf32>, vector<32x32xf32>, vector<16x32xf32> -> vector<16x32xf32>
    %750 = arith.addf %633, %749 : vector<16x32xf32>
    %c1_316 = arith.constant 1 : index
    %c0_317 = arith.constant 0 : index
    %c0_318 = arith.constant 0 : index
    %751 = vector.load %arg21[%c1_316, %c0_317, %c0_318] : memref<2x1x32xf32, #tpu.memory_space<vmem>>, vector<1x1x32xf32>
    %752 = vector.shape_cast %751 : vector<1x1x32xf32> to vector<1x32xf32>
    %c1_319 = arith.constant 1 : index
    %c0_320 = arith.constant 0 : index
    %c0_321 = arith.constant 0 : index
    %753 = vector.load %arg22[%c1_319, %c0_320, %c0_321] : memref<2x1x32xf32, #tpu.memory_space<vmem>>, vector<1x1x32xf32>
    %754 = vector.shape_cast %753 : vector<1x1x32xf32> to vector<1x32xf32>
    %cst_322 = arith.constant dense<0.000000e+00> : vector<16xf32>
    %755 = vector.multi_reduction <add>, %750, %cst_322 [1] : vector<16x32xf32> to vector<16xf32>
    %756 = vector.shape_cast %755 : vector<16xf32> to vector<16x1xf32>
    %cst_323 = arith.constant 3.200000e+01 : f32
    %757 = vector.broadcast %cst_323 : f32 to vector<16x1xf32>
    %758 = arith.divf %756, %757 : vector<16x1xf32>
    %759 = vector.broadcast %758 : vector<16x1xf32> to vector<16x32xf32>
    %760 = arith.subf %750, %759 : vector<16x32xf32>
    %761 = arith.mulf %760, %760 : vector<16x32xf32>
    %cst_324 = arith.constant dense<0.000000e+00> : vector<16xf32>
    %762 = vector.multi_reduction <add>, %761, %cst_324 [1] : vector<16x32xf32> to vector<16xf32>
    %763 = vector.shape_cast %762 : vector<16xf32> to vector<16x1xf32>
    %cst_325 = arith.constant 3.200000e+01 : f32
    %764 = vector.broadcast %cst_325 : f32 to vector<16x1xf32>
    %765 = arith.divf %763, %764 : vector<16x1xf32>
    %766 = vector.broadcast %758 : vector<16x1xf32> to vector<16x32xf32>
    %767 = arith.subf %750, %766 : vector<16x32xf32>
    %cst_326 = arith.constant 9.99999997E-7 : f32
    %768 = vector.broadcast %cst_326 : f32 to vector<16x1xf32>
    %769 = arith.addf %765, %768 : vector<16x1xf32>
    %770 = math.rsqrt %769 : vector<16x1xf32>
    %771 = vector.broadcast %770 : vector<16x1xf32> to vector<16x32xf32>
    %772 = arith.mulf %767, %771 : vector<16x32xf32>
    %773 = vector.broadcast %752 : vector<1x32xf32> to vector<16x32xf32>
    %774 = arith.mulf %772, %773 : vector<16x32xf32>
    %775 = vector.broadcast %754 : vector<1x32xf32> to vector<16x32xf32>
    %776 = arith.addf %774, %775 : vector<16x32xf32>
    %c1_327 = arith.constant 1 : index
    %c0_328 = arith.constant 0 : index
    %c0_329 = arith.constant 0 : index
    %777 = vector.load %arg23[%c1_327, %c0_328, %c0_329] : memref<2x32x32xf32, #tpu.memory_space<vmem>>, vector<1x32x32xf32>
    %778 = vector.shape_cast %777 : vector<1x32x32xf32> to vector<32x32xf32>
    %c1_330 = arith.constant 1 : index
    %c0_331 = arith.constant 0 : index
    %c0_332 = arith.constant 0 : index
    %779 = vector.load %arg24[%c1_330, %c0_331, %c0_332] : memref<2x32x64xf32, #tpu.memory_space<vmem>>, vector<1x32x64xf32>
    %780 = vector.shape_cast %779 : vector<1x32x64xf32> to vector<32x64xf32>
    %cst_333 = arith.constant dense<0.000000e+00> : vector<16x32xf32>
    %781 = tpu.matmul %776, %778, %cst_333 {dimension_numbers = #tpu.dot_dimension_numbers<[1], [0], [0], [1], [0, 0, 1, 1], [], []>} : vector<16x32xf32>, vector<32x32xf32>, vector<16x32xf32> -> vector<16x32xf32>
    %cst_334 = arith.constant dense<0.000000e+00> : vector<16x64xf32>
    %782 = tpu.matmul %353, %780, %cst_334 {dimension_numbers = #tpu.dot_dimension_numbers<[1], [0], [0], [1], [0, 0, 1, 1], [], []>} : vector<16x32xf32>, vector<32x64xf32>, vector<16x64xf32> -> vector<16x64xf32>
    %783 = vector.extract_strided_slice %782 {offsets = [0, 0], sizes = [16, 32], strides = [1, 1]} : vector<16x64xf32> to vector<16x32xf32>
    %784 = vector.extract_strided_slice %782 {offsets = [0, 32], sizes = [16, 32], strides = [1, 1]} : vector<16x64xf32> to vector<16x32xf32>
    %785 = vector.extract_strided_slice %781 {offsets = [0, 0], sizes = [16, 8], strides = [1, 1]} : vector<16x32xf32> to vector<16x8xf32>
    %cst_335 = arith.constant 0.353553385 : f32
    %786 = vector.broadcast %cst_335 : f32 to vector<16x8xf32>
    %787 = arith.mulf %785, %786 : vector<16x8xf32>
    %788 = vector.extract_strided_slice %783 {offsets = [0, 0], sizes = [16, 8], strides = [1, 1]} : vector<16x32xf32> to vector<16x8xf32>
    %789 = vector.extract_strided_slice %784 {offsets = [0, 0], sizes = [16, 8], strides = [1, 1]} : vector<16x32xf32> to vector<16x8xf32>
    %790 = tpu.transpose %788, [1, 0] : vector<16x8xf32> -> vector<8x16xf32>
    %cst_336 = arith.constant dense<0.000000e+00> : vector<16x16xf32>
    %791 = tpu.matmul %787, %790, %cst_336 {dimension_numbers = #tpu.dot_dimension_numbers<[1], [0], [0], [1], [0, 0, 1, 1], [], []>} : vector<16x8xf32>, vector<8x16xf32>, vector<16x16xf32> -> vector<16x16xf32>
    %cst_337 = arith.constant -9.99999984E+17 : f32
    %792 = vector.broadcast %cst_337 : f32 to vector<16x16xf32>
    %793 = arith.select %8, %792, %791 : vector<16x16xi1>, vector<16x16xf32>
    %cst_338 = arith.constant dense<0xFF800000> : vector<16xf32>
    %794 = vector.multi_reduction <maximumf>, %793, %cst_338 [1] : vector<16x16xf32> to vector<16xf32>
    %795 = vector.shape_cast %794 : vector<16xf32> to vector<16x1xf32>
    %796 = vector.broadcast %795 : vector<16x1xf32> to vector<16x16xf32>
    %797 = arith.subf %793, %796 : vector<16x16xf32>
    %798 = math.exp %797 : vector<16x16xf32>
    %cst_339 = arith.constant dense<0.000000e+00> : vector<16xf32>
    %799 = vector.multi_reduction <add>, %798, %cst_339 [1] : vector<16x16xf32> to vector<16xf32>
    %800 = vector.shape_cast %799 : vector<16xf32> to vector<16x1xf32>
    %801 = tpu.reciprocal %800 {approx = true} : vector<16x1xf32> -> vector<16x1xf32>
    %802 = vector.broadcast %801 : vector<16x1xf32> to vector<16x16xf32>
    %803 = arith.mulf %798, %802 : vector<16x16xf32>
    %cst_340 = arith.constant dense<0.000000e+00> : vector<16x8xf32>
    %804 = tpu.matmul %803, %789, %cst_340 {dimension_numbers = #tpu.dot_dimension_numbers<[1], [0], [0], [1], [0, 0, 1, 1], [], []>} : vector<16x16xf32>, vector<16x8xf32>, vector<16x8xf32> -> vector<16x8xf32>
    %805 = vector.extract_strided_slice %781 {offsets = [0, 8], sizes = [16, 8], strides = [1, 1]} : vector<16x32xf32> to vector<16x8xf32>
    %cst_341 = arith.constant 0.353553385 : f32
    %806 = vector.broadcast %cst_341 : f32 to vector<16x8xf32>
    %807 = arith.mulf %805, %806 : vector<16x8xf32>
    %808 = vector.extract_strided_slice %783 {offsets = [0, 8], sizes = [16, 8], strides = [1, 1]} : vector<16x32xf32> to vector<16x8xf32>
    %809 = vector.extract_strided_slice %784 {offsets = [0, 8], sizes = [16, 8], strides = [1, 1]} : vector<16x32xf32> to vector<16x8xf32>
    %810 = tpu.transpose %808, [1, 0] : vector<16x8xf32> -> vector<8x16xf32>
    %cst_342 = arith.constant dense<0.000000e+00> : vector<16x16xf32>
    %811 = tpu.matmul %807, %810, %cst_342 {dimension_numbers = #tpu.dot_dimension_numbers<[1], [0], [0], [1], [0, 0, 1, 1], [], []>} : vector<16x8xf32>, vector<8x16xf32>, vector<16x16xf32> -> vector<16x16xf32>
    %cst_343 = arith.constant -9.99999984E+17 : f32
    %812 = vector.broadcast %cst_343 : f32 to vector<16x16xf32>
    %813 = arith.select %8, %812, %811 : vector<16x16xi1>, vector<16x16xf32>
    %cst_344 = arith.constant dense<0xFF800000> : vector<16xf32>
    %814 = vector.multi_reduction <maximumf>, %813, %cst_344 [1] : vector<16x16xf32> to vector<16xf32>
    %815 = vector.shape_cast %814 : vector<16xf32> to vector<16x1xf32>
    %816 = vector.broadcast %815 : vector<16x1xf32> to vector<16x16xf32>
    %817 = arith.subf %813, %816 : vector<16x16xf32>
    %818 = math.exp %817 : vector<16x16xf32>
    %cst_345 = arith.constant dense<0.000000e+00> : vector<16xf32>
    %819 = vector.multi_reduction <add>, %818, %cst_345 [1] : vector<16x16xf32> to vector<16xf32>
    %820 = vector.shape_cast %819 : vector<16xf32> to vector<16x1xf32>
    %821 = tpu.reciprocal %820 {approx = true} : vector<16x1xf32> -> vector<16x1xf32>
    %822 = vector.broadcast %821 : vector<16x1xf32> to vector<16x16xf32>
    %823 = arith.mulf %818, %822 : vector<16x16xf32>
    %cst_346 = arith.constant dense<0.000000e+00> : vector<16x8xf32>
    %824 = tpu.matmul %823, %809, %cst_346 {dimension_numbers = #tpu.dot_dimension_numbers<[1], [0], [0], [1], [0, 0, 1, 1], [], []>} : vector<16x16xf32>, vector<16x8xf32>, vector<16x8xf32> -> vector<16x8xf32>
    %825 = vector.extract_strided_slice %781 {offsets = [0, 16], sizes = [16, 8], strides = [1, 1]} : vector<16x32xf32> to vector<16x8xf32>
    %cst_347 = arith.constant 0.353553385 : f32
    %826 = vector.broadcast %cst_347 : f32 to vector<16x8xf32>
    %827 = arith.mulf %825, %826 : vector<16x8xf32>
    %828 = vector.extract_strided_slice %783 {offsets = [0, 16], sizes = [16, 8], strides = [1, 1]} : vector<16x32xf32> to vector<16x8xf32>
    %829 = vector.extract_strided_slice %784 {offsets = [0, 16], sizes = [16, 8], strides = [1, 1]} : vector<16x32xf32> to vector<16x8xf32>
    %830 = tpu.transpose %828, [1, 0] : vector<16x8xf32> -> vector<8x16xf32>
    %cst_348 = arith.constant dense<0.000000e+00> : vector<16x16xf32>
    %831 = tpu.matmul %827, %830, %cst_348 {dimension_numbers = #tpu.dot_dimension_numbers<[1], [0], [0], [1], [0, 0, 1, 1], [], []>} : vector<16x8xf32>, vector<8x16xf32>, vector<16x16xf32> -> vector<16x16xf32>
    %cst_349 = arith.constant -9.99999984E+17 : f32
    %832 = vector.broadcast %cst_349 : f32 to vector<16x16xf32>
    %833 = arith.select %8, %832, %831 : vector<16x16xi1>, vector<16x16xf32>
    %cst_350 = arith.constant dense<0xFF800000> : vector<16xf32>
    %834 = vector.multi_reduction <maximumf>, %833, %cst_350 [1] : vector<16x16xf32> to vector<16xf32>
    %835 = vector.shape_cast %834 : vector<16xf32> to vector<16x1xf32>
    %836 = vector.broadcast %835 : vector<16x1xf32> to vector<16x16xf32>
    %837 = arith.subf %833, %836 : vector<16x16xf32>
    %838 = math.exp %837 : vector<16x16xf32>
    %cst_351 = arith.constant dense<0.000000e+00> : vector<16xf32>
    %839 = vector.multi_reduction <add>, %838, %cst_351 [1] : vector<16x16xf32> to vector<16xf32>
    %840 = vector.shape_cast %839 : vector<16xf32> to vector<16x1xf32>
    %841 = tpu.reciprocal %840 {approx = true} : vector<16x1xf32> -> vector<16x1xf32>
    %842 = vector.broadcast %841 : vector<16x1xf32> to vector<16x16xf32>
    %843 = arith.mulf %838, %842 : vector<16x16xf32>
    %cst_352 = arith.constant dense<0.000000e+00> : vector<16x8xf32>
    %844 = tpu.matmul %843, %829, %cst_352 {dimension_numbers = #tpu.dot_dimension_numbers<[1], [0], [0], [1], [0, 0, 1, 1], [], []>} : vector<16x16xf32>, vector<16x8xf32>, vector<16x8xf32> -> vector<16x8xf32>
    %845 = vector.extract_strided_slice %781 {offsets = [0, 24], sizes = [16, 8], strides = [1, 1]} : vector<16x32xf32> to vector<16x8xf32>
    %cst_353 = arith.constant 0.353553385 : f32
    %846 = vector.broadcast %cst_353 : f32 to vector<16x8xf32>
    %847 = arith.mulf %845, %846 : vector<16x8xf32>
    %848 = vector.extract_strided_slice %783 {offsets = [0, 24], sizes = [16, 8], strides = [1, 1]} : vector<16x32xf32> to vector<16x8xf32>
    %849 = vector.extract_strided_slice %784 {offsets = [0, 24], sizes = [16, 8], strides = [1, 1]} : vector<16x32xf32> to vector<16x8xf32>
    %850 = tpu.transpose %848, [1, 0] : vector<16x8xf32> -> vector<8x16xf32>
    %cst_354 = arith.constant dense<0.000000e+00> : vector<16x16xf32>
    %851 = tpu.matmul %847, %850, %cst_354 {dimension_numbers = #tpu.dot_dimension_numbers<[1], [0], [0], [1], [0, 0, 1, 1], [], []>} : vector<16x8xf32>, vector<8x16xf32>, vector<16x16xf32> -> vector<16x16xf32>
    %cst_355 = arith.constant -9.99999984E+17 : f32
    %852 = vector.broadcast %cst_355 : f32 to vector<16x16xf32>
    %853 = arith.select %8, %852, %851 : vector<16x16xi1>, vector<16x16xf32>
    %cst_356 = arith.constant dense<0xFF800000> : vector<16xf32>
    %854 = vector.multi_reduction <maximumf>, %853, %cst_356 [1] : vector<16x16xf32> to vector<16xf32>
    %855 = vector.shape_cast %854 : vector<16xf32> to vector<16x1xf32>
    %856 = vector.broadcast %855 : vector<16x1xf32> to vector<16x16xf32>
    %857 = arith.subf %853, %856 : vector<16x16xf32>
    %858 = math.exp %857 : vector<16x16xf32>
    %cst_357 = arith.constant dense<0.000000e+00> : vector<16xf32>
    %859 = vector.multi_reduction <add>, %858, %cst_357 [1] : vector<16x16xf32> to vector<16xf32>
    %860 = vector.shape_cast %859 : vector<16xf32> to vector<16x1xf32>
    %861 = tpu.reciprocal %860 {approx = true} : vector<16x1xf32> -> vector<16x1xf32>
    %862 = vector.broadcast %861 : vector<16x1xf32> to vector<16x16xf32>
    %863 = arith.mulf %858, %862 : vector<16x16xf32>
    %cst_358 = arith.constant dense<0.000000e+00> : vector<16x8xf32>
    %864 = tpu.matmul %863, %849, %cst_358 {dimension_numbers = #tpu.dot_dimension_numbers<[1], [0], [0], [1], [0, 0, 1, 1], [], []>} : vector<16x16xf32>, vector<16x8xf32>, vector<16x8xf32> -> vector<16x8xf32>
    %865 = tpu.concatenate %804, %824, %844, %864 in 1 : vector<16x8xf32>, vector<16x8xf32>, vector<16x8xf32>, vector<16x8xf32> -> vector<16x32xf32>
    %c1_359 = arith.constant 1 : index
    %c0_360 = arith.constant 0 : index
    %c0_361 = arith.constant 0 : index
    %866 = vector.load %arg25[%c1_359, %c0_360, %c0_361] : memref<2x32x32xf32, #tpu.memory_space<vmem>>, vector<1x32x32xf32>
    %867 = vector.shape_cast %866 : vector<1x32x32xf32> to vector<32x32xf32>
    %cst_362 = arith.constant dense<0.000000e+00> : vector<16x32xf32>
    %868 = tpu.matmul %865, %867, %cst_362 {dimension_numbers = #tpu.dot_dimension_numbers<[1], [0], [0], [1], [0, 0, 1, 1], [], []>} : vector<16x32xf32>, vector<32x32xf32>, vector<16x32xf32> -> vector<16x32xf32>
    %869 = arith.addf %750, %868 : vector<16x32xf32>
    %c1_363 = arith.constant 1 : index
    %c0_364 = arith.constant 0 : index
    %c0_365 = arith.constant 0 : index
    %870 = vector.load %arg26[%c1_363, %c0_364, %c0_365] : memref<2x1x32xf32, #tpu.memory_space<vmem>>, vector<1x1x32xf32>
    %871 = vector.shape_cast %870 : vector<1x1x32xf32> to vector<1x32xf32>
    %c1_366 = arith.constant 1 : index
    %c0_367 = arith.constant 0 : index
    %c0_368 = arith.constant 0 : index
    %872 = vector.load %arg27[%c1_366, %c0_367, %c0_368] : memref<2x1x32xf32, #tpu.memory_space<vmem>>, vector<1x1x32xf32>
    %873 = vector.shape_cast %872 : vector<1x1x32xf32> to vector<1x32xf32>
    %cst_369 = arith.constant dense<0.000000e+00> : vector<16xf32>
    %874 = vector.multi_reduction <add>, %869, %cst_369 [1] : vector<16x32xf32> to vector<16xf32>
    %875 = vector.shape_cast %874 : vector<16xf32> to vector<16x1xf32>
    %cst_370 = arith.constant 3.200000e+01 : f32
    %876 = vector.broadcast %cst_370 : f32 to vector<16x1xf32>
    %877 = arith.divf %875, %876 : vector<16x1xf32>
    %878 = vector.broadcast %877 : vector<16x1xf32> to vector<16x32xf32>
    %879 = arith.subf %869, %878 : vector<16x32xf32>
    %880 = arith.mulf %879, %879 : vector<16x32xf32>
    %cst_371 = arith.constant dense<0.000000e+00> : vector<16xf32>
    %881 = vector.multi_reduction <add>, %880, %cst_371 [1] : vector<16x32xf32> to vector<16xf32>
    %882 = vector.shape_cast %881 : vector<16xf32> to vector<16x1xf32>
    %cst_372 = arith.constant 3.200000e+01 : f32
    %883 = vector.broadcast %cst_372 : f32 to vector<16x1xf32>
    %884 = arith.divf %882, %883 : vector<16x1xf32>
    %885 = vector.broadcast %877 : vector<16x1xf32> to vector<16x32xf32>
    %886 = arith.subf %869, %885 : vector<16x32xf32>
    %cst_373 = arith.constant 9.99999997E-7 : f32
    %887 = vector.broadcast %cst_373 : f32 to vector<16x1xf32>
    %888 = arith.addf %884, %887 : vector<16x1xf32>
    %889 = math.rsqrt %888 : vector<16x1xf32>
    %890 = vector.broadcast %889 : vector<16x1xf32> to vector<16x32xf32>
    %891 = arith.mulf %886, %890 : vector<16x32xf32>
    %892 = vector.broadcast %871 : vector<1x32xf32> to vector<16x32xf32>
    %893 = arith.mulf %891, %892 : vector<16x32xf32>
    %894 = vector.broadcast %873 : vector<1x32xf32> to vector<16x32xf32>
    %895 = arith.addf %893, %894 : vector<16x32xf32>
    %c1_374 = arith.constant 1 : index
    %c0_375 = arith.constant 0 : index
    %c0_376 = arith.constant 0 : index
    %896 = vector.load %arg28[%c1_374, %c0_375, %c0_376] : memref<2x32x64xf32, #tpu.memory_space<vmem>>, vector<1x32x64xf32>
    %897 = vector.shape_cast %896 : vector<1x32x64xf32> to vector<32x64xf32>
    %cst_377 = arith.constant dense<0.000000e+00> : vector<16x64xf32>
    %898 = tpu.matmul %895, %897, %cst_377 {dimension_numbers = #tpu.dot_dimension_numbers<[1], [0], [0], [1], [0, 0, 1, 1], [], []>} : vector<16x32xf32>, vector<32x64xf32>, vector<16x64xf32> -> vector<16x64xf32>
    %c1_378 = arith.constant 1 : index
    %c0_379 = arith.constant 0 : index
    %c0_380 = arith.constant 0 : index
    %899 = vector.load %arg29[%c1_378, %c0_379, %c0_380] : memref<2x1x64xf32, #tpu.memory_space<vmem>>, vector<1x1x64xf32>
    %900 = vector.shape_cast %899 : vector<1x1x64xf32> to vector<1x64xf32>
    %901 = vector.broadcast %900 : vector<1x64xf32> to vector<16x64xf32>
    %902 = arith.addf %898, %901 : vector<16x64xf32>
    %cst_381 = arith.constant 0.000000e+00 : f32
    %903 = vector.broadcast %cst_381 : f32 to vector<16x64xf32>
    %904 = arith.maximumf %902, %903 : vector<16x64xf32>
    %c1_382 = arith.constant 1 : index
    %c0_383 = arith.constant 0 : index
    %c0_384 = arith.constant 0 : index
    %905 = vector.load %arg30[%c1_382, %c0_383, %c0_384] : memref<2x64x32xf32, #tpu.memory_space<vmem>>, vector<1x64x32xf32>
    %906 = vector.shape_cast %905 : vector<1x64x32xf32> to vector<64x32xf32>
    %cst_385 = arith.constant dense<0.000000e+00> : vector<16x32xf32>
    %907 = tpu.matmul %904, %906, %cst_385 {dimension_numbers = #tpu.dot_dimension_numbers<[1], [0], [0], [1], [0, 0, 1, 1], [], []>} : vector<16x64xf32>, vector<64x32xf32>, vector<16x32xf32> -> vector<16x32xf32>
    %908 = arith.addf %869, %907 : vector<16x32xf32>
    %c1_386 = arith.constant 1 : index
    %c0_387 = arith.constant 0 : index
    %c0_388 = arith.constant 0 : index
    %909 = vector.load %arg31[%c1_386, %c0_387, %c0_388] : memref<2x1x32xf32, #tpu.memory_space<vmem>>, vector<1x1x32xf32>
    %910 = vector.shape_cast %909 : vector<1x1x32xf32> to vector<1x32xf32>
    %911 = vector.broadcast %910 : vector<1x32xf32> to vector<16x32xf32>
    %912 = arith.addf %908, %911 : vector<16x32xf32>
    %c0_389 = arith.constant 0 : index
    %c0_390 = arith.constant 0 : index
    %913 = vector.load %arg32[%c0_389, %c0_390] : memref<1x32xf32, #tpu.memory_space<vmem>>, vector<1x32xf32>
    %c0_391 = arith.constant 0 : index
    %c0_392 = arith.constant 0 : index
    %914 = vector.load %arg33[%c0_391, %c0_392] : memref<1x32xf32, #tpu.memory_space<vmem>>, vector<1x32xf32>
    %cst_393 = arith.constant dense<0.000000e+00> : vector<16xf32>
    %915 = vector.multi_reduction <add>, %912, %cst_393 [1] : vector<16x32xf32> to vector<16xf32>
    %916 = vector.shape_cast %915 : vector<16xf32> to vector<16x1xf32>
    %cst_394 = arith.constant 3.200000e+01 : f32
    %917 = vector.broadcast %cst_394 : f32 to vector<16x1xf32>
    %918 = arith.divf %916, %917 : vector<16x1xf32>
    %919 = vector.broadcast %918 : vector<16x1xf32> to vector<16x32xf32>
    %920 = arith.subf %912, %919 : vector<16x32xf32>
    %921 = arith.mulf %920, %920 : vector<16x32xf32>
    %cst_395 = arith.constant dense<0.000000e+00> : vector<16xf32>
    %922 = vector.multi_reduction <add>, %921, %cst_395 [1] : vector<16x32xf32> to vector<16xf32>
    %923 = vector.shape_cast %922 : vector<16xf32> to vector<16x1xf32>
    %cst_396 = arith.constant 3.200000e+01 : f32
    %924 = vector.broadcast %cst_396 : f32 to vector<16x1xf32>
    %925 = arith.divf %923, %924 : vector<16x1xf32>
    %926 = vector.broadcast %918 : vector<16x1xf32> to vector<16x32xf32>
    %927 = arith.subf %912, %926 : vector<16x32xf32>
    %cst_397 = arith.constant 9.99999997E-7 : f32
    %928 = vector.broadcast %cst_397 : f32 to vector<16x1xf32>
    %929 = arith.addf %925, %928 : vector<16x1xf32>
    %930 = math.rsqrt %929 : vector<16x1xf32>
    %931 = vector.broadcast %930 : vector<16x1xf32> to vector<16x32xf32>
    %932 = arith.mulf %927, %931 : vector<16x32xf32>
    %933 = vector.broadcast %913 : vector<1x32xf32> to vector<16x32xf32>
    %934 = arith.mulf %932, %933 : vector<16x32xf32>
    %935 = vector.broadcast %914 : vector<1x32xf32> to vector<16x32xf32>
    %936 = arith.addf %934, %935 : vector<16x32xf32>
    %c0_398 = arith.constant 0 : index
    %c0_399 = arith.constant 0 : index
    %937 = vector.load %arg34[%c0_398, %c0_399] : memref<32x16xf32, #tpu.memory_space<vmem>>, vector<32x16xf32>
    %cst_400 = arith.constant dense<0.000000e+00> : vector<16x16xf32>
    %938 = tpu.matmul %936, %937, %cst_400 {dimension_numbers = #tpu.dot_dimension_numbers<[1], [0], [0], [1], [0, 0, 1, 1], [], []>} : vector<16x32xf32>, vector<32x16xf32>, vector<16x16xf32> -> vector<16x16xf32>
    %c0_401 = arith.constant 0 : index
    %c0_402 = arith.constant 0 : index
    %939 = vector.load %arg35[%c0_401, %c0_402] : memref<1x16xf32, #tpu.memory_space<vmem>>, vector<1x16xf32>
    %940 = vector.broadcast %939 : vector<1x16xf32> to vector<16x16xf32>
    %941 = arith.addf %938, %940 : vector<16x16xf32>
    %c0_403 = arith.constant 0 : index
    %c0_404 = arith.constant 0 : index
    %942 = vector.load %arg36[%c0_403, %c0_404] : memref<16x16xf32, #tpu.memory_space<vmem>>, vector<16x16xf32>
    tpu.vector_store %arg36[%c0_403, %c0_404], %941 {strides = array<i32>} : memref<16x16xf32, #tpu.memory_space<vmem>>, vector<16x16xf32>,
    return
  }
}

</mosaic_0001>

<bundles_post_ra>
// kernel: gt.8
= control target key start
LH: loop header
LB: loop body
LE: loop exit
PB: predicated region body
PF: predicated region fallthrough
CT: control target
= control target key end

     0   :  { %vm8_vm0 = vcmask 64512   ;;  %vm14_vm1 = vcmask 130112   ;;  %s42_s0 = inlined_call_operand.vmem [shape: s32[2,8], index: 0, kind: input, shape index: {}]   ;;  %s43_s1 = inlined_call_operand.vmem [shape: s32[16], index: 1, kind: output, shape index: {}]  }
   0x1   :  { %v5_v0 = vld [vmem:[%s42_s0] sm:$0x3]  ;;  %s25_s0 = smov 8  }
   0x2   :  { %6 = vst [vmem:[#allocation1] sm:$0x3] %v5_v0 }
   0x9   :  { %v11_v1 = vld [vmem:[#allocation1 + $0x1] sm:$0x1]   ;;  %v7_v2 = vld [vmem:[#allocation1] sm:$0x1]  }
   0xa   :  { %12 = vrot.lane.b32.xlu0 %v11_v1, %s25_s0  ;;  %9 = vst.msk [vmem:[#allocation0] sm:$0x1] %vm8_vm0, %v7_v2  }
  0x7c   :  { %v13_v3 = vpop.permute.xlu0 %12  }
  0x7d   :  { %15 = vst.msk [vmem:[#allocation0] sm:$0x1] %vm14_vm1, %v13_v3  }
  0x84   :  { %v20_v4 = vld [vmem:[#allocation0] sm:$0x1] }
  0x85   :  { %23 = vst [vmem:[%s43_s1] sm:$0x1] %v20_v4 }

// kernel: transformer_forward.1
= control target key start
LH: loop header
LB: loop body
LE: loop exit
PB: predicated region body
PF: predicated region fallthrough
CT: control target
= control target key end

     0   :  { %s9446_s6 = smov 1   ;;  %s9447_s10 = smov 2   ;;  %s10949_s0 = inlined_call_operand.smem [shape: u32[37], index: -1, kind: input, shape index: {}] }
   0x1   :  { %s9506_s5 = sld [smem:[%s10949_s0]]   ;;  %s9448_s14 = smov 3  }
   0x2   :  { %s9511_s9 = sld [smem:[%s10949_s0 + %s9446_s6]]   ;;  %s9449_s18 = smov 4  }
   0x3   :  { %s9516_s13 = sld [smem:[%s10949_s0 + %s9447_s10]]   ;;  %s9450_s22 = smov 5  }
   0x4   :  { %s9521_s17 = sld [smem:[%s10949_s0 + %s9448_s14]]   ;;  %s9451_s26 = smov 6  }
   0x5   :  { %s9526_s21 = sld [smem:[%s10949_s0 + %s9449_s18]]   ;;  %s9452_s30 = smov 7  }
   0x6   :  { %s9531_s25 = sld [smem:[%s10949_s0 + %s9450_s22]]   ;;  %s9453_s4 = smov 8  }
   0x7   :  { %s9536_s29 = sld [smem:[%s10949_s0 + %s9451_s26]]   ;;  %s9454_s10 = smov 9  }
   0x8   :  { %s9541_s3 = sld [smem:[%s10949_s0 + %s9452_s30]]   ;;  %s9455_s15 = smov 10  }
   0x9   :  { %s9546_s8 = sld [smem:[%s10949_s0 + %s9453_s4]]   ;;  %s9456_s20 = smov 11  }
   0xa   :  { %10970 = sst [smem:[#allocation5_spill]] %s9521_s17  ;;  %s9457_s26 = smov 12  }
   0xb   :  { %10971 = sst [smem:[#allocation6_spill]] %s9526_s21  ;;  %s9458_s1 = smov 13  }
   0xc   :  { %s9551_s14 = sld [smem:[%s10949_s0 + %s9454_s10]]   ;;  %s9459_s7 = smov 14  }
   0xd   :  { %s9556_s19 = sld [smem:[%s10949_s0 + %s9455_s15]]   ;;  %s9460_s15 = smov 15  }
   0xe   :  { %s9561_s24 = sld [smem:[%s10949_s0 + %s9456_s20]]   ;;  %s9461_s22 = smov 16  }
   0xf   :  { %s9566_s30 = sld [smem:[%s10949_s0 + %s9457_s26]]   ;;  %s9462_s28 = smov 17  }
  0x10   :  { %s9571_s6 = sld [smem:[%s10949_s0 + %s9458_s1]]  }
  0x11   :  { %s9576_s12 = sld [smem:[%s10949_s0 + %s9459_s7]]   ;;  %s9463_s7 = smov 18  }
  0x12   :  { %s9581_s20 = sld [smem:[%s10949_s0 + %s9460_s15]]   ;;  %s9464_s15 = smov 19  }
  0x13   :  { %s9586_s27 = sld [smem:[%s10949_s0 + %s9461_s22]]   ;;  %s9465_s22 = smov 20  }
  0x14   :  { %s9591_s4 = sld [smem:[%s10949_s0 + %s9462_s28]]   ;;  %s9466_s28 = smov 21  }
  0x15   :  { %s9596_s21 = sld [smem:[%s10949_s0 + %s9463_s7]]   ;;  %s9467_s7 = smov 22  }
  0x16   :  { %s9611_s17 = sld [smem:[%s10949_s0 + %s9466_s28]]   ;;  %s9470_s28 = smov 25  }
  0x18   :  { %10972 = sst [smem:[#allocation7_spill]] %s9581_s20 }
  0x19   :  { %10973 = sst [smem:[#allocation8_spill]] %s9586_s27 }
  0x1a   :  { %10974 = sst [smem:[#allocation9_spill]] %s9591_s4 }
  0x1b   :  { %10975 = sst [smem:[#allocation10_spill]] %s9596_s21 }
  0x1c   :  { %s9601_s20 = sld [smem:[%s10949_s0 + %s9464_s15]]   ;;  %s9468_s15 = smov 23  }
  0x1d   :  { %s9606_s27 = sld [smem:[%s10949_s0 + %s9465_s22]]   ;;  %s9469_s22 = smov 24  }
  0x1e   :  { %10977 = sst [smem:[#allocation12_spill]] %s9611_s17 }
  0x1f   :  { %s9616_s21 = sld [smem:[%s10949_s0 + %s9467_s7]]   ;;  %s9471_s7 = smov 26  }
  0x20   :  { %s9621_s4 = sld [smem:[%s10949_s0 + %s9468_s15]]   ;;  %s9472_s15 = smov 27  }
  0x21   :  { %s9631_s17 = sld [smem:[%s10949_s0 + %s9470_s28]]   ;;  %s9474_s28 = smov 29  }
  0x23   :  { %10976 = sst [smem:[#allocation11_spill]] %s9606_s27 }
  0x24   :  { %s9626_s27 = sld [smem:[%s10949_s0 + %s9469_s22]]   ;;  %s9473_s22 = smov 28  }
  0x25   :  { %10978 = sst [smem:[#allocation13_spill]] %s9616_s21 }
  0x26   :  { %10979 = sst [smem:[#allocation14_spill]] %s9621_s4 }
  0x27   :  { %10981 = sst [smem:[#allocation16_spill]] %s9631_s17 }
  0x28   :  { %s9636_s21 = sld [smem:[%s10949_s0 + %s9471_s7]]   ;;  %s9475_s7 = smov 30  }
  0x29   :  { %s9641_s4 = sld [smem:[%s10949_s0 + %s9472_s15]]   ;;  %s9476_s15 = smov 31  }
  0x2a   :  { %10980 = sst [smem:[#allocation15_spill]] %s9626_s27 }
  0x2b   :  { %s9646_s27 = sld [smem:[%s10949_s0 + %s9473_s22]]   ;;  %s9477_s22 = smov 32  }
  0x2c   :  { %s9651_s17 = sld [smem:[%s10949_s0 + %s9474_s28]]   ;;  %s9478_s28 = smov 33  }
  0x2e   :  { %10982 = sst [smem:[#allocation17_spill]] %s9636_s21 }
  0x2f   :  { %10983 = sst [smem:[#allocation18_spill]] %s9641_s4 }
  0x30   :  { %s9656_s21 = sld [smem:[%s10949_s0 + %s9475_s7]]   ;;  %s9479_s7 = smov 34  }
  0x31   :  { %10984 = sst [smem:[#allocation19_spill]] %s9646_s27 }
  0x32   :  { %10985 = sst [smem:[#allocation20_spill]] %s9651_s17 }
  0x33   :  { %s9661_s4 = sld [smem:[%s10949_s0 + %s9476_s15]]   ;;  %s9480_s15 = smov 35  }
  0x34   :  { %s9666_s27 = sld [smem:[%s10949_s0 + %s9477_s22]]   ;;  %s9481_s22 = smov 36  }
  0x35   :  { %s9671_s17 = sld [smem:[%s10949_s0 + %s9478_s28]]  }
  0x36   :  { %10986 = sst [smem:[#allocation21_spill]] %s9656_s21 }
  0x37   :  { %s9676_s21 = sld [smem:[%s10949_s0 + %s9479_s7]]  }
  0x39   :  { %10987 = sst [smem:[#allocation22_spill]] %s9661_s4 }
  0x3a   :  { %10988 = sst [smem:[#allocation23_spill]] %s9666_s27 }
  0x3b   :  { %s9681_s4 = sld [smem:[%s10949_s0 + %s9480_s15]]  }
  0x3c   :  { %s9686_s27 = sld [smem:[%s10949_s0 + %s9481_s22]]  }
  0x3d   :  { %v9689_v0 = vld [vmem:[%s9506_s5] sm:$0xff]  ;;  %vm167_vm0 = vcmask 261120   ;;  %v9692_v1 = vld [vmem:[%s9506_s5 + $0x8] sm:$0xff] }
  0x3e   :  { %78 = vsyncpa [#allocation3], 0  ;;  %v168_v2 = vsel %vm167_vm0, %v9689_v0, 0.0  ;;  %v171_v3 = vsel %vm167_vm0, %v9692_v1, 0.0  ;;  %v214_v14 = vld [vmem:[%s9541_s3 + $0x18] sm:$0xff]  ;;  %v213_v15 = vld [vmem:[%s9541_s3 + $0x10] sm:$0xff] }
  0x3f   :  { %169 = vadd.xlane.f32.xlu0 %v168_v2  ;;  %8511 = vmatprep.subr.mxu0 %v214_v14  ;;  %v212_v16 = vld [vmem:[%s9541_s3 + $0x8] sm:$0xff]  ;;  %v211_v17 = vld [vmem:[%s9541_s3] sm:$0xff]  ;;  %s9482_s0 = smov 96   ;;  %vm304_vm1 = vcmask 64512   ;;  %vm392_vm3 = vcmask 130048   ;;  %s9483_s5 = smov 64  }
  0x40   :  { %8512 = vmatpush3.msra.mxu0 %v214_v14  ;;  %v7876_v25 = vld [vmem:[%s9531_s25] ss:$0 sm:$0xff]  ;;  %v9733_v40 = vld [vmem:[%s9516_s13 + $0x8] sm:$0xff]  ;;  %s9485_s28 = smov 120   ;;  %s9486_s1 = smov 56   ;;  %vm1136_vm5 = vcmask 195584  }
  0x41   :  { %8513 = vmatprep.subr.mxu0 %v213_v15  ;;  %v7877_v27 = vld [vmem:[%s9536_s29] ss:$0 sm:$0xff]  ;;  %vm154_vm2 = vcmp.gt.f32.partialorder %v9733_v40, 0.5  ;;  %s9487_s2 = smov 80   ;;  %s9488_s7 = smov 112   ;;  %vm1372_vm6 = vcmask 523264  }
  0x42   :  { %8514 = vmatpush3.msra.mxu0 %v213_v15  ;;  %v9736_v41 = vld [vmem:[%s9516_s13] sm:$0xff]  ;;  %s9484_s13 = smov 88   ;;  %s9489_s10 = smov 48  }
  0x43   :  { %172 = vadd.xlane.f32.xlu0 %v171_v3  ;;  %8515 = vmatprep.subr.mxu0 %v212_v16  ;;  %vm153_vm4 = vcmp.gt.f32.partialorder %v9736_v41, 0.5  ;;  %s9490_s11 = smov 72   ;;  %s9491_s15 = smov 104  }
  0x44   :  { %8516 = vmatpush3.msra.mxu0 %v212_v16  ;;  %s9492_s16 = smov 40   ;;  %s9493_s18 = smov 8  }
  0x45   :  { %8517 = vmatprep.subr.mxu0 %v211_v17  ;;  %s10968_s22 = smov 16   ;;  %s10966_s23 = smov 24  }
  0x46   :  { %8518 = vmatpush3.msra.mxu0 %v211_v17  ;;  %s11000_s26 = sld [smem:[#allocation16_spill]] }
  0xc8   :  { %v170_v4 = vpop.xlane.xlu0 %169 }
  0xc9   :  { %v175_v5 = vmul.f32 0.03125, %v170_v4 }
  0xcb   :  { %v177_v6 = vsub.f32 %v9689_v0, %v175_v5 }
  0xcc   :  { %v173_v7 = vpop.xlane.xlu0 %172 }
  0xcd   :  { %v176_v8 = vmul.f32 0.03125, %v173_v7  ;;  %v179_v9 = vmul.f32 %v177_v6, %v177_v6 }
  0xcf   :  { %v178_v10 = vsub.f32 %v9692_v1, %v176_v8  ;;  %v181_v11 = vsel %vm167_vm0, %v179_v9, 0.0 }
  0xd0   :  { %182 = vadd.xlane.f32.xlu1 %v181_v11 }
  0xd1   :  { %v180_v12 = vmul.f32 %v178_v10, %v178_v10 }
  0xd3   :  { %v184_v13 = vsel %vm167_vm0, %v180_v12, 0.0 }
  0xd4   :  { %185 = vadd.xlane.f32.xlu1 %v184_v13 }
 0x159   :  { %v183_v18 = vpop.xlane.xlu1 %182 }
 0x15a   :  { %v187_v19 = vmul.f32 0.03125, %v183_v18 }
 0x15c   :  { %v189_v20 = vadd.f32 1e-06, %v187_v19 }
 0x15d   :  { %v186_v21 = vpop.xlane.xlu1 %185 }
 0x15e   :  { %9184 = vrsqrt.f32 %v189_v20  ;;  %v188_v22 = vmul.f32 0.03125, %v186_v21 }
 0x160   :  { %v190_v23 = vadd.f32 1e-06, %v188_v22 }
 0x162   :  { %9186 = vrsqrt.f32 %v190_v23 }
 0x16b   :  { %v9185_v24 = vpop.eup %9184 }
 0x16c   :  { %v193_v26 = vmul.f32 %v9185_v24, %v177_v6 }
 0x16e   :  { %v201_v28 = vmul.f32 %v7876_v25, %v193_v26 }
 0x16f   :  { %v9187_v29 = vpop.eup %9186 }
 0x170   :  { %v194_v30 = vmul.f32 %v9187_v29, %v178_v10  ;;  %v209_v31 = vadd.f32 %v7877_v27, %v201_v28 }
 0x172   :  { %v202_v32 = vmul.f32 %v7876_v25, %v194_v30  ;;  %8519 = vmatprep.mubr.msk.f32.mxu0 %vm167_vm0, %v209_v31 }
 0x174   :  { %v210_v33 = vadd.f32 %v7877_v27, %v202_v32 }
 0x176   :  { %8520 = vmatmul.mubr.msk.f32.vlgmr.msra.gmra.mxu0 %vm167_vm0, %v210_v33 }
 0x236   :  { %v9710_v34 = vpop.f32.mrf.mxu0 }
 0x237   :  { %302 = vrot.lane.b32.xlu0 %v9710_v34, %s9482_s0  ;;  %v9728_v39 = vmul.f32 0.35355338, %v9710_v34 }
 0x238   :  { %v9714_v35 = vpop.f32.mrf.mxu0 }
 0x239   :  { %300 = vrot.lane.b32.xlu1 %v9714_v35, %s9482_s0  ;;  %v9719_v36 = vmul.f32 0.35355338, %v9714_v35 }
 0x23b   :  { %8526 = vmatprep.mubr.msk.f32.mxu1 %vm304_vm1, %v9719_v36 }
 0x2a9   :  { %v303_v37 = vpop.permute.xlu0 %302 }
 0x2aa   :  { %8522 = vmatprep.subr.msk.mxu1 %vm304_vm1, %v303_v37 }
 0x2ab   :  { %8523 = vmatpush3.xpose.msk.msra.mxu1 %vm304_vm1, %v303_v37  ;;  %v301_v38 = vpop.permute.xlu1 %300 }
 0x2ac   :  { %8524 = vmatprep.subr.msk.mxu1 %vm304_vm1, %v301_v38 }
 0x2af   :  { %8525 = vmatpush3.xpose.msk.msra.mxu1 %vm304_vm1, %v301_v38 }
 0x2b2   :  { %8527 = vmatmul.mubr.msk.f32.vlgmr.msra.gmra.mxu1 %vm304_vm1, %v9728_v39 }
 0x372   :  { %v8528_v42 = vpop.f32.mrf.mxu1 }
 0x373   :  { %v391_v43 = vsel %vm154_vm2, -1e+18, %v8528_v42 }
 0x374   :  { %v381_v44 = vpop.f32.mrf.mxu1  ;;  %v396_v45 = vsel %vm392_vm3, %v391_v43, -inf }
 0x375   :  { %v390_v46 = vsel %vm153_vm4, -1e+18, %v381_v44  ;;  %397 = vmax.xlane.f32.xlu0 %v396_v45 }
 0x376   :  { %v393_v47 = vsel %vm392_vm3, %v390_v46, -inf }
 0x377   :  { %394 = vmax.xlane.f32.xlu1 %v393_v47 }
 0x3fe   :  { %v398_v48 = vpop.xlane.xlu0 %397 }
 0x3ff   :  { %v400_v49 = vsub.f32 %v391_v43, %v398_v48 }
 0x400   :  { %v395_v50 = vpop.xlane.xlu1 %394 }
 0x401   :  { %v403_v51 = vmul.f32 1.442695, %v400_v49  ;;  %v399_v52 = vsub.f32 %v390_v46, %v395_v50 }
 0x403   :  { %9188 = vpow2.f32 %v403_v51  ;;  %v401_v53 = vmul.f32 1.442695, %v399_v52 }
 0x405   :  { %9190 = vpow2.f32 %v401_v53 }
 0x410   :  { %v9189_v54 = vpop.eup %9188 }
 0x411   :  { %v408_v55 = vsel %vm392_vm3, %v9189_v54, 0.0 }
 0x412   :  { %v9191_v56 = vpop.eup %9190  ;;  %409 = vadd.xlane.f32.xlu1 %v408_v55 }
 0x413   :  { %v405_v57 = vsel %vm392_vm3, %v9191_v56, 0.0 }
 0x414   :  { %406 = vadd.xlane.f32.xlu0 %v405_v57 }
 0x423   :  { %415 = vrot.lane.b32.xlu1 %v9714_v35, %s9483_s5 }
 0x427   :  { %508 = vrot.lane.b32.xlu1 %v9710_v34, %s9484_s13 }
 0x42a   :  { %417 = vrot.lane.b32.xlu0 %v9710_v34, %s9483_s5 }
 0x42b   :  { %506 = vrot.lane.b32.xlu1 %v9714_v35, %s9484_s13 }
 0x42e   :  { %502 = vrot.lane.b32.xlu0 %v9719_v36, %s9485_s28 }
 0x42f   :  { %504 = vrot.lane.b32.xlu1 %v9728_v39, %s9485_s28 }
 0x49b   :  { %v410_v58 = vpop.xlane.xlu1 %409 }
 0x49c   :  { %9192 = vrcp.f32 %v410_v58 }
 0x49d   :  { %v407_v59 = vpop.xlane.xlu0 %406 }
 0x49e   :  { %9194 = vrcp.f32 %v407_v59 }
 0x49f   :  { %v416_v60 = vpop.permute.xlu1 %415 }
 0x4a1   :  { %v418_v61 = vpop.permute.xlu0 %417 }
 0x4a2   :  { %8529 = vmatprep.subr.mxu1 %v418_v61 }
 0x4a3   :  { %8530 = vmatpush3.msra.mxu1 %v418_v61  ;;  %v509_v62 = vpop.permute.xlu1 %508 }
 0x4a4   :  { %8531 = vmatprep.subr.mxu1 %v416_v60 }
 0x4a5   :  { %8532 = vmatpush3.msra.mxu1 %v416_v60  ;;  %v503_v5 = vpop.permute.xlu0 %502 }
 0x4a6   :  { %8536 = vmatprep.subr.msk.mxu1 %vm304_vm1, %v509_v62 }
 0x4a7   :  { %v507_v6 = vpop.permute.xlu1 %506 }
 0x4a9   :  { %v9193_v63 = vpop.eup %9192 }
 0x4aa   :  { %v414_v4 = vmul.f32 %v9193_v63, %v9189_v54 }
 0x4ab   :  { %v9195_v2 = vpop.eup %9194  ;;  %v505_v7 = vpop.permute.xlu1 %504 }
 0x4ac   :  { %v413_v3 = vmul.f32 %v9195_v2, %v9191_v56 }
 0x4ae   :  { %8533 = vmatprep.mubr.msk.f32.mxu1 %vm392_vm3, %v413_v3 }
 0x4af   :  { %8534 = vmatmul.mubr.msk.f32.vlgmr.msra.gmra.mxu1 %vm392_vm3, %v414_v4 }
 0x4b0   :  { %8537 = vmatpush3.xpose.msk.msra.mxu1 %vm304_vm1, %v509_v62  ;;  %8540 = vmatprep.mubr.msk.f32.mxu1 %vm304_vm1, %v503_v5 }
 0x4b1   :  { %8538 = vmatprep.subr.msk.mxu1 %vm304_vm1, %v507_v6 }
 0x4b4   :  { %8539 = vmatpush3.xpose.msk.msra.mxu1 %vm304_vm1, %v507_v6 }
 0x4b7   :  { %8541 = vmatmul.mubr.msk.f32.vlgmr.msra.gmra.mxu1 %vm304_vm1, %v505_v7 }
 0x56f   :  { %v9768_v8 = vpop.f32.mrf.mxu1 }
 0x571   :  { %v9770_v9 = vpop.f32.mrf.mxu1 }
 0x577   :  { %v8542_v10 = vpop.f32.mrf.mxu1 }
 0x578   :  { %v594_v11 = vsel %vm154_vm2, -1e+18, %v8542_v10 }
 0x579   :  { %v584_v12 = vpop.f32.mrf.mxu1  ;;  %v598_v13 = vsel %vm392_vm3, %v594_v11, -inf }
 0x57a   :  { %v593_v14 = vsel %vm153_vm4, -1e+18, %v584_v12  ;;  %599 = vmax.xlane.f32.xlu1 %v598_v13 }
 0x57b   :  { %v595_v15 = vsel %vm392_vm3, %v593_v14, -inf }
 0x57c   :  { %596 = vmax.xlane.f32.xlu0 %v595_v15 }
 0x58b   :  { %617 = vrot.lane.b32.xlu1 %v9714_v35, %s9486_s1 }
 0x58f   :  { %710 = vrot.lane.b32.xlu1 %v9710_v34, %s9487_s2 }
 0x593   :  { %708 = vrot.lane.b32.xlu1 %v9714_v35, %s9487_s2 }
 0x597   :  { %706 = vrot.lane.b32.xlu1 %v9728_v39, %s9488_s7 }
 0x603   :  { %v600_v16 = vpop.xlane.xlu1 %599 }
 0x604   :  { %v602_v17 = vsub.f32 %v594_v11, %v600_v16 }
 0x605   :  { %v597_v18 = vpop.xlane.xlu0 %596 }
 0x606   :  { %v605_v19 = vmul.f32 1.442695, %v602_v17  ;;  %v601_v20 = vsub.f32 %v593_v14, %v597_v18 }
 0x607   :  { %v618_v28 = vpop.permute.xlu1 %617 }
 0x608   :  { %9196 = vpow2.f32 %v605_v19  ;;  %v603_v21 = vmul.f32 1.442695, %v601_v20 }
 0x60a   :  { %9198 = vpow2.f32 %v603_v21 }
 0x60b   :  { %v711_v30 = vpop.permute.xlu1 %710 }
 0x60f   :  { %v709_v42 = vpop.permute.xlu1 %708 }
 0x613   :  { %v707_v43 = vpop.permute.xlu1 %706 }
 0x615   :  { %v9197_v22 = vpop.eup %9196 }
 0x616   :  { %v610_v23 = vsel %vm392_vm3, %v9197_v22, 0.0 }
 0x617   :  { %v9199_v24 = vpop.eup %9198  ;;  %611 = vadd.xlane.f32.xlu0 %v610_v23 }
 0x618   :  { %v607_v25 = vsel %vm392_vm3, %v9199_v24, 0.0 }
 0x61b   :  { %608 = vadd.xlane.f32.xlu0 %v607_v25 }
 0x631   :  { %619 = vrot.lane.b32.xlu0 %v9710_v34, %s9486_s1 }
 0x635   :  { %704 = vrot.lane.b32.xlu0 %v9719_v36, %s9488_s7 }
 0x6a0   :  { %v612_v26 = vpop.xlane.xlu0 %611 }
 0x6a1   :  { %9200 = vrcp.f32 %v612_v26 }
 0x6a4   :  { %v609_v27 = vpop.xlane.xlu0 %608 }
 0x6a5   :  { %9202 = vrcp.f32 %v609_v27 }
 0x6a8   :  { %v620_v29 = vpop.permute.xlu0 %619 }
 0x6a9   :  { %8543 = vmatprep.subr.mxu0 %v620_v29 }
 0x6aa   :  { %8544 = vmatpush3.msra.mxu0 %v620_v29 }
 0x6ab   :  { %8545 = vmatprep.subr.mxu0 %v618_v28 }
 0x6ac   :  { %8546 = vmatpush3.msra.mxu0 %v618_v28  ;;  %v705_v38 = vpop.permute.xlu0 %704 }
 0x6ad   :  { %8550 = vmatprep.subr.msk.mxu0 %vm304_vm1, %v711_v30 }
 0x6ae   :  { %v9201_v31 = vpop.eup %9200 }
 0x6af   :  { %v616_v37 = vmul.f32 %v9201_v31, %v9197_v22 }
 0x6b2   :  { %v9203_v32 = vpop.eup %9202 }
 0x6b3   :  { %v615_v33 = vmul.f32 %v9203_v32, %v9199_v24 }
 0x6b5   :  { %8547 = vmatprep.mubr.msk.f32.mxu0 %vm392_vm3, %v615_v33 }
 0x6b6   :  { %8548 = vmatmul.mubr.msk.f32.vlgmr.msra.gmra.mxu0 %vm392_vm3, %v616_v37 }
 0x6b7   :  { %8551 = vmatpush3.xpose.msk.msra.mxu0 %vm304_vm1, %v711_v30  ;;  %8554 = vmatprep.mubr.msk.f32.mxu0 %vm304_vm1, %v705_v38 }
 0x6b8   :  { %8552 = vmatprep.subr.msk.mxu0 %vm304_vm1, %v709_v42 }
 0x6bb   :  { %8553 = vmatpush3.xpose.msk.msra.mxu0 %vm304_vm1, %v709_v42  ;;  %v1142_v42 = vld [vmem:[%s9546_s8 + $0x18] sm:$0xff] }
 0x6be   :  { %8555 = vmatmul.mubr.msk.f32.vlgmr.msra.gmra.mxu0 %vm304_vm1, %v707_v43  ;;  %v1141_v43 = vld [vmem:[%s9546_s8 + $0x10] sm:$0xff] }
 0x776   :  { %v9800_v44 = vpop.f32.mrf.mxu0 }
 0x778   :  { %v9802_v45 = vpop.f32.mrf.mxu0 }
 0x77e   :  { %v8556_v46 = vpop.f32.mrf.mxu0 }
 0x77f   :  { %v796_v47 = vsel %vm154_vm2, -1e+18, %v8556_v46 }
 0x780   :  { %v786_v48 = vpop.f32.mrf.mxu0  ;;  %v800_v49 = vsel %vm392_vm3, %v796_v47, -inf }
 0x781   :  { %v795_v50 = vsel %vm153_vm4, -1e+18, %v786_v48  ;;  %801 = vmax.xlane.f32.xlu1 %v800_v49 }
 0x782   :  { %v797_v51 = vsel %vm392_vm3, %v795_v50, -inf }
 0x783   :  { %798 = vmax.xlane.f32.xlu0 %v797_v51 }
 0x792   :  { %819 = vrot.lane.b32.xlu1 %v9714_v35, %s9489_s10 }
 0x796   :  { %912 = vrot.lane.b32.xlu1 %v9710_v34, %s9490_s11 }
 0x79a   :  { %910 = vrot.lane.b32.xlu1 %v9714_v35, %s9490_s11 }
 0x79e   :  { %908 = vrot.lane.b32.xlu1 %v9728_v39, %s9491_s15 }
 0x80a   :  { %v802_v52 = vpop.xlane.xlu1 %801 }
 0x80b   :  { %v804_v53 = vsub.f32 %v796_v47, %v802_v52 }
 0x80c   :  { %v799_v54 = vpop.xlane.xlu0 %798 }
 0x80d   :  { %v807_v55 = vmul.f32 1.442695, %v804_v53  ;;  %v803_v56 = vsub.f32 %v795_v50, %v799_v54 }
 0x80e   :  { %v820_v63 = vpop.permute.xlu1 %819 }
 0x80f   :  { %9204 = vpow2.f32 %v807_v55  ;;  %v805_v57 = vmul.f32 1.442695, %v803_v56 }
 0x811   :  { %9206 = vpow2.f32 %v805_v57 }
 0x812   :  { %v913_v3 = vpop.permute.xlu1 %912 }
 0x816   :  { %v911_v10 = vpop.permute.xlu1 %910 }
 0x81a   :  { %v909_v11 = vpop.permute.xlu1 %908 }
 0x81c   :  { %v9205_v58 = vpop.eup %9204 }
 0x81d   :  { %v812_v59 = vsel %vm392_vm3, %v9205_v58, 0.0 }
 0x81e   :  { %v9207_v60 = vpop.eup %9206  ;;  %813 = vadd.xlane.f32.xlu0 %v812_v59 }
 0x81f   :  { %v809_v61 = vsel %vm392_vm3, %v9207_v60, 0.0 }
 0x822   :  { %810 = vadd.xlane.f32.xlu0 %v809_v61 }
 0x838   :  { %821 = vrot.lane.b32.xlu0 %v9710_v34, %s9489_s10 }
 0x83c   :  { %906 = vrot.lane.b32.xlu0 %v9719_v36, %s9491_s15 }
 0x8a7   :  { %v814_v39 = vpop.xlane.xlu0 %813 }
 0x8a8   :  { %9208 = vrcp.f32 %v814_v39 }
 0x8ab   :  { %v811_v62 = vpop.xlane.xlu0 %810 }
 0x8ac   :  { %9210 = vrcp.f32 %v811_v62 }
 0x8af   :  { %v822_v2 = vpop.permute.xlu0 %821 }
 0x8b0   :  { %8557 = vmatprep.subr.mxu1 %v822_v2 }
 0x8b1   :  { %8558 = vmatpush3.msra.mxu1 %v822_v2 }
 0x8b2   :  { %8559 = vmatprep.subr.mxu1 %v820_v63 }
 0x8b3   :  { %8560 = vmatpush3.msra.mxu1 %v820_v63  ;;  %v907_v36 = vpop.permute.xlu0 %906 }
 0x8b4   :  { %8564 = vmatprep.subr.msk.mxu1 %vm304_vm1, %v913_v3 }
 0x8b5   :  { %v9209_v4 = vpop.eup %9208 }
 0x8b6   :  { %v818_v7 = vmul.f32 %v9209_v4, %v9205_v58 }
 0x8b9   :  { %v9211_v5 = vpop.eup %9210 }
 0x8ba   :  { %v817_v6 = vmul.f32 %v9211_v5, %v9207_v60 }
 0x8bc   :  { %8561 = vmatprep.mubr.msk.f32.mxu1 %vm392_vm3, %v817_v6 }
 0x8bd   :  { %8562 = vmatmul.mubr.msk.f32.vlgmr.msra.gmra.mxu1 %vm392_vm3, %v818_v7 }
 0x8be   :  { %8565 = vmatpush3.xpose.msk.msra.mxu1 %vm304_vm1, %v913_v3  ;;  %8568 = vmatprep.mubr.msk.f32.mxu1 %vm304_vm1, %v907_v36 }
 0x8bf   :  { %8566 = vmatprep.subr.msk.mxu1 %vm304_vm1, %v911_v10 }
 0x8c2   :  { %8567 = vmatpush3.xpose.msk.msra.mxu1 %vm304_vm1, %v911_v10  ;;  %v1273_v10 = vld [vmem:[%s9561_s24 + $0x18] sm:$0xff] }
 0x8c3   :  { %8589 = vmatprep.subr.mxu1 %v1273_v10 }
 0x8c5   :  { %8569 = vmatmul.mubr.msk.f32.vlgmr.msra.gmra.mxu1 %vm304_vm1, %v909_v11  ;;  %v1272_v11 = vld [vmem:[%s9561_s24 + $0x10] sm:$0xff] }
 0x8c6   :  { %8590 = vmatpush3.msra.mxu1 %v1273_v10 }
 0x8c7   :  { %8591 = vmatprep.subr.mxu1 %v1272_v11 }
 0x8c8   :  { %8592 = vmatpush3.msra.mxu1 %v1272_v11 }
 0x97d   :  { %v8563_v12 = vpop.f32.mrf.mxu1 }
 0x97f   :  { %v897_v13 = vpop.f32.mrf.mxu1 }
 0x985   :  { %v8570_v14 = vpop.f32.mrf.mxu1 }
 0x986   :  { %v998_v15 = vsel %vm154_vm2, -1e+18, %v8570_v14  ;;  %v1371_v14 = vld [vmem:[%s9571_s6 + $0x38] sm:$0xff] }
 0x987   :  { %v988_v16 = vpop.f32.mrf.mxu1  ;;  %v1002_v17 = vsel %vm392_vm3, %v998_v15, -inf }
 0x988   :  { %v997_v18 = vsel %vm153_vm4, -1e+18, %v988_v16  ;;  %1003 = vmax.xlane.f32.xlu1 %v1002_v17  ;;  %v1369_v16 = vld [vmem:[%s9571_s6 + $0x28] sm:$0xff]  ;;  %v1368_v17 = vld [vmem:[%s9571_s6 + $0x20] sm:$0xff] }
 0x989   :  { %v999_v19 = vsel %vm392_vm3, %v997_v18, -inf }
 0x98a   :  { %1000 = vmax.xlane.f32.xlu0 %v999_v19 }
 0x999   :  { %1021 = vrot.lane.b32.xlu1 %v9714_v35, %s9492_s16 }
 0x99d   :  { %1110 = vrot.lane.b32.xlu1 %v9802_v45, %s9493_s18  ;;  %v1139_v45 = vld [vmem:[%s9546_s8] sm:$0xff] }
 0x9a1   :  { %1112 = vrot.lane.b32.xlu1 %v9800_v44, %s9493_s18  ;;  %v1140_v44 = vld [vmem:[%s9546_s8 + $0x8] sm:$0xff] }
 0x9a5   :  { %1120 = vrot.lane.b32.xlu1 %v8563_v12, %s10968_s22  ;;  %v1271_v12 = vld [vmem:[%s9561_s24 + $0x8] sm:$0xff] }
 0x9a6   :  { %8593 = vmatprep.subr.mxu1 %v1271_v12 }
 0x9a7   :  { %8594 = vmatpush3.msra.mxu1 %v1271_v12 }
 0xa11   :  { %v1004_v20 = vpop.xlane.xlu1 %1003 }
 0xa12   :  { %v1006_v21 = vsub.f32 %v998_v15, %v1004_v20  ;;  %v1370_v15 = vld [vmem:[%s9571_s6 + $0x30] sm:$0xff] }
 0xa13   :  { %v1001_v22 = vpop.xlane.xlu0 %1000 }
 0xa14   :  { %v1009_v23 = vmul.f32 1.442695, %v1006_v21  ;;  %v1005_v24 = vsub.f32 %v997_v18, %v1001_v22 }
 0xa15   :  { %v1022_v32 = vpop.permute.xlu1 %1021 }
 0xa16   :  { %9212 = vpow2.f32 %v1009_v23  ;;  %v1007_v25 = vmul.f32 1.442695, %v1005_v24 }
 0xa18   :  { %9214 = vpow2.f32 %v1007_v25  ;;  %v7906_v25 = vld [vmem:[%s9551_s14] ss:$0 sm:$0xff] }
 0xa19   :  { %v1111_v48 = vpop.permute.xlu1 %1110 }
 0xa1a   :  { %v1132_v52 = vsel %vm304_vm1, %v9770_v9, %v1111_v48 }
 0xa1d   :  { %v1113_v49 = vpop.permute.xlu1 %1112 }
 0xa1e   :  { %v1133_v54 = vsel %vm304_vm1, %v9768_v8, %v1113_v49 }
 0xa21   :  { %v1121_v50 = vpop.permute.xlu1 %1120 }
 0xa22   :  { %v1135_v57 = vsel %vm392_vm3, %v1133_v54, %v1121_v50  ;;  %v7913_v50 = vld [vmem:[%s9576_s12] ss:$0 sm:$0xff] }
 0xa23   :  { %v9213_v26 = vpop.eup %9212 }
 0xa24   :  { %v1014_v35 = vsel %vm392_vm3, %v9213_v26, 0.0 }
 0xa25   :  { %v9215_v27 = vpop.eup %9214  ;;  %1015 = vadd.xlane.f32.xlu0 %v1014_v35  ;;  %v7907_v35 = vld [vmem:[%s9556_s19] ss:$0 sm:$0xff] }
 0xa26   :  { %v1011_v28 = vsel %vm392_vm3, %v9215_v27, 0.0 }
 0xa29   :  { %1012 = vadd.xlane.f32.xlu0 %v1011_v28 }
 0xa3f   :  { %1023 = vrot.lane.b32.xlu0 %v9710_v34, %s9492_s16 }
 0xa43   :  { %1118 = vrot.lane.b32.xlu0 %v897_v13, %s10968_s22  ;;  %v1270_v13 = vld [vmem:[%s9561_s24] sm:$0xff] }
 0xa44   :  { %8595 = vmatprep.subr.mxu1 %v1270_v13 }
 0xa45   :  { %8596 = vmatpush3.msra.mxu1 %v1270_v13  ;;  %v7916_v13 = vld [vmem:[%s9531_s25 + $0x1] ss:$0 sm:$0xff]  ;;  %s10990_s25 = sld [smem:[#allocation10_spill]] }
 0xaae   :  { %v1016_v29 = vpop.xlane.xlu0 %1015 }
 0xaaf   :  { %9216 = vrcp.f32 %v1016_v29 }
 0xab2   :  { %v1013_v30 = vpop.xlane.xlu0 %1012 }
 0xab3   :  { %9218 = vrcp.f32 %v1013_v30 }
 0xab6   :  { %v1024_v31 = vpop.permute.xlu0 %1023 }
 0xab7   :  { %8571 = vmatprep.subr.mxu0 %v1024_v31 }
 0xab8   :  { %8572 = vmatpush3.msra.mxu0 %v1024_v31 }
 0xab9   :  { %8573 = vmatprep.subr.mxu0 %v1022_v32 }
 0xaba   :  { %8574 = vmatpush3.msra.mxu0 %v1022_v32  ;;  %v1119_v51 = vpop.permute.xlu0 %1118 }
 0xabb   :  { %8578 = vmatprep.subr.mxu0 %v1142_v42  ;;  %v1134_v55 = vsel %vm392_vm3, %v1132_v52, %v1119_v51 }
 0xabc   :  { %v9217_v33 = vpop.eup %9216 }
 0xabd   :  { %v1020_v34 = vmul.f32 %v9217_v33, %v9213_v26  ;;  %v1367_v33 = vld [vmem:[%s9571_s6 + $0x18] sm:$0xff] }
 0xac0   :  { %v9219_v37 = vpop.eup %9218 }
 0xac1   :  { %v1019_v38 = vmul.f32 %v9219_v37, %v9215_v27  ;;  %v1366_v37 = vld [vmem:[%s9571_s6 + $0x10] sm:$0xff] }
 0xac3   :  { %8575 = vmatprep.mubr.msk.f32.mxu0 %vm392_vm3, %v1019_v38  ;;  %v1365_v38 = vld [vmem:[%s9571_s6 + $0x8] sm:$0xff] }
 0xac4   :  { %8576 = vmatmul.mubr.msk.f32.vlgmr.msra.gmra.mxu0 %vm392_vm3, %v1020_v34  ;;  %v1364_v34 = vld [vmem:[%s9571_s6] sm:$0xff] }
 0xac5   :  { %8579 = vmatpush3.msra.mxu0 %v1142_v42  ;;  %v7908_v42 = vld [vmem:[%s9566_s30] ss:$0 sm:$0xff] }
 0xac6   :  { %8580 = vmatprep.subr.mxu0 %v1141_v43 }
 0xac7   :  { %8581 = vmatpush3.msra.mxu0 %v1141_v43 }
 0xac8   :  { %8582 = vmatprep.subr.mxu0 %v1140_v44 }
 0xac9   :  { %8583 = vmatpush3.msra.mxu0 %v1140_v44 }
 0xaca   :  { %8584 = vmatprep.subr.mxu0 %v1139_v45 }
 0xacb   :  { %8585 = vmatpush3.msra.mxu0 %v1139_v45 }
 0xacc   :  { %8600 = vmatprep.subr.mxu0 %v1371_v14 }
 0xb84   :  { %v8577_v46 = vpop.f32.mrf.mxu0 }
 0xb85   :  { %1128 = vrot.lane.b32.xlu1 %v8577_v46, %s10966_s23 }
 0xb86   :  { %v1099_v47 = vpop.f32.mrf.mxu0 }
 0xb87   :  { %1126 = vrot.lane.b32.xlu0 %v1099_v47, %s10966_s23 }
 0xbf7   :  { %v1129_v53 = vpop.permute.xlu1 %1128 }
 0xbf8   :  { %v1138_v59 = vsel %vm1136_vm5, %v1135_v57, %v1129_v53 }
 0xbf9   :  { %v1127_v56 = vpop.permute.xlu0 %1126 }
 0xbfa   :  { %v1137_v58 = vsel %vm1136_vm5, %v1134_v55, %v1127_v56 }
 0xbfb   :  { %8586 = vmatprep.mubr.msk.f32.mxu0 %vm167_vm0, %v1137_v58 }
 0xbfc   :  { %8587 = vmatmul.mubr.msk.f32.vlgmr.msra.gmra.mxu0 %vm167_vm0, %v1138_v59 }
 0xbfd   :  { %8601 = vmatpush3.msra.mxu0 %v1371_v14 }
 0xbfe   :  { %8602 = vmatprep.subr.mxu0 %v1370_v15 }
 0xbff   :  { %8603 = vmatpush3.msra.mxu0 %v1370_v15 }
 0xc00   :  { %8604 = vmatprep.subr.mxu0 %v1369_v16 }
 0xc01   :  { %8605 = vmatpush3.msra.mxu0 %v1369_v16 }
 0xc02   :  { %8606 = vmatprep.subr.mxu0 %v1368_v17 }
 0xc03   :  { %8607 = vmatpush3.msra.mxu0 %v1368_v17 }
 0xc04   :  { %8608 = vmatprep.subr.mxu0 %v1367_v33 }
 0xc05   :  { %8609 = vmatpush3.msra.mxu0 %v1367_v33 }
 0xc06   :  { %8610 = vmatprep.subr.mxu0 %v1366_v37 }
 0xc07   :  { %8611 = vmatpush3.msra.mxu0 %v1366_v37 }
 0xc08   :  { %8612 = vmatprep.subr.mxu0 %v1365_v38 }
 0xc09   :  { %8613 = vmatpush3.msra.mxu0 %v1365_v38 }
 0xc0a   :  { %8614 = vmatprep.subr.mxu0 %v1364_v34 }
 0xc0b   :  { %8615 = vmatpush3.msra.mxu0 %v1364_v34 }
 0xcbc   :  { %v8588_v60 = vpop.f32.mrf.mxu0 }
 0xcbd   :  { %v9869_v9 = vadd.f32 %v8588_v60, %v9692_v1 }
 0xcbe   :  { %v1215_v61 = vpop.f32.mrf.mxu0 }
 0xcbf   :  { %v9872_v8 = vadd.f32 %v1215_v61, %v9689_v0  ;;  %v1231_v39 = vsel %vm167_vm0, %v9869_v9, 0.0 }
 0xcc0   :  { %1232 = vadd.xlane.f32.xlu1 %v1231_v39 }
 0xcc1   :  { %v1228_v62 = vsel %vm167_vm0, %v9872_v8, 0.0 }
 0xcc2   :  { %1229 = vadd.xlane.f32.xlu0 %v1228_v62 }
 0xd49   :  { %v1233_v63 = vpop.xlane.xlu1 %1232 }
 0xd4a   :  { %v1235_v2 = vmul.f32 0.03125, %v1233_v63 }
 0xd4b   :  { %v1230_v3 = vpop.xlane.xlu0 %1229 }
 0xd4c   :  { %v1234_v1 = vmul.f32 0.03125, %v1230_v3  ;;  %v1237_v4 = vsub.f32 %v9869_v9, %v1235_v2  ;;  %v7921_v3 = vld [vmem:[%s9541_s3 + $0x38] sm:$0xff] }
 0xd4d   :  { %8619 = vmatprep.subr.mxu1 %v7921_v3 }
 0xd4e   :  { %v1236_v0 = vsub.f32 %v9872_v8, %v1234_v1  ;;  %v1239_v7 = vmul.f32 %v1237_v4, %v1237_v4  ;;  %v7920_v1 = vld [vmem:[%s9541_s3 + $0x30] sm:$0xff] }
 0xd50   :  { %v1238_v5 = vmul.f32 %v1236_v0, %v1236_v0  ;;  %v1243_v36 = vsel %vm167_vm0, %v1239_v7, 0.0 }
 0xd52   :  { %v1240_v6 = vsel %vm167_vm0, %v1238_v5, 0.0 }
 0xd53   :  { %1241 = vadd.xlane.f32.xlu0 %v1240_v6 }
 0xd57   :  { %1244 = vadd.xlane.f32.xlu0 %v1243_v36 }
 0xddc   :  { %v1242_v18 = vpop.xlane.xlu0 %1241 }
 0xddd   :  { %v1246_v19 = vmul.f32 0.03125, %v1242_v18  ;;  %v7917_v18 = vld [vmem:[%s9536_s29 + $0x1] ss:$0 sm:$0xff]  ;;  %s10991_s29 = sld [smem:[#allocation5_spill]] }
 0xddf   :  { %v1248_v20 = vadd.f32 1e-06, %v1246_v19 }
 0xde0   :  { %v1245_v21 = vpop.xlane.xlu0 %1244 }
 0xde1   :  { %9220 = vrsqrt.f32 %v1248_v20  ;;  %v1247_v22 = vmul.f32 0.03125, %v1245_v21 }
 0xde3   :  { %v1249_v23 = vadd.f32 1e-06, %v1247_v22 }
 0xde5   :  { %9222 = vrsqrt.f32 %v1249_v23 }
 0xdee   :  { %v9221_v24 = vpop.eup %9220 }
 0xdef   :  { %v1252_v26 = vmul.f32 %v9221_v24, %v1236_v0  ;;  %v7918_v0 = vld [vmem:[%s9541_s3 + $0x20] sm:$0xff] }
 0xdf1   :  { %v1260_v27 = vmul.f32 %v7906_v25, %v1252_v26 }
 0xdf2   :  { %v9223_v28 = vpop.eup %9222 }
 0xdf3   :  { %v1253_v29 = vmul.f32 %v9223_v28, %v1237_v4  ;;  %v1268_v30 = vadd.f32 %v7907_v35, %v1260_v27  ;;  %v7919_v4 = vld [vmem:[%s9541_s3 + $0x28] sm:$0xff]  ;;  %s10992_s3 = sld [smem:[#allocation11_spill]] }
 0xdf5   :  { %v1261_v31 = vmul.f32 %v7906_v25, %v1253_v29  ;;  %8597 = vmatprep.mubr.msk.f32.mxu1 %vm167_vm0, %v1268_v30 }
 0xdf7   :  { %v1269_v32 = vadd.f32 %v7907_v35, %v1261_v31 }
 0xdf9   :  { %8598 = vmatmul.mubr.msk.f32.vlgmr.msra.gmra.mxu1 %vm167_vm0, %v1269_v32 }
 0xdfa   :  { %8620 = vmatpush3.msra.mxu1 %v7921_v3 }
 0xdfb   :  { %8621 = vmatprep.subr.mxu1 %v7920_v1 }
 0xdfc   :  { %8622 = vmatpush3.msra.mxu1 %v7920_v1 }
 0xdfd   :  { %8623 = vmatprep.subr.mxu1 %v7919_v4 }
 0xdfe   :  { %8624 = vmatpush3.msra.mxu1 %v7919_v4 }
 0xdff   :  { %8625 = vmatprep.subr.mxu1 %v7918_v0 }
 0xe00   :  { %8626 = vmatpush3.msra.mxu1 %v7918_v0 }
 0xeb9   :  { %v8599_v43 = vpop.f32.mrf.mxu1 }
 0xeba   :  { %v1359_v44 = vadd.f32 %v8599_v43, %v7908_v42 }
 0xebb   :  { %v1353_v45 = vpop.f32.mrf.mxu1 }
 0xebc   :  { %v1354_v46 = vadd.f32 %v7908_v42, %v1353_v45  ;;  %v1363_v48 = vmax.f32 %v1359_v44, 0.0 }
 0xebe   :  { %v1362_v47 = vmax.f32 %v1354_v46, 0.0 }
 0xec0   :  { %8616 = vmatprep.mubr.msk.f32.mxu0 %vm1372_vm6, %v1362_v47 }
 0xec1   :  { %8617 = vmatmul.mubr.msk.f32.vlgmr.msra.gmra.mxu0 %vm1372_vm6, %v1363_v48 }
 0xf81   :  { %v8618_v49 = vpop.f32.mrf.mxu0 }
 0xf82   :  { %v1455_v51 = vadd.f32 %v8618_v49, %v9869_v9 }
 0xf83   :  { %v1445_v52 = vpop.f32.mrf.mxu0 }
 0xf84   :  { %v9903_v53 = vadd.f32 %v7913_v50, %v1455_v51  ;;  %v1454_v54 = vadd.f32 %v1445_v52, %v9872_v8 }
 0xf86   :  { %v9906_v55 = vadd.f32 %v7913_v50, %v1454_v54  ;;  %v1472_v56 = vsel %vm167_vm0, %v9903_v53, 0.0 }
 0xf87   :  { %1473 = vadd.xlane.f32.xlu1 %v1472_v56 }
 0xf88   :  { %v1469_v57 = vsel %vm167_vm0, %v9906_v55, 0.0 }
 0xf89   :  { %1470 = vadd.xlane.f32.xlu0 %v1469_v57 }
0x1010   :  { %v1474_v58 = vpop.xlane.xlu1 %1473 }
0x1011   :  { %v1476_v59 = vmul.f32 0.03125, %v1474_v58 }
0x1012   :  { %v1471_v60 = vpop.xlane.xlu0 %1470 }
0x1013   :  { %v1478_v9 = vsub.f32 %v9903_v53, %v1476_v59  ;;  %v1475_v61 = vmul.f32 0.03125, %v1471_v60 }
0x1015   :  { %v1477_v8 = vsub.f32 %v9906_v55, %v1475_v61  ;;  %v1480_v39 = vmul.f32 %v1478_v9, %v1478_v9 }
0x1017   :  { %v1484_v62 = vsel %vm167_vm0, %v1480_v39, 0.0  ;;  %v1479_v63 = vmul.f32 %v1477_v8, %v1477_v8 }
0x1018   :  { %1485 = vadd.xlane.f32.xlu1 %v1484_v62 }
0x1019   :  { %v1481_v2 = vsel %vm167_vm0, %v1479_v63, 0.0 }
0x101a   :  { %1482 = vadd.xlane.f32.xlu0 %v1481_v2 }
0x10a1   :  { %v1486_v5 = vpop.xlane.xlu1 %1485 }
0x10a2   :  { %v1488_v6 = vmul.f32 0.03125, %v1486_v5 }
0x10a3   :  { %v1483_v7 = vpop.xlane.xlu0 %1482 }
0x10a4   :  { %v1490_v36 = vadd.f32 1e-06, %v1488_v6  ;;  %v1487_v10 = vmul.f32 0.03125, %v1483_v7 }
0x10a6   :  { %9224 = vrsqrt.f32 %v1490_v36  ;;  %v1489_v11 = vadd.f32 1e-06, %v1487_v10 }
0x10a8   :  { %9226 = vrsqrt.f32 %v1489_v11 }
0x10b3   :  { %v9225_v12 = vpop.eup %9224 }
0x10b4   :  { %v1494_v14 = vmul.f32 %v9225_v12, %v1478_v9 }
0x10b5   :  { %v9227_v15 = vpop.eup %9226 }
0x10b6   :  { %v1493_v16 = vmul.f32 %v9227_v15, %v1477_v8  ;;  %v1502_v17 = vmul.f32 %v7916_v13, %v1494_v14 }
0x10b8   :  { %v1501_v19 = vmul.f32 %v7916_v13, %v1493_v16  ;;  %v1510_v21 = vadd.f32 %v7917_v18, %v1502_v17 }
0x10ba   :  { %v1509_v20 = vadd.f32 %v7917_v18, %v1501_v19 }
0x10bc   :  { %8627 = vmatprep.mubr.msk.f32.mxu1 %vm167_vm0, %v1509_v20 }
0x10bd   :  { %8628 = vmatmul.mubr.msk.f32.vlgmr.msra.gmra.mxu1 %vm167_vm0, %v1510_v21 }
0x117d   :  { %v9924_v22 = vpop.f32.mrf.mxu1 }
0x117e   :  { %1603 = vrot.lane.b32.xlu0 %v9924_v22, %s9482_s0  ;;  %v9944_v25 = vmul.f32 0.35355338, %v9924_v22 }
0x117f   :  { %v9928_v23 = vpop.f32.mrf.mxu1 }
0x1180   :  { %1601 = vrot.lane.b32.xlu1 %v9928_v23, %s9482_s0  ;;  %v9933_v24 = vmul.f32 0.35355338, %v9928_v23 }
0x1182   :  { %1801 = vrot.lane.b32.xlu0 %v9933_v24, %s9485_s28  ;;  %8634 = vmatprep.mubr.msk.f32.mxu1 %vm304_vm1, %v9933_v24 }
0x1184   :  { %1807 = vrot.lane.b32.xlu1 %v9924_v22, %s9484_s13 }
0x1188   :  { %1805 = vrot.lane.b32.xlu1 %v9928_v23, %s9484_s13 }
0x118c   :  { %1803 = vrot.lane.b32.xlu1 %v9944_v25, %s9485_s28 }
0x11f0   :  { %v1604_v26 = vpop.permute.xlu0 %1603 }
0x11f1   :  { %8630 = vmatprep.subr.msk.mxu1 %vm304_vm1, %v1604_v26 }
0x11f2   :  { %8631 = vmatpush3.xpose.msk.msra.mxu1 %vm304_vm1, %v1604_v26  ;;  %v1602_v35 = vpop.permute.xlu1 %1601 }
0x11f3   :  { %8632 = vmatprep.subr.msk.mxu1 %vm304_vm1, %v1602_v35 }
0x11f4   :  { %v1802_v28 = vpop.permute.xlu0 %1801 }
0x11f6   :  { %8633 = vmatpush3.xpose.msk.msra.mxu1 %vm304_vm1, %v1602_v35  ;;  %v1808_v27 = vpop.permute.xlu1 %1807 }
0x11f7   :  { %8644 = vmatprep.subr.msk.mxu1 %vm304_vm1, %v1808_v27 }
0x11f9   :  { %8635 = vmatmul.mubr.msk.f32.vlgmr.msra.gmra.mxu1 %vm304_vm1, %v9944_v25 }
0x11fa   :  { %v1806_v29 = vpop.permute.xlu1 %1805  ;;  %8645 = vmatpush3.xpose.msk.msra.mxu1 %vm304_vm1, %v1808_v27  ;;  %8648 = vmatprep.mubr.msk.f32.mxu1 %vm304_vm1, %v1802_v28 }
0x11fb   :  { %8646 = vmatprep.subr.msk.mxu1 %vm304_vm1, %v1806_v29 }
0x11fe   :  { %8647 = vmatpush3.xpose.msk.msra.mxu1 %vm304_vm1, %v1806_v29  ;;  %v1804_v30 = vpop.permute.xlu1 %1803 }
0x1201   :  { %8649 = vmatmul.mubr.msk.f32.vlgmr.msra.gmra.mxu1 %vm304_vm1, %v1804_v30 }
0x12b9   :  { %v8636_v31 = vpop.f32.mrf.mxu1 }
0x12ba   :  { %v1691_v32 = vsel %vm154_vm2, -1e+18, %v8636_v31 }
0x12bb   :  { %v1681_v33 = vpop.f32.mrf.mxu1  ;;  %v1695_v37 = vsel %vm392_vm3, %v1691_v32, -inf }
0x12bc   :  { %v1690_v38 = vsel %vm153_vm4, -1e+18, %v1681_v33  ;;  %1696 = vmax.xlane.f32.xlu1 %v1695_v37 }
0x12bd   :  { %v1692_v34 = vsel %vm392_vm3, %v1690_v38, -inf }
0x12be   :  { %1693 = vmax.xlane.f32.xlu0 %v1692_v34 }
0x12c1   :  { %v8650_v42 = vpop.f32.mrf.mxu1 }
0x12c2   :  { %v1893_v46 = vsel %vm154_vm2, -1e+18, %v8650_v42 }
0x12c3   :  { %v1883_v43 = vpop.f32.mrf.mxu1  ;;  %v1897_v47 = vsel %vm392_vm3, %v1893_v46, -inf }
0x12c4   :  { %v1892_v44 = vsel %vm153_vm4, -1e+18, %v1883_v43 }
0x12c5   :  { %v1894_v45 = vsel %vm392_vm3, %v1892_v44, -inf }
0x12c6   :  { %1895 = vmax.xlane.f32.xlu0 %v1894_v45 }
0x12ca   :  { %1898 = vmax.xlane.f32.xlu0 %v1897_v47 }
0x12cd   :  { %1714 = vrot.lane.b32.xlu1 %v9928_v23, %s9483_s5 }
0x12d1   :  { %1918 = vrot.lane.b32.xlu1 %v9924_v22, %s9486_s1 }
0x12d5   :  { %1916 = vrot.lane.b32.xlu1 %v9928_v23, %s9486_s1 }
0x12e0   :  { %1716 = vrot.lane.b32.xlu0 %v9924_v22, %s9483_s5 }
0x1345   :  { %v1697_v48 = vpop.xlane.xlu1 %1696 }
0x1346   :  { %v1699_v49 = vsub.f32 %v1691_v32, %v1697_v48 }
0x1347   :  { %v1694_v50 = vpop.xlane.xlu0 %1693 }
0x1348   :  { %v1702_v51 = vmul.f32 1.442695, %v1699_v49  ;;  %v1698_v52 = vsub.f32 %v1690_v38, %v1694_v50 }
0x1349   :  { %v1715_v9 = vpop.permute.xlu1 %1714 }
0x134a   :  { %9228 = vpow2.f32 %v1702_v51  ;;  %v1700_v54 = vmul.f32 1.442695, %v1698_v52 }
0x134c   :  { %9230 = vpow2.f32 %v1700_v54 }
0x134d   :  { %v1919_v3 = vpop.permute.xlu1 %1918 }
0x134f   :  { %v1896_v56 = vpop.xlane.xlu0 %1895 }
0x1350   :  { %v1900_v57 = vsub.f32 %v1892_v44, %v1896_v56 }
0x1351   :  { %v1917_v6 = vpop.permute.xlu1 %1916 }
0x1352   :  { %v1902_v58 = vmul.f32 1.442695, %v1900_v57 }
0x1353   :  { %v1899_v59 = vpop.xlane.xlu0 %1898 }
0x1354   :  { %9232 = vpow2.f32 %v1902_v58  ;;  %v1901_v60 = vsub.f32 %v1893_v46, %v1899_v59 }
0x1356   :  { %v1904_v61 = vmul.f32 1.442695, %v1901_v60 }
0x1357   :  { %v9229_v8 = vpop.eup %9228  ;;  %v1717_v39 = vpop.permute.xlu0 %1716 }
0x1358   :  { %9234 = vpow2.f32 %v1904_v61  ;;  %8637 = vmatprep.subr.mxu0 %v1717_v39  ;;  %v1707_v62 = vsel %vm392_vm3, %v9229_v8, 0.0 }
0x1359   :  { %v9231_v63 = vpop.eup %9230  ;;  %1708 = vadd.xlane.f32.xlu1 %v1707_v62  ;;  %8638 = vmatpush3.msra.mxu0 %v1717_v39 }
0x135a   :  { %8639 = vmatprep.subr.mxu0 %v1715_v9  ;;  %v1704_v2 = vsel %vm392_vm3, %v9231_v63, 0.0 }
0x135b   :  { %1705 = vadd.xlane.f32.xlu0 %v1704_v2  ;;  %8640 = vmatpush3.msra.mxu0 %v1715_v9 }
0x135c   :  { %8651 = vmatprep.subr.mxu0 %v1919_v3 }
0x1361   :  { %v9233_v1 = vpop.eup %9232 }
0x1362   :  { %v1906_v4 = vsel %vm392_vm3, %v9233_v1, 0.0 }
0x1363   :  { %1907 = vadd.xlane.f32.xlu0 %v1906_v4 }
0x1365   :  { %v9235_v0 = vpop.eup %9234 }
0x1366   :  { %v1909_v5 = vsel %vm392_vm3, %v9235_v0, 0.0 }
0x1367   :  { %1910 = vadd.xlane.f32.xlu1 %v1909_v5 }
0x1378   :  { %2007 = vrot.lane.b32.xlu1 %v9928_v23, %s9487_s2 }
0x1379   :  { %2009 = vrot.lane.b32.xlu0 %v9924_v22, %s9487_s2 }
0x137c   :  { %2005 = vrot.lane.b32.xlu1 %v9944_v25, %s9488_s7 }
0x137d   :  { %2003 = vrot.lane.b32.xlu0 %v9933_v24, %s9488_s7 }
0x13e2   :  { %v1709_v7 = vpop.xlane.xlu1 %1708 }
0x13e3   :  { %9236 = vrcp.f32 %v1709_v7 }
0x13e4   :  { %v1706_v36 = vpop.xlane.xlu0 %1705 }
0x13e5   :  { %9238 = vrcp.f32 %v1706_v36 }
0x13ec   :  { %v1908_v10 = vpop.xlane.xlu0 %1907 }
0x13ed   :  { %9240 = vrcp.f32 %v1908_v10 }
0x13f0   :  { %v1911_v11 = vpop.xlane.xlu1 %1910  ;;  %v9237_v12 = vpop.eup %9236 }
0x13f1   :  { %9242 = vrcp.f32 %v1911_v11  ;;  %v1713_v15 = vmul.f32 %v9237_v12, %v9229_v8  ;;  %v2010_v16 = vpop.permute.xlu0 %2009 }
0x13f2   :  { %v9239_v13 = vpop.eup %9238 }
0x13f3   :  { %v1712_v14 = vmul.f32 %v9239_v13, %v9231_v63 }
0x13f4   :  { %v2008_v26 = vpop.permute.xlu1 %2007 }
0x13f5   :  { %8641 = vmatprep.mubr.msk.f32.mxu0 %vm392_vm3, %v1712_v14  ;;  %v2004_v21 = vpop.permute.xlu0 %2003 }
0x13f6   :  { %8642 = vmatmul.mubr.msk.f32.vlgmr.msra.gmra.mxu0 %vm392_vm3, %v1713_v15 }
0x13f7   :  { %8652 = vmatpush3.msra.mxu0 %v1919_v3 }
0x13f8   :  { %8653 = vmatprep.subr.mxu0 %v1917_v6  ;;  %v2006_v35 = vpop.permute.xlu1 %2005 }
0x13f9   :  { %8654 = vmatpush3.msra.mxu0 %v1917_v6 }
0x13fa   :  { %v9241_v17 = vpop.eup %9240  ;;  %8658 = vmatprep.subr.msk.mxu0 %vm304_vm1, %v2010_v16 }
0x13fb   :  { %v1914_v18 = vmul.f32 %v9241_v17, %v9233_v1 }
0x13fd   :  { %8655 = vmatprep.mubr.msk.f32.mxu0 %vm392_vm3, %v1914_v18 }
0x13fe   :  { %v9243_v19 = vpop.eup %9242 }
0x13ff   :  { %v1915_v20 = vmul.f32 %v9243_v19, %v9235_v0 }
0x1401   :  { %8656 = vmatmul.mubr.msk.f32.vlgmr.msra.gmra.mxu0 %vm392_vm3, %v1915_v20  ;;  %v7951_v20 = vld [vmem:[%s9546_s8 + $0x38] sm:$0xff] }
0x1402   :  { %8659 = vmatpush3.xpose.msk.msra.mxu0 %vm304_vm1, %v2010_v16  ;;  %8662 = vmatprep.mubr.msk.f32.mxu0 %vm304_vm1, %v2004_v21  ;;  %v7950_v21 = vld [vmem:[%s9546_s8 + $0x30] sm:$0xff] }
0x1403   :  { %8660 = vmatprep.subr.msk.mxu0 %vm304_vm1, %v2008_v26 }
0x1406   :  { %8661 = vmatpush3.xpose.msk.msra.mxu0 %vm304_vm1, %v2008_v26  ;;  %v7949_v26 = vld [vmem:[%s9546_s8 + $0x28] sm:$0xff] }
0x1409   :  { %8663 = vmatmul.mubr.msk.f32.vlgmr.msra.gmra.mxu0 %vm304_vm1, %v2006_v35  ;;  %v7948_v35 = vld [vmem:[%s9546_s8 + $0x20] sm:$0xff]  ;;  %s10993_s8 = sld [smem:[#allocation15_spill]] }
0x14b6   :  { %v10002_v27 = vpop.f32.mrf.mxu0 }
0x14b8   :  { %v10004_v28 = vpop.f32.mrf.mxu0 }
0x14c1   :  { %v10006_v29 = vpop.f32.mrf.mxu0 }
0x14c3   :  { %v10008_v30 = vpop.f32.mrf.mxu0 }
0x14c9   :  { %v8664_v31 = vpop.f32.mrf.mxu0 }
0x14ca   :  { %v2095_v32 = vsel %vm154_vm2, -1e+18, %v8664_v31 }
0x14cb   :  { %v2085_v33 = vpop.f32.mrf.mxu0  ;;  %v2099_v37 = vsel %vm392_vm3, %v2095_v32, -inf }
0x14cc   :  { %v2094_v38 = vsel %vm153_vm4, -1e+18, %v2085_v33  ;;  %2100 = vmax.xlane.f32.xlu1 %v2099_v37 }
0x14cd   :  { %v2096_v34 = vsel %vm392_vm3, %v2094_v38, -inf }
0x14ce   :  { %2097 = vmax.xlane.f32.xlu0 %v2096_v34 }
0x14dd   :  { %2118 = vrot.lane.b32.xlu1 %v9928_v23, %s9489_s10 }
0x14e1   :  { %2211 = vrot.lane.b32.xlu1 %v9924_v22, %s9490_s11 }
0x14e5   :  { %2209 = vrot.lane.b32.xlu1 %v9928_v23, %s9490_s11 }
0x14e9   :  { %2207 = vrot.lane.b32.xlu1 %v9944_v25, %s9491_s15 }
0x1555   :  { %v2101_v42 = vpop.xlane.xlu1 %2100 }
0x1556   :  { %v2103_v43 = vsub.f32 %v2095_v32, %v2101_v42 }
0x1557   :  { %v2098_v44 = vpop.xlane.xlu0 %2097 }
0x1558   :  { %v2106_v45 = vmul.f32 1.442695, %v2103_v43  ;;  %v2102_v46 = vsub.f32 %v2094_v38, %v2098_v44 }
0x1559   :  { %v2119_v54 = vpop.permute.xlu1 %2118 }
0x155a   :  { %9244 = vpow2.f32 %v2106_v45  ;;  %v2104_v47 = vmul.f32 1.442695, %v2102_v46 }
0x155c   :  { %9246 = vpow2.f32 %v2104_v47 }
0x155d   :  { %v2212_v57 = vpop.permute.xlu1 %2211 }
0x1561   :  { %v2210_v61 = vpop.permute.xlu1 %2209 }
0x1565   :  { %v2208_v8 = vpop.permute.xlu1 %2207 }
0x1567   :  { %v9245_v48 = vpop.eup %9244 }
0x1568   :  { %v2111_v49 = vsel %vm392_vm3, %v9245_v48, 0.0 }
0x1569   :  { %v9247_v50 = vpop.eup %9246  ;;  %2112 = vadd.xlane.f32.xlu0 %v2111_v49 }
0x156a   :  { %v2108_v51 = vsel %vm392_vm3, %v9247_v50, 0.0 }
0x156d   :  { %2109 = vadd.xlane.f32.xlu0 %v2108_v51  ;;  %v10083_v51 = vld [vmem:[%s9511_s9] sm:$0xff] }
0x1583   :  { %2120 = vrot.lane.b32.xlu0 %v9924_v22, %s9489_s10 }
0x1587   :  { %2205 = vrot.lane.b32.xlu0 %v9933_v24, %s9491_s15 }
0x15f2   :  { %v2113_v25 = vpop.xlane.xlu0 %2112 }
0x15f3   :  { %9248 = vrcp.f32 %v2113_v25 }
0x15f6   :  { %v2110_v52 = vpop.xlane.xlu0 %2109 }
0x15f7   :  { %9250 = vrcp.f32 %v2110_v52  ;;  %v2817_v52 = vsel %vm167_vm0, %v10083_v51, 0.0 }
0x15fa   :  { %v2121_v56 = vpop.permute.xlu0 %2120 }
0x15fb   :  { %8665 = vmatprep.subr.mxu1 %v2121_v56 }
0x15fc   :  { %8666 = vmatpush3.msra.mxu1 %v2121_v56 }
0x15fd   :  { %8667 = vmatprep.subr.mxu1 %v2119_v54 }
0x15fe   :  { %8668 = vmatpush3.msra.mxu1 %v2119_v54  ;;  %v2206_v24 = vpop.permute.xlu0 %2205  ;;  %v10090_v54 = vld [vmem:[%s9511_s9 + $0x8] sm:$0xff]  ;;  %s10989_s9 = sld [smem:[#allocation9_spill]] }
0x15ff   :  { %8672 = vmatprep.subr.msk.mxu1 %vm304_vm1, %v2212_v57 }
0x1600   :  { %v9249_v58 = vpop.eup %9248 }
0x1601   :  { %v2117_v9 = vmul.f32 %v9249_v58, %v9245_v48 }
0x1604   :  { %v9251_v59 = vpop.eup %9250 }
0x1605   :  { %v2116_v60 = vmul.f32 %v9251_v59, %v9247_v50 }
0x1607   :  { %8669 = vmatprep.mubr.msk.f32.mxu1 %vm392_vm3, %v2116_v60 }
0x1608   :  { %8670 = vmatmul.mubr.msk.f32.vlgmr.msra.gmra.mxu1 %vm392_vm3, %v2117_v9 }
0x1609   :  { %8673 = vmatpush3.xpose.msk.msra.mxu1 %vm304_vm1, %v2212_v57  ;;  %8676 = vmatprep.mubr.msk.f32.mxu1 %vm304_vm1, %v2206_v24 }
0x160a   :  { %8674 = vmatprep.subr.msk.mxu1 %vm304_vm1, %v2210_v61 }
0x160d   :  { %8675 = vmatpush3.xpose.msk.msra.mxu1 %vm304_vm1, %v2210_v61 }
0x1610   :  { %8677 = vmatmul.mubr.msk.f32.vlgmr.msra.gmra.mxu1 %vm304_vm1, %v2208_v8 }
0x16c8   :  { %v8671_v39 = vpop.f32.mrf.mxu1 }
0x16ca   :  { %v2196_v62 = vpop.f32.mrf.mxu1 }
0x16d0   :  { %v8678_v63 = vpop.f32.mrf.mxu1 }
0x16d1   :  { %v2297_v2 = vsel %vm154_vm2, -1e+18, %v8678_v63 }
0x16d2   :  { %v2287_v3 = vpop.f32.mrf.mxu1  ;;  %v2301_v1 = vsel %vm392_vm3, %v2297_v2, -inf }
0x16d3   :  { %v2296_v4 = vsel %vm153_vm4, -1e+18, %v2287_v3  ;;  %2302 = vmax.xlane.f32.xlu1 %v2301_v1 }
0x16d4   :  { %v2298_v0 = vsel %vm392_vm3, %v2296_v4, -inf }
0x16d5   :  { %2299 = vmax.xlane.f32.xlu0 %v2298_v0 }
0x16e4   :  { %2320 = vrot.lane.b32.xlu1 %v9928_v23, %s9492_s16 }
0x16e8   :  { %2409 = vrot.lane.b32.xlu1 %v10008_v30, %s9493_s18 }
0x16ec   :  { %2411 = vrot.lane.b32.xlu1 %v10006_v29, %s9493_s18 }
0x16f0   :  { %2419 = vrot.lane.b32.xlu1 %v8671_v39, %s10968_s22 }
0x175c   :  { %v2303_v40 = vpop.xlane.xlu1 %2302 }
0x175d   :  { %v2305_v5 = vsub.f32 %v2297_v2, %v2303_v40 }
0x175e   :  { %v2300_v6 = vpop.xlane.xlu0 %2299 }
0x175f   :  { %v2308_v41 = vmul.f32 1.442695, %v2305_v5  ;;  %v2304_v7 = vsub.f32 %v2296_v4, %v2300_v6  ;;  %v7961_v6 = vld [vmem:[%s9561_s24 + $0x38] sm:$0xff] }
0x1760   :  { %v2321_v16 = vpop.permute.xlu1 %2320  ;;  %8697 = vmatprep.subr.mxu1 %v7961_v6 }
0x1761   :  { %9252 = vpow2.f32 %v2308_v41  ;;  %v2306_v36 = vmul.f32 1.442695, %v2304_v7  ;;  %v7960_v41 = vld [vmem:[%s9561_s24 + $0x30] sm:$0xff]  ;;  %8698 = vmatpush3.msra.mxu1 %v7961_v6  ;;  %v7959_v7 = vld [vmem:[%s9561_s24 + $0x28] sm:$0xff] }
0x1762   :  { %8699 = vmatprep.subr.mxu1 %v7960_v41 }
0x1763   :  { %9254 = vpow2.f32 %v2306_v36  ;;  %8700 = vmatpush3.msra.mxu1 %v7960_v41  ;;  %v7958_v36 = vld [vmem:[%s9561_s24 + $0x20] sm:$0xff]  ;;  %s10996_s24 = sld [smem:[#allocation8_spill]] }
0x1764   :  { %v2410_v31 = vpop.permute.xlu1 %2409  ;;  %8701 = vmatprep.subr.mxu1 %v7959_v7 }
0x1765   :  { %v2431_v38 = vsel %vm304_vm1, %v10004_v28, %v2410_v31  ;;  %8702 = vmatpush3.msra.mxu1 %v7959_v7  ;;  %v7956_v31 = vld [vmem:[%s9551_s14 + $0x1] ss:$0 sm:$0xff]  ;;  %s10994_s14 = sld [smem:[#allocation7_spill]] }
0x1766   :  { %8703 = vmatprep.subr.mxu1 %v7958_v36 }
0x1767   :  { %8704 = vmatpush3.msra.mxu1 %v7958_v36 }
0x1768   :  { %v2412_v32 = vpop.permute.xlu1 %2411 }
0x1769   :  { %v2432_v42 = vsel %vm304_vm1, %v10002_v27, %v2412_v32 }
0x176c   :  { %v2420_v33 = vpop.permute.xlu1 %2419 }
0x176d   :  { %v2434_v45 = vsel %vm392_vm3, %v2432_v42, %v2420_v33 }
0x176e   :  { %v9253_v10 = vpop.eup %9252 }
0x176f   :  { %v2313_v11 = vsel %vm392_vm3, %v9253_v10, 0.0 }
0x1770   :  { %v9255_v23 = vpop.eup %9254  ;;  %2314 = vadd.xlane.f32.xlu0 %v2313_v11  ;;  %v7973_v11 = vld [vmem:[%s9571_s6 + $0x78] sm:$0xff] }
0x1771   :  { %v2310_v12 = vsel %vm392_vm3, %v9255_v23, 0.0 }
0x1774   :  { %2311 = vadd.xlane.f32.xlu0 %v2310_v12  ;;  %v7971_v12 = vld [vmem:[%s9571_s6 + $0x68] sm:$0xff] }
0x178a   :  { %2322 = vrot.lane.b32.xlu0 %v9924_v22, %s9492_s16 }
0x178e   :  { %2417 = vrot.lane.b32.xlu0 %v2196_v62, %s10968_s22 }
0x17f9   :  { %v2315_v13 = vpop.xlane.xlu0 %2314 }
0x17fa   :  { %9256 = vrcp.f32 %v2315_v13  ;;  %v7970_v13 = vld [vmem:[%s9571_s6 + $0x60] sm:$0xff] }
0x17fd   :  { %v2312_v14 = vpop.xlane.xlu0 %2311 }
0x17fe   :  { %9258 = vrcp.f32 %v2312_v14 }
0x1801   :  { %v2323_v15 = vpop.permute.xlu0 %2322 }
0x1802   :  { %8679 = vmatprep.subr.mxu0 %v2323_v15 }
0x1803   :  { %8680 = vmatpush3.msra.mxu0 %v2323_v15 }
0x1804   :  { %8681 = vmatprep.subr.mxu0 %v2321_v16 }
0x1805   :  { %8682 = vmatpush3.msra.mxu0 %v2321_v16  ;;  %v2418_v37 = vpop.permute.xlu0 %2417 }
0x1806   :  { %8686 = vmatprep.subr.mxu0 %v7951_v20  ;;  %v2433_v43 = vsel %vm392_vm3, %v2431_v38, %v2418_v37 }
0x1807   :  { %v9257_v17 = vpop.eup %9256 }
0x1808   :  { %v2319_v22 = vmul.f32 %v9257_v17, %v9253_v10  ;;  %v2862_v10 = vld [vmem:[%s9601_s20 + $0x18] sm:$0xff] }
0x1809   :  { %8727 = vmatprep.subr.mxu1 %v2862_v10 }
0x180b   :  { %v9259_v18 = vpop.eup %9258 }
0x180c   :  { %v2318_v19 = vmul.f32 %v9259_v18, %v9255_v23  ;;  %v7972_v23 = vld [vmem:[%s9571_s6 + $0x70] sm:$0xff] }
0x180e   :  { %8683 = vmatprep.mubr.msk.f32.mxu0 %vm392_vm3, %v2318_v19 }
0x180f   :  { %8684 = vmatmul.mubr.msk.f32.vlgmr.msra.gmra.mxu0 %vm392_vm3, %v2319_v22 }
0x1810   :  { %8687 = vmatpush3.msra.mxu0 %v7951_v20 }
0x1811   :  { %8688 = vmatprep.subr.mxu0 %v7950_v21 }
0x1812   :  { %8689 = vmatpush3.msra.mxu0 %v7950_v21 }
0x1813   :  { %8690 = vmatprep.subr.mxu0 %v7949_v26 }
0x1814   :  { %8691 = vmatpush3.msra.mxu0 %v7949_v26 }
0x1815   :  { %8692 = vmatprep.subr.mxu0 %v7948_v35 }
0x1816   :  { %8693 = vmatpush3.msra.mxu0 %v7948_v35 }
0x1817   :  { %8708 = vmatprep.subr.mxu0 %v7973_v11 }
0x18cf   :  { %v8685_v29 = vpop.f32.mrf.mxu0 }
0x18d0   :  { %2427 = vrot.lane.b32.xlu1 %v8685_v29, %s10966_s23 }
0x18d1   :  { %v2398_v30 = vpop.f32.mrf.mxu0 }
0x18d2   :  { %2425 = vrot.lane.b32.xlu0 %v2398_v30, %s10966_s23 }
0x1942   :  { %v2428_v34 = vpop.permute.xlu1 %2427 }
0x1943   :  { %v2436_v47 = vsel %vm1136_vm5, %v2434_v45, %v2428_v34  ;;  %v7957_v34 = vld [vmem:[%s9556_s19 + $0x1] ss:$0 sm:$0xff]  ;;  %s10995_s19 = sld [smem:[#allocation14_spill]] }
0x1944   :  { %v2426_v44 = vpop.permute.xlu0 %2425 }
0x1945   :  { %v2435_v46 = vsel %vm1136_vm5, %v2433_v43, %v2426_v44  ;;  %v7980_v44 = vld [vmem:[%s10989_s9] ss:$0 sm:$0xff] }
0x1946   :  { %8694 = vmatprep.mubr.msk.f32.mxu0 %vm167_vm0, %v2435_v46 }
0x1947   :  { %8695 = vmatmul.mubr.msk.f32.vlgmr.msra.gmra.mxu0 %vm167_vm0, %v2436_v47 }
0x1948   :  { %8709 = vmatpush3.msra.mxu0 %v7973_v11  ;;  %v10186_v11 = vld [vmem:[%s10991_s29 + $0x8] sm:$0xff] }
0x1949   :  { %8710 = vmatprep.subr.mxu0 %v7972_v23  ;;  %vm158_vm7 = vcmp.gt.f32.partialorder %v10186_v11, 0.5 }
0x194a   :  { %8711 = vmatpush3.msra.mxu0 %v7972_v23  ;;  %v10189_v23 = vld [vmem:[%s10991_s29] sm:$0xff]  ;;  %s11001_s29 = sld [smem:[#allocation19_spill]] }
0x194b   :  { %8712 = vmatprep.subr.mxu0 %v7971_v12  ;;  %vm157_vm8 = vcmp.gt.f32.partialorder %v10189_v23, 0.5 }
0x194c   :  { %8713 = vmatpush3.msra.mxu0 %v7971_v12 }
0x194d   :  { %8714 = vmatprep.subr.mxu0 %v7970_v13 }
0x194e   :  { %8715 = vmatpush3.msra.mxu0 %v7970_v13 }
0x1a07   :  { %v8696_v28 = vpop.f32.mrf.mxu0 }
0x1a08   :  { %v10075_v48 = vadd.f32 %v8696_v28, %v9903_v53  ;;  %v2820_v53 = vsel %vm167_vm0, %v10090_v54, 0.0  ;;  %v7981_v28 = vld [vmem:[%s10990_s25] ss:$0 sm:$0xff] }
0x1a09   :  { %v2514_v49 = vpop.f32.mrf.mxu0 }
0x1a0a   :  { %v10078_v27 = vadd.f32 %v2514_v49, %v9906_v55  ;;  %v2532_v50 = vsel %vm167_vm0, %v10075_v48, 0.0  ;;  %v2861_v49 = vld [vmem:[%s9601_s20 + $0x10] sm:$0xff] }
0x1a0b   :  { %2533 = vadd.xlane.f32.xlu1 %v2532_v50 }
0x1a0c   :  { %v2529_v25 = vsel %vm167_vm0, %v10078_v27, 0.0 }
0x1a0d   :  { %2530 = vadd.xlane.f32.xlu0 %v2529_v25 }
0x1a11   :  { %2818 = vadd.xlane.f32.xlu0 %v2817_v52  ;;  %v2860_v52 = vld [vmem:[%s9601_s20 + $0x8] sm:$0xff] }
0x1a15   :  { %2821 = vadd.xlane.f32.xlu0 %v2820_v53 }
0x1a94   :  { %v2534_v55 = vpop.xlane.xlu1 %2533 }
0x1a95   :  { %v2536_v56 = vmul.f32 0.03125, %v2534_v55 }
0x1a96   :  { %v2531_v57 = vpop.xlane.xlu0 %2530 }
0x1a97   :  { %v10095_v58 = vsub.f32 %v10075_v48, %v2536_v56  ;;  %v2535_v59 = vmul.f32 0.03125, %v2531_v57  ;;  %v2859_v57 = vld [vmem:[%s9601_s20] sm:$0xff] }
0x1a99   :  { %v10098_v60 = vsub.f32 %v10078_v27, %v2535_v59  ;;  %v2540_v9 = vmul.f32 %v10095_v58, %v10095_v58  ;;  %v7969_v59 = vld [vmem:[%s9571_s6 + $0x58] sm:$0xff] }
0x1a9a   :  { %v2819_v24 = vpop.xlane.xlu0 %2818  ;;  %8716 = vmatprep.subr.mxu0 %v7969_v59 }
0x1a9b   :  { %v2823_v61 = vmul.f32 0.03125, %v2819_v24  ;;  %v2544_v8 = vsel %vm167_vm0, %v2540_v9, 0.0  ;;  %v2539_v39 = vmul.f32 %v10098_v60, %v10098_v60  ;;  %8717 = vmatpush3.msra.mxu0 %v7969_v59  ;;  %v7967_v9 = vld [vmem:[%s9571_s6 + $0x48] sm:$0xff]  ;;  %v7966_v24 = vld [vmem:[%s9571_s6 + $0x40] sm:$0xff] }
0x1a9c   :  { %2545 = vadd.xlane.f32.xlu1 %v2544_v8 }
0x1a9d   :  { %v10106_v62 = vsub.f32 %v10083_v51, %v2823_v61  ;;  %v2541_v63 = vsel %vm167_vm0, %v2539_v39, 0.0  ;;  %v7963_v61 = vld [vmem:[%s9566_s30 + $0x1] ss:$0 sm:$0xff]  ;;  %s10997_s30 = sld [smem:[#allocation12_spill]] }
0x1a9e   :  { %2542 = vadd.xlane.f32.xlu0 %v2541_v63  ;;  %v2822_v2 = vpop.xlane.xlu0 %2821 }
0x1a9f   :  { %v2824_v3 = vmul.f32 0.03125, %v2822_v2  ;;  %v2827_v1 = vmul.f32 %v10106_v62, %v10106_v62 }
0x1aa1   :  { %v10112_v4 = vsub.f32 %v10090_v54, %v2824_v3  ;;  %v2829_v0 = vsel %vm167_vm0, %v2827_v1, 0.0 }
0x1aa2   :  { %2830 = vadd.xlane.f32.xlu0 %v2829_v0 }
0x1aa3   :  { %v2828_v40 = vmul.f32 %v10112_v4, %v10112_v4 }
0x1aa5   :  { %v2832_v5 = vsel %vm167_vm0, %v2828_v40, 0.0 }
0x1aa6   :  { %2833 = vadd.xlane.f32.xlu1 %v2832_v5 }
0x1b25   :  { %v2546_v14 = vpop.xlane.xlu1 %2545 }
0x1b26   :  { %v2548_v15 = vmul.f32 0.03125, %v2546_v14 }
0x1b27   :  { %v2543_v16 = vpop.xlane.xlu0 %2542 }
0x1b28   :  { %v2550_v17 = vadd.f32 1e-06, %v2548_v15  ;;  %v2547_v18 = vmul.f32 0.03125, %v2543_v16 }
0x1b2a   :  { %9260 = vrsqrt.f32 %v2550_v17  ;;  %v2549_v19 = vadd.f32 1e-06, %v2547_v18 }
0x1b2b   :  { %v2831_v22 = vpop.xlane.xlu0 %2830 }
0x1b2c   :  { %9262 = vrsqrt.f32 %v2549_v19  ;;  %v2835_v20 = vmul.f32 0.03125, %v2831_v22 }
0x1b2e   :  { %v2837_v21 = vadd.f32 1e-06, %v2835_v20 }
0x1b2f   :  { %v2834_v26 = vpop.xlane.xlu1 %2833 }
0x1b30   :  { %9264 = vrsqrt.f32 %v2837_v21  ;;  %v2836_v35 = vmul.f32 0.03125, %v2834_v26 }
0x1b32   :  { %v2838_v29 = vadd.f32 1e-06, %v2836_v35 }
0x1b34   :  { %9266 = vrsqrt.f32 %v2838_v29 }
0x1b37   :  { %v9261_v30 = vpop.eup %9260 }
0x1b38   :  { %v2554_v32 = vmul.f32 %v9261_v30, %v10095_v58 }
0x1b39   :  { %v9263_v33 = vpop.eup %9262 }
0x1b3a   :  { %v2553_v37 = vmul.f32 %v9263_v33, %v10098_v60  ;;  %v2562_v38 = vmul.f32 %v7956_v31, %v2554_v32  ;;  %v7968_v60 = vld [vmem:[%s9571_s6 + $0x50] sm:$0xff]  ;;  %s10998_s6 = sld [smem:[#allocation13_spill]] }
0x1b3b   :  { %8718 = vmatprep.subr.mxu0 %v7968_v60 }
0x1b3c   :  { %v2561_v42 = vmul.f32 %v7956_v31, %v2553_v37  ;;  %v2570_v47 = vadd.f32 %v7957_v34, %v2562_v38  ;;  %8719 = vmatpush3.msra.mxu0 %v7968_v60 }
0x1b3d   :  { %v9265_v43 = vpop.eup %9264  ;;  %8720 = vmatprep.subr.mxu0 %v7967_v9 }
0x1b3e   :  { %v2569_v45 = vadd.f32 %v7957_v34, %v2561_v42  ;;  %v2841_v46 = vmul.f32 %v9265_v43, %v10106_v62  ;;  %8721 = vmatpush3.msra.mxu0 %v7967_v9 }
0x1b3f   :  { %8722 = vmatprep.subr.mxu0 %v7966_v24 }
0x1b40   :  { %8705 = vmatprep.mubr.msk.f32.mxu1 %vm167_vm0, %v2569_v45  ;;  %v2849_v50 = vmul.f32 %v7980_v44, %v2841_v46  ;;  %8723 = vmatpush3.msra.mxu0 %v7966_v24 }
0x1b41   :  { %v9267_v25 = vpop.eup %9266  ;;  %8706 = vmatmul.mubr.msk.f32.vlgmr.msra.gmra.mxu1 %vm167_vm0, %v2570_v47 }
0x1b42   :  { %8728 = vmatpush3.msra.mxu1 %v2862_v10  ;;  %v2842_v53 = vmul.f32 %v9267_v25, %v10112_v4  ;;  %v2857_v55 = vadd.f32 %v7981_v28, %v2849_v50 }
0x1b43   :  { %8729 = vmatprep.subr.mxu1 %v2861_v49 }
0x1b44   :  { %8730 = vmatpush3.msra.mxu1 %v2861_v49  ;;  %v2850_v56 = vmul.f32 %v7980_v44, %v2842_v53  ;;  %8735 = vmatprep.mubr.msk.f32.mxu1 %vm167_vm0, %v2857_v55 }
0x1b45   :  { %8731 = vmatprep.subr.mxu1 %v2860_v52 }
0x1b46   :  { %v2858_v58 = vadd.f32 %v7981_v28, %v2850_v56  ;;  %8732 = vmatpush3.msra.mxu1 %v2860_v52 }
0x1b47   :  { %8733 = vmatprep.subr.mxu1 %v2859_v57 }
0x1b48   :  { %8734 = vmatpush3.msra.mxu1 %v2859_v57 }
0x1b49   :  { %8736 = vmatmul.mubr.msk.f32.vlgmr.msra.gmra.mxu1 %vm167_vm0, %v2858_v58 }
0x1c01   :  { %v8707_v8 = vpop.f32.mrf.mxu1 }
0x1c02   :  { %v2662_v39 = vadd.f32 %v8707_v8, %v7963_v61 }
0x1c03   :  { %v2656_v62 = vpop.f32.mrf.mxu1 }
0x1c04   :  { %v2657_v63 = vadd.f32 %v7963_v61, %v2656_v62  ;;  %v2666_v3 = vmax.f32 %v2662_v39, 0.0 }
0x1c06   :  { %v2665_v2 = vmax.f32 %v2657_v63, 0.0 }
0x1c08   :  { %8724 = vmatprep.mubr.msk.f32.mxu0 %vm1372_vm6, %v2665_v2 }
0x1c09   :  { %v10148_v1 = vpop.f32.mrf.mxu1  ;;  %8725 = vmatmul.mubr.msk.f32.vlgmr.msra.gmra.mxu0 %vm1372_vm6, %v2666_v3 }
0x1c0a   :  { %2950 = vrot.lane.b32.xlu0 %v10148_v1, %s9482_s0  ;;  %v10169_v40 = vmul.f32 0.35355338, %v10148_v1 }
0x1c0b   :  { %v10153_v4 = vpop.f32.mrf.mxu1 }
0x1c0c   :  { %2948 = vrot.lane.b32.xlu1 %v10153_v4, %s9482_s0  ;;  %v10158_v0 = vmul.f32 0.35355338, %v10153_v4 }
0x1c0e   :  { %3148 = vrot.lane.b32.xlu0 %v10158_v0, %s9485_s28  ;;  %8742 = vmatprep.mubr.msk.f32.mxu1 %vm304_vm1, %v10158_v0 }
0x1c10   :  { %3154 = vrot.lane.b32.xlu1 %v10148_v1, %s9484_s13 }
0x1c14   :  { %3152 = vrot.lane.b32.xlu1 %v10153_v4, %s9484_s13 }
0x1c18   :  { %3150 = vrot.lane.b32.xlu1 %v10169_v40, %s9485_s28 }
0x1c7c   :  { %v2951_v5 = vpop.permute.xlu0 %2950 }
0x1c7d   :  { %8738 = vmatprep.subr.msk.mxu1 %vm304_vm1, %v2951_v5 }
0x1c7e   :  { %8739 = vmatpush3.xpose.msk.msra.mxu1 %vm304_vm1, %v2951_v5  ;;  %v2949_v6 = vpop.permute.xlu1 %2948 }
0x1c7f   :  { %8740 = vmatprep.subr.msk.mxu1 %vm304_vm1, %v2949_v6 }
0x1c80   :  { %v3149_v7 = vpop.permute.xlu0 %3148 }
0x1c82   :  { %8741 = vmatpush3.xpose.msk.msra.mxu1 %vm304_vm1, %v2949_v6  ;;  %v3155_v41 = vpop.permute.xlu1 %3154 }
0x1c83   :  { %8752 = vmatprep.subr.msk.mxu1 %vm304_vm1, %v3155_v41 }
0x1c85   :  { %8743 = vmatmul.mubr.msk.f32.vlgmr.msra.gmra.mxu1 %vm304_vm1, %v10169_v40 }
0x1c86   :  { %v3153_v36 = vpop.permute.xlu1 %3152  ;;  %8753 = vmatpush3.xpose.msk.msra.mxu1 %vm304_vm1, %v3155_v41  ;;  %8756 = vmatprep.mubr.msk.f32.mxu1 %vm304_vm1, %v3149_v7 }
0x1c87   :  { %8754 = vmatprep.subr.msk.mxu1 %vm304_vm1, %v3153_v36 }
0x1c8a   :  { %8755 = vmatpush3.xpose.msk.msra.mxu1 %vm304_vm1, %v3153_v36  ;;  %v3151_v10 = vpop.permute.xlu1 %3150 }
0x1c8d   :  { %8757 = vmatmul.mubr.msk.f32.vlgmr.msra.gmra.mxu1 %vm304_vm1, %v3151_v10 }
0x1cc9   :  { %v10235_v36 = vpop.f32.mrf.mxu0 }
0x1ccb   :  { %v10237_v10 = vpop.f32.mrf.mxu0 }
0x1d45   :  { %v8744_v12 = vpop.f32.mrf.mxu1 }
0x1d46   :  { %v3038_v13 = vsel %vm158_vm7, -1e+18, %v8744_v12 }
0x1d47   :  { %v3042_v14 = vsel %vm392_vm3, %v3038_v13, -inf  ;;  %v3028_v15 = vpop.f32.mrf.mxu1 }
0x1d48   :  { %v3037_v16 = vsel %vm157_vm8, -1e+18, %v3028_v15  ;;  %3043 = vmax.xlane.f32.xlu1 %v3042_v14 }
0x1d49   :  { %v3039_v17 = vsel %vm392_vm3, %v3037_v16, -inf }
0x1d4a   :  { %3040 = vmax.xlane.f32.xlu0 %v3039_v17 }
0x1d4d   :  { %v8758_v18 = vpop.f32.mrf.mxu1 }
0x1d4e   :  { %v3240_v21 = vsel %vm158_vm7, -1e+18, %v8758_v18 }
0x1d4f   :  { %v3230_v19 = vpop.f32.mrf.mxu1  ;;  %v3244_v26 = vsel %vm392_vm3, %v3240_v21, -inf }
0x1d50   :  { %v3239_v22 = vsel %vm157_vm8, -1e+18, %v3230_v19 }
0x1d51   :  { %v3241_v20 = vsel %vm392_vm3, %v3239_v22, -inf }
0x1d52   :  { %3242 = vmax.xlane.f32.xlu0 %v3241_v20 }
0x1d56   :  { %3245 = vmax.xlane.f32.xlu0 %v3244_v26 }
0x1d59   :  { %3061 = vrot.lane.b32.xlu1 %v10153_v4, %s9483_s5 }
0x1d5d   :  { %3265 = vrot.lane.b32.xlu1 %v10148_v1, %s9486_s1 }
0x1d61   :  { %3263 = vrot.lane.b32.xlu1 %v10153_v4, %s9486_s1 }
0x1d6c   :  { %3063 = vrot.lane.b32.xlu0 %v10148_v1, %s9483_s5 }
0x1dd1   :  { %v3044_v35 = vpop.xlane.xlu1 %3043 }
0x1dd2   :  { %v3046_v29 = vsub.f32 %v3038_v13, %v3044_v35 }
0x1dd3   :  { %v3041_v30 = vpop.xlane.xlu0 %3040 }
0x1dd4   :  { %v3049_v31 = vmul.f32 1.442695, %v3046_v29  ;;  %v3045_v32 = vsub.f32 %v3037_v16, %v3041_v30 }
0x1dd5   :  { %v3062_v44 = vpop.permute.xlu1 %3061 }
0x1dd6   :  { %9268 = vpow2.f32 %v3049_v31  ;;  %v3047_v33 = vmul.f32 1.442695, %v3045_v32 }
0x1dd8   :  { %9270 = vpow2.f32 %v3047_v33 }
0x1dd9   :  { %v3266_v25 = vpop.permute.xlu1 %3265 }
0x1ddb   :  { %v3243_v37 = vpop.xlane.xlu0 %3242 }
0x1ddc   :  { %v3247_v38 = vsub.f32 %v3239_v22, %v3243_v37 }
0x1ddd   :  { %v3264_v57 = vpop.permute.xlu1 %3263 }
0x1dde   :  { %v3249_v34 = vmul.f32 1.442695, %v3247_v38 }
0x1ddf   :  { %v3246_v42 = vpop.xlane.xlu0 %3245 }
0x1de0   :  { %9272 = vpow2.f32 %v3249_v34  ;;  %v3248_v43 = vsub.f32 %v3240_v21, %v3246_v42 }
0x1de2   :  { %v3251_v45 = vmul.f32 1.442695, %v3248_v43 }
0x1de3   :  { %v9269_v46 = vpop.eup %9268  ;;  %v3064_v47 = vpop.permute.xlu0 %3063 }
0x1de4   :  { %9274 = vpow2.f32 %v3251_v45  ;;  %8745 = vmatprep.subr.mxu0 %v3064_v47  ;;  %v3054_v28 = vsel %vm392_vm3, %v9269_v46, 0.0 }
0x1de5   :  { %v9271_v49 = vpop.eup %9270  ;;  %3055 = vadd.xlane.f32.xlu1 %v3054_v28  ;;  %8746 = vmatpush3.msra.mxu0 %v3064_v47 }
0x1de6   :  { %8747 = vmatprep.subr.mxu0 %v3062_v44  ;;  %v3051_v50 = vsel %vm392_vm3, %v9271_v49, 0.0 }
0x1de7   :  { %3052 = vadd.xlane.f32.xlu0 %v3051_v50  ;;  %8748 = vmatpush3.msra.mxu0 %v3062_v44 }
0x1de8   :  { %8759 = vmatprep.subr.mxu0 %v3266_v25 }
0x1ded   :  { %v9273_v52 = vpop.eup %9272 }
0x1dee   :  { %v3253_v53 = vsel %vm392_vm3, %v9273_v52, 0.0 }
0x1def   :  { %3254 = vadd.xlane.f32.xlu0 %v3253_v53 }
0x1df1   :  { %v9275_v55 = vpop.eup %9274 }
0x1df2   :  { %v3256_v56 = vsel %vm392_vm3, %v9275_v55, 0.0 }
0x1df3   :  { %3257 = vadd.xlane.f32.xlu1 %v3256_v56 }
0x1e04   :  { %3354 = vrot.lane.b32.xlu1 %v10153_v4, %s9487_s2 }
0x1e05   :  { %3356 = vrot.lane.b32.xlu0 %v10148_v1, %s9487_s2 }
0x1e08   :  { %3352 = vrot.lane.b32.xlu1 %v10169_v40, %s9488_s7 }
0x1e09   :  { %3350 = vrot.lane.b32.xlu0 %v10158_v0, %s9488_s7 }
0x1e6e   :  { %v3056_v58 = vpop.xlane.xlu1 %3055 }
0x1e6f   :  { %9276 = vrcp.f32 %v3056_v58 }
0x1e70   :  { %v3053_v59 = vpop.xlane.xlu0 %3052 }
0x1e71   :  { %9278 = vrcp.f32 %v3053_v59 }
0x1e78   :  { %v3255_v60 = vpop.xlane.xlu0 %3254 }
0x1e79   :  { %9280 = vrcp.f32 %v3255_v60 }
0x1e7c   :  { %v3258_v9 = vpop.xlane.xlu1 %3257  ;;  %v9277_v24 = vpop.eup %9276 }
0x1e7d   :  { %9282 = vrcp.f32 %v3258_v9  ;;  %v3060_v39 = vmul.f32 %v9277_v24, %v9269_v46  ;;  %v3357_v62 = vpop.permute.xlu0 %3356 }
0x1e7e   :  { %v9279_v61 = vpop.eup %9278 }
0x1e7f   :  { %v3059_v8 = vmul.f32 %v9279_v61, %v9271_v49 }
0x1e80   :  { %v3355_v41 = vpop.permute.xlu1 %3354 }
0x1e81   :  { %8749 = vmatprep.mubr.msk.f32.mxu0 %vm392_vm3, %v3059_v8  ;;  %v3351_v6 = vpop.permute.xlu0 %3350 }
0x1e82   :  { %8750 = vmatmul.mubr.msk.f32.vlgmr.msra.gmra.mxu0 %vm392_vm3, %v3060_v39 }
0x1e83   :  { %8760 = vmatpush3.msra.mxu0 %v3266_v25 }
0x1e84   :  { %8761 = vmatprep.subr.mxu0 %v3264_v57  ;;  %v3353_v7 = vpop.permute.xlu1 %3352 }
0x1e85   :  { %8762 = vmatpush3.msra.mxu0 %v3264_v57 }
0x1e86   :  { %v9281_v63 = vpop.eup %9280  ;;  %8766 = vmatprep.subr.msk.mxu0 %vm304_vm1, %v3357_v62 }
0x1e87   :  { %v3261_v2 = vmul.f32 %v9281_v63, %v9273_v52 }
0x1e89   :  { %8763 = vmatprep.mubr.msk.f32.mxu0 %vm392_vm3, %v3261_v2 }
0x1e8a   :  { %v9283_v3 = vpop.eup %9282 }
0x1e8b   :  { %v3262_v5 = vmul.f32 %v9283_v3, %v9275_v55 }
0x1e8d   :  { %8764 = vmatmul.mubr.msk.f32.vlgmr.msra.gmra.mxu0 %vm392_vm3, %v3262_v5 }
0x1e8e   :  { %8767 = vmatpush3.xpose.msk.msra.mxu0 %vm304_vm1, %v3357_v62  ;;  %8770 = vmatprep.mubr.msk.f32.mxu0 %vm304_vm1, %v3351_v6 }
0x1e8f   :  { %8768 = vmatprep.subr.msk.mxu0 %vm304_vm1, %v3355_v41 }
0x1e92   :  { %8769 = vmatpush3.xpose.msk.msra.mxu0 %vm304_vm1, %v3355_v41 }
0x1e95   :  { %8771 = vmatmul.mubr.msk.f32.vlgmr.msra.gmra.mxu0 %vm304_vm1, %v3353_v7 }
0x1f42   :  { %v10239_v12 = vpop.f32.mrf.mxu0 }
0x1f44   :  { %v10241_v13 = vpop.f32.mrf.mxu0 }
0x1f4d   :  { %v10243_v14 = vpop.f32.mrf.mxu0 }
0x1f4f   :  { %v10245_v15 = vpop.f32.mrf.mxu0 }
0x1f55   :  { %v8772_v16 = vpop.f32.mrf.mxu0 }
0x1f56   :  { %v3442_v17 = vsel %vm158_vm7, -1e+18, %v8772_v16  ;;  %v3787_v16 = vld [vmem:[%s10992_s3 + $0x18] sm:$0xff] }
0x1f57   :  { %v3446_v18 = vsel %vm392_vm3, %v3442_v17, -inf  ;;  %v3432_v19 = vpop.f32.mrf.mxu0 }
0x1f58   :  { %v3441_v22 = vsel %vm157_vm8, -1e+18, %v3432_v19  ;;  %3447 = vmax.xlane.f32.xlu1 %v3446_v18  ;;  %v3785_v18 = vld [vmem:[%s10992_s3 + $0x8] sm:$0xff]  ;;  %v3784_v19 = vld [vmem:[%s10992_s3] sm:$0xff] }
0x1f59   :  { %v3443_v20 = vsel %vm392_vm3, %v3441_v22, -inf }
0x1f5a   :  { %3444 = vmax.xlane.f32.xlu0 %v3443_v20 }
0x1f69   :  { %3465 = vrot.lane.b32.xlu1 %v10153_v4, %s9489_s10 }
0x1f6d   :  { %3558 = vrot.lane.b32.xlu1 %v10148_v1, %s9490_s11 }
0x1f71   :  { %3556 = vrot.lane.b32.xlu1 %v10153_v4, %s9490_s11 }
0x1f75   :  { %3554 = vrot.lane.b32.xlu1 %v10169_v40, %s9491_s15 }
0x1fe1   :  { %v3448_v21 = vpop.xlane.xlu1 %3447 }
0x1fe2   :  { %v3450_v26 = vsub.f32 %v3442_v17, %v3448_v21  ;;  %v3786_v17 = vld [vmem:[%s10992_s3 + $0x10] sm:$0xff]  ;;  %v2757_v21 = vadd.f32 %v10237_v10, %v10078_v27 }
0x1fe3   :  { %v3445_v35 = vpop.xlane.xlu0 %3444 }
0x1fe4   :  { %v3453_v29 = vmul.f32 1.442695, %v3450_v26  ;;  %v3449_v30 = vsub.f32 %v3441_v22, %v3445_v35  ;;  %v2758_v26 = vadd.f32 %v10235_v36, %v10075_v48  ;;  %v7977_v35 = vld [vmem:[%s9576_s12 + $0x1] ss:$0 sm:$0xff]  ;;  %s10999_s12 = sld [smem:[#allocation6_spill]] }
0x1fe5   :  { %v3466_v42 = vpop.permute.xlu1 %3465 }
0x1fe6   :  { %9284 = vpow2.f32 %v3453_v29  ;;  %v3451_v31 = vmul.f32 1.442695, %v3449_v30  ;;  %v2767_v29 = vadd.f32 %v7977_v35, %v2757_v21  ;;  %v2768_v30 = vadd.f32 %v7977_v35, %v2758_v26  ;;  %v3916_v26 = vld [vmem:[%s10995_s19 + $0x8] sm:$0xff]  ;;  %v7979_v35 = vld [vmem:[%s10996_s24] ss:$0 sm:$0xff]  ;;  %s11003_s24 = sld [smem:[#allocation17_spill]] }
0x1fe8   :  { %9286 = vpow2.f32 %v3451_v31  ;;  %v2771_v31 = vsel %vm167_vm0, %v2767_v29, 0.0 }
0x1fe9   :  { %v3559_v44 = vpop.permute.xlu1 %3558 }
0x1fed   :  { %v3557_v49 = vpop.permute.xlu1 %3556 }
0x1ff1   :  { %v3555_v50 = vpop.permute.xlu1 %3554 }
0x1ff3   :  { %v9285_v32 = vpop.eup %9284 }
0x1ff4   :  { %v3458_v33 = vsel %vm392_vm3, %v9285_v32, 0.0 }
0x1ff5   :  { %v9287_v37 = vpop.eup %9286  ;;  %3459 = vadd.xlane.f32.xlu0 %v3458_v33 }
0x1ff6   :  { %v3455_v38 = vsel %vm392_vm3, %v9287_v37, 0.0 }
0x1ff9   :  { %3456 = vadd.xlane.f32.xlu0 %v3455_v38 }
0x200f   :  { %3467 = vrot.lane.b32.xlu0 %v10148_v1, %s9489_s10 }
0x2013   :  { %3552 = vrot.lane.b32.xlu0 %v10158_v0, %s9491_s15 }
0x207e   :  { %v3460_v40 = vpop.xlane.xlu0 %3459 }
0x207f   :  { %9288 = vrcp.f32 %v3460_v40 }
0x2082   :  { %v3457_v34 = vpop.xlane.xlu0 %3456 }
0x2083   :  { %9290 = vrcp.f32 %v3457_v34 }
0x2086   :  { %v3468_v43 = vpop.permute.xlu0 %3467 }
0x2087   :  { %8773 = vmatprep.subr.mxu1 %v3468_v43 }
0x2088   :  { %8774 = vmatpush3.msra.mxu1 %v3468_v43 }
0x2089   :  { %8775 = vmatprep.subr.mxu1 %v3466_v42 }
0x208a   :  { %8776 = vmatpush3.msra.mxu1 %v3466_v42  ;;  %v3553_v0 = vpop.permute.xlu0 %3552 }
0x208b   :  { %8780 = vmatprep.subr.msk.mxu1 %vm304_vm1, %v3559_v44 }
0x208c   :  { %v9289_v45 = vpop.eup %9288 }
0x208d   :  { %v3464_v28 = vmul.f32 %v9289_v45, %v9285_v32  ;;  %v2774_v32 = vsel %vm167_vm0, %v2768_v30, 0.0 }
0x2090   :  { %v9291_v46 = vpop.eup %9290 }
0x2091   :  { %v3463_v47 = vmul.f32 %v9291_v46, %v9287_v37 }
0x2093   :  { %8777 = vmatprep.mubr.msk.f32.mxu1 %vm392_vm3, %v3463_v47 }
0x2094   :  { %8778 = vmatmul.mubr.msk.f32.vlgmr.msra.gmra.mxu1 %vm392_vm3, %v3464_v28 }
0x2095   :  { %8781 = vmatpush3.xpose.msk.msra.mxu1 %vm304_vm1, %v3559_v44  ;;  %8784 = vmatprep.mubr.msk.f32.mxu1 %vm304_vm1, %v3553_v0 }
0x2096   :  { %8782 = vmatprep.subr.msk.mxu1 %vm304_vm1, %v3557_v49 }
0x2099   :  { %8783 = vmatpush3.xpose.msk.msra.mxu1 %vm304_vm1, %v3557_v49 }
0x209c   :  { %8785 = vmatmul.mubr.msk.f32.vlgmr.msra.gmra.mxu1 %vm304_vm1, %v3555_v50 }
0x2154   :  { %v8779_v25 = vpop.f32.mrf.mxu1 }
0x2156   :  { %v3543_v52 = vpop.f32.mrf.mxu1 }
0x215c   :  { %v8786_v53 = vpop.f32.mrf.mxu1 }
0x215d   :  { %v3644_v55 = vsel %vm158_vm7, -1e+18, %v8786_v53 }
0x215e   :  { %v3648_v56 = vsel %vm392_vm3, %v3644_v55, -inf  ;;  %v3634_v57 = vpop.f32.mrf.mxu1 }
0x215f   :  { %v3643_v58 = vsel %vm157_vm8, -1e+18, %v3634_v57  ;;  %3649 = vmax.xlane.f32.xlu1 %v3648_v56 }
0x2160   :  { %v3645_v59 = vsel %vm392_vm3, %v3643_v58, -inf }
0x2161   :  { %3646 = vmax.xlane.f32.xlu0 %v3645_v59  ;;  %v3922_v59 = vld [vmem:[%s10993_s8 + $0x18] sm:$0xff] }
0x2170   :  { %3667 = vrot.lane.b32.xlu1 %v10153_v4, %s9492_s16 }
0x2174   :  { %3756 = vrot.lane.b32.xlu1 %v10245_v15, %s9493_s18 }
0x2178   :  { %3758 = vrot.lane.b32.xlu1 %v10243_v14, %s9493_s18 }
0x217c   :  { %3766 = vrot.lane.b32.xlu1 %v8779_v25, %s10968_s22 }
0x21e8   :  { %v3650_v60 = vpop.xlane.xlu1 %3649 }
0x21e9   :  { %v3652_v9 = vsub.f32 %v3644_v55, %v3650_v60  ;;  %v3920_v60 = vld [vmem:[%s10993_s8 + $0x8] sm:$0xff] }
0x21ea   :  { %v3647_v24 = vpop.xlane.xlu0 %3646 }
0x21eb   :  { %v3655_v61 = vmul.f32 1.442695, %v3652_v9  ;;  %v3651_v8 = vsub.f32 %v3643_v58, %v3647_v24 }
0x21ec   :  { %v3668_v41 = vpop.permute.xlu1 %3667 }
0x21ed   :  { %9292 = vpow2.f32 %v3655_v61  ;;  %v3653_v39 = vmul.f32 1.442695, %v3651_v8 }
0x21ef   :  { %9294 = vpow2.f32 %v3653_v39 }
0x21f0   :  { %v3757_v33 = vpop.permute.xlu1 %3756 }
0x21f1   :  { %v3778_v34 = vsel %vm304_vm1, %v10241_v13, %v3757_v33 }
0x21f4   :  { %v3759_v37 = vpop.permute.xlu1 %3758 }
0x21f5   :  { %v3779_v48 = vsel %vm304_vm1, %v10239_v12, %v3759_v37 }
0x21f8   :  { %v3767_v38 = vpop.permute.xlu1 %3766 }
0x21f9   :  { %v3781_v42 = vsel %vm392_vm3, %v3779_v48, %v3767_v38 }
0x21fa   :  { %v9293_v62 = vpop.eup %9292 }
0x21fb   :  { %v3660_v63 = vsel %vm392_vm3, %v9293_v62, 0.0 }
0x21fc   :  { %v9295_v4 = vpop.eup %9294  ;;  %3661 = vadd.xlane.f32.xlu0 %v3660_v63 }
0x21fd   :  { %v3657_v2 = vsel %vm392_vm3, %v9295_v4, 0.0 }
0x2200   :  { %3658 = vadd.xlane.f32.xlu0 %v3657_v2 }
0x2216   :  { %3669 = vrot.lane.b32.xlu0 %v10148_v1, %s9492_s16 }
0x221a   :  { %3764 = vrot.lane.b32.xlu0 %v3543_v52, %s10968_s22 }
0x2285   :  { %v3662_v3 = vpop.xlane.xlu0 %3661 }
0x2286   :  { %9296 = vrcp.f32 %v3662_v3 }
0x2289   :  { %v3659_v5 = vpop.xlane.xlu0 %3658 }
0x228a   :  { %9298 = vrcp.f32 %v3659_v5 }
0x228d   :  { %v3670_v6 = vpop.permute.xlu0 %3669 }
0x228e   :  { %8787 = vmatprep.subr.mxu0 %v3670_v6 }
0x228f   :  { %8788 = vmatpush3.msra.mxu0 %v3670_v6 }
0x2290   :  { %8789 = vmatprep.subr.mxu0 %v3668_v41 }
0x2291   :  { %8790 = vmatpush3.msra.mxu0 %v3668_v41  ;;  %v3765_v40 = vpop.permute.xlu0 %3764 }
0x2292   :  { %8794 = vmatprep.subr.mxu0 %v3787_v16  ;;  %v3780_v36 = vsel %vm392_vm3, %v3778_v34, %v3765_v40 }
0x2293   :  { %v9297_v7 = vpop.eup %9296 }
0x2294   :  { %v3666_v1 = vmul.f32 %v9297_v7, %v9293_v62 }
0x2297   :  { %v9299_v14 = vpop.eup %9298 }
0x2298   :  { %v3665_v15 = vmul.f32 %v9299_v14, %v9295_v4 }
0x229a   :  { %8791 = vmatprep.mubr.msk.f32.mxu0 %vm392_vm3, %v3665_v15 }
0x229b   :  { %8792 = vmatmul.mubr.msk.f32.vlgmr.msra.gmra.mxu0 %vm392_vm3, %v3666_v1 }
0x229c   :  { %8795 = vmatpush3.msra.mxu0 %v3787_v16 }
0x229d   :  { %8796 = vmatprep.subr.mxu0 %v3786_v17 }
0x229e   :  { %8797 = vmatpush3.msra.mxu0 %v3786_v17  ;;  %v7978_v17 = vld [vmem:[%s10994_s14] ss:$0 sm:$0xff]  ;;  %s11002_s14 = sld [smem:[#allocation21_spill]] }
0x229f   :  { %8798 = vmatprep.subr.mxu0 %v3785_v18 }
0x22a0   :  { %8799 = vmatpush3.msra.mxu0 %v3785_v18 }
0x22a1   :  { %8800 = vmatprep.subr.mxu0 %v3784_v19 }
0x22a2   :  { %8801 = vmatpush3.msra.mxu0 %v3784_v19  ;;  %v3918_v19 = vld [vmem:[%s10995_s19 + $0x18] sm:$0xff] }
0x22a3   :  { %8816 = vmatprep.subr.mxu0 %v3922_v59  ;;  %8805 = vmatprep.subr.mxu1 %v3918_v19 }
0x22a4   :  { %8806 = vmatpush3.msra.mxu1 %v3918_v19 }
0x235b   :  { %v8793_v22 = vpop.f32.mrf.mxu0 }
0x235c   :  { %3774 = vrot.lane.b32.xlu1 %v8793_v22, %s10966_s23  ;;  %v3917_v22 = vld [vmem:[%s10995_s19 + $0x10] sm:$0xff] }
0x235d   :  { %v3745_v20 = vpop.f32.mrf.mxu0  ;;  %8807 = vmatprep.subr.mxu1 %v3917_v22 }
0x235e   :  { %3772 = vrot.lane.b32.xlu0 %v3745_v20, %s10966_s23  ;;  %8808 = vmatpush3.msra.mxu1 %v3917_v22 }
0x235f   :  { %8809 = vmatprep.subr.mxu1 %v3916_v26 }
0x2360   :  { %8810 = vmatpush3.msra.mxu1 %v3916_v26 }
0x237d   :  { %2772 = vadd.xlane.f32.xlu0 %v2771_v31 }
0x2380   :  { %2775 = vadd.xlane.f32.xlu1 %v2774_v32  ;;  %v3915_v32 = vld [vmem:[%s10995_s19] sm:$0xff] }
0x2381   :  { %8811 = vmatprep.subr.mxu1 %v3915_v32 }
0x2382   :  { %8812 = vmatpush3.msra.mxu1 %v3915_v32 }
0x23ce   :  { %v3775_v27 = vpop.permute.xlu1 %3774 }
0x23cf   :  { %v3783_v44 = vsel %vm1136_vm5, %v3781_v42, %v3775_v27  ;;  %v8011_v42 = vld [vmem:[%s10998_s6] ss:$0 sm:$0xff] }
0x23d0   :  { %v3773_v10 = vpop.permute.xlu0 %3772 }
0x23d1   :  { %v3782_v43 = vsel %vm1136_vm5, %v3780_v36, %v3773_v10  ;;  %v8010_v36 = vld [vmem:[%s10997_s30] ss:$0 sm:$0xff] }
0x23d2   :  { %8802 = vmatprep.mubr.msk.f32.mxu0 %vm167_vm0, %v3782_v43 }
0x23d3   :  { %8803 = vmatmul.mubr.msk.f32.vlgmr.msra.gmra.mxu0 %vm167_vm0, %v3783_v44 }
0x23d4   :  { %8817 = vmatpush3.msra.mxu0 %v3922_v59  ;;  %v10391_v59 = vld [vmem:[%s10999_s12 + $0x8] sm:$0xff] }
0x23d5   :  { %vm162_vm9 = vcmp.gt.f32.partialorder %v10391_v59, 0.5 }
0x2406   :  { %v2773_v12 = vpop.xlane.xlu0 %2772 }
0x2407   :  { %v2777_v49 = vmul.f32 0.03125, %v2773_v12 }
0x2409   :  { %v2776_v45 = vpop.xlane.xlu1 %2775  ;;  %v2779_v52 = vsub.f32 %v2767_v29, %v2777_v49 }
0x240a   :  { %v2778_v46 = vmul.f32 0.03125, %v2776_v45 }
0x240b   :  { %v2781_v57 = vmul.f32 %v2779_v52, %v2779_v52 }
0x240c   :  { %v2780_v13 = vsub.f32 %v2768_v30, %v2778_v46 }
0x240d   :  { %v2783_v58 = vsel %vm167_vm0, %v2781_v57, 0.0 }
0x240e   :  { %v2782_v47 = vmul.f32 %v2780_v13, %v2780_v13 }
0x2410   :  { %v2786_v28 = vsel %vm167_vm0, %v2782_v47, 0.0 }
0x2411   :  { %2787 = vadd.xlane.f32.xlu1 %v2786_v28 }
0x2493   :  { %v8804_v0 = vpop.f32.mrf.mxu0 }
0x2494   :  { %v10323_v53 = vadd.f32 %v8804_v0, %v10090_v54  ;;  %v3919_v54 = vld [vmem:[%s10993_s8] sm:$0xff] }
0x2495   :  { %v3860_v50 = vpop.f32.mrf.mxu0 }
0x2496   :  { %v10320_v25 = vadd.f32 %v3860_v50, %v10083_v51  ;;  %v3876_v56 = vsel %vm167_vm0, %v10323_v53, 0.0  ;;  %v3921_v51 = vld [vmem:[%s10993_s8 + $0x10] sm:$0xff] }
0x2497   :  { %8818 = vmatprep.subr.mxu0 %v3921_v51 }
0x2498   :  { %v3873_v55 = vsel %vm167_vm0, %v10320_v25, 0.0  ;;  %8819 = vmatpush3.msra.mxu0 %v3921_v51  ;;  %v10394_v51 = vld [vmem:[%s10999_s12] sm:$0xff]  ;;  %s11004_s12 = sld [smem:[#allocation18_spill]] }
0x2499   :  { %3874 = vadd.xlane.f32.xlu0 %v3873_v55  ;;  %8820 = vmatprep.subr.mxu0 %v3920_v60  ;;  %vm161_vm10 = vcmp.gt.f32.partialorder %v10394_v51, 0.5 }
0x249a   :  { %8821 = vmatpush3.msra.mxu0 %v3920_v60  ;;  %v2788_v9 = vpop.xlane.xlu1 %2787 }
0x249b   :  { %8822 = vmatprep.subr.mxu0 %v3919_v54  ;;  %v2790_v24 = vmul.f32 0.03125, %v2788_v9 }
0x249c   :  { %8823 = vmatpush3.msra.mxu0 %v3919_v54 }
0x249d   :  { %3877 = vadd.xlane.f32.xlu0 %v3876_v56  ;;  %v2792_v62 = vadd.f32 1e-06, %v2790_v24 }
0x249f   :  { %9300 = vrsqrt.f32 %v2792_v62 }
0x24a1   :  { %2784 = vadd.xlane.f32.xlu0 %v2783_v58 }
0x24ac   :  { %v9301_v1 = vpop.eup %9300 }
0x24ad   :  { %v2796_v16 = vmul.f32 %v9301_v1, %v2780_v13 }
0x24af   :  { %v2804_v21 = vmul.f32 %v7978_v17, %v2796_v16 }
0x24b1   :  { %v10345_v31 = vadd.f32 %v7979_v35, %v2804_v21 }
0x2522   :  { %v3875_v61 = vpop.xlane.xlu0 %3874 }
0x2523   :  { %v3879_v8 = vmul.f32 0.03125, %v3875_v61 }
0x2525   :  { %v3881_v39 = vsub.f32 %v10320_v25, %v3879_v8 }
0x2526   :  { %v3878_v63 = vpop.xlane.xlu0 %3877 }
0x2527   :  { %v3880_v4 = vmul.f32 0.03125, %v3878_v63  ;;  %v3883_v2 = vmul.f32 %v3881_v39, %v3881_v39 }
0x2529   :  { %v3882_v3 = vsub.f32 %v10323_v53, %v3880_v4  ;;  %v3885_v5 = vsel %vm167_vm0, %v3883_v2, 0.0 }
0x252a   :  { %3886 = vadd.xlane.f32.xlu0 %v3885_v5  ;;  %v2785_v6 = vpop.xlane.xlu0 %2784 }
0x252b   :  { %v2789_v41 = vmul.f32 0.03125, %v2785_v6  ;;  %v3884_v7 = vmul.f32 %v3882_v3, %v3882_v3 }
0x252d   :  { %v2791_v14 = vadd.f32 1e-06, %v2789_v41  ;;  %v3888_v15 = vsel %vm167_vm0, %v3884_v7, 0.0 }
0x252e   :  { %3889 = vadd.xlane.f32.xlu1 %v3888_v15 }
0x252f   :  { %9302 = vrsqrt.f32 %v2791_v14 }
0x253c   :  { %v9303_v18 = vpop.eup %9302 }
0x253d   :  { %v2795_v20 = vmul.f32 %v9303_v18, %v2779_v52 }
0x253f   :  { %v2803_v29 = vmul.f32 %v7978_v17, %v2795_v20 }
0x2541   :  { %v10343_v30 = vadd.f32 %v7979_v35, %v2803_v29 }
0x2543   :  { %8824 = vmatprep.mubr.msk.f32.mxu0 %vm167_vm0, %v10343_v30 }
0x2544   :  { %8825 = vmatmul.mubr.msk.f32.vlgmr.msra.gmra.mxu0 %vm167_vm0, %v10345_v31 }
0x25b3   :  { %v3887_v33 = vpop.xlane.xlu0 %3886 }
0x25b4   :  { %v3891_v37 = vmul.f32 0.03125, %v3887_v33 }
0x25b6   :  { %v3893_v38 = vadd.f32 1e-06, %v3891_v37 }
0x25b7   :  { %v3890_v40 = vpop.xlane.xlu1 %3889 }
0x25b8   :  { %9304 = vrsqrt.f32 %v3893_v38  ;;  %v3892_v34 = vmul.f32 0.03125, %v3890_v40 }
0x25ba   :  { %v3894_v27 = vadd.f32 1e-06, %v3892_v34 }
0x25bc   :  { %9306 = vrsqrt.f32 %v3894_v27 }
0x25c5   :  { %v9305_v48 = vpop.eup %9304 }
0x25c6   :  { %v3897_v10 = vmul.f32 %v9305_v48, %v3881_v39 }
0x25c8   :  { %v3905_v43 = vmul.f32 %v8010_v36, %v3897_v10 }
0x25c9   :  { %v9307_v44 = vpop.eup %9306 }
0x25ca   :  { %v3898_v45 = vmul.f32 %v9307_v44, %v3882_v3  ;;  %v3913_v46 = vadd.f32 %v8011_v42, %v3905_v43 }
0x25cc   :  { %v3906_v13 = vmul.f32 %v8010_v36, %v3898_v45  ;;  %8813 = vmatprep.mubr.msk.f32.mxu1 %vm167_vm0, %v3913_v46 }
0x25ce   :  { %v3914_v47 = vadd.f32 %v8011_v42, %v3906_v13 }
0x25d0   :  { %8814 = vmatmul.mubr.msk.f32.vlgmr.msra.gmra.mxu1 %vm167_vm0, %v3914_v47 }
0x2604   :  { %v10356_v28 = vpop.f32.mrf.mxu0 }
0x2605   :  { %4291 = vrot.lane.b32.xlu0 %v10356_v28, %s9485_s28  ;;  %8827 = vmatprep.subr.msk.mxu1 %vm304_vm1, %v10356_v28 }
0x2606   :  { %v10362_v12 = vpop.f32.mrf.mxu0  ;;  %8828 = vmatpush3.xpose.msk.msra.mxu1 %vm304_vm1, %v10356_v28 }
0x2607   :  { %4289 = vrot.lane.b32.xlu1 %v10362_v12, %s9485_s28  ;;  %8829 = vmatprep.subr.msk.mxu1 %vm304_vm1, %v10362_v12 }
0x260a   :  { %8830 = vmatpush3.xpose.msk.msra.mxu1 %vm304_vm1, %v10362_v12 }
0x2677   :  { %v4292_v0 = vpop.permute.xlu0 %4291 }
0x2678   :  { %8841 = vmatprep.subr.msk.mxu1 %vm304_vm1, %v4292_v0 }
0x2679   :  { %v4290_v56 = vpop.permute.xlu1 %4289 }
0x2690   :  { %v8815_v49 = vpop.f32.mrf.mxu1 }
0x2691   :  { %v10375_v55 = vmul.f32 0.35355338, %v8815_v49 }
0x2692   :  { %v3995_v50 = vpop.f32.mrf.mxu1 }
0x2693   :  { %v10373_v52 = vmul.f32 0.35355338, %v3995_v50 }
0x2695   :  { %4285 = vrot.lane.b32.xlu1 %v10373_v52, %s9485_s28  ;;  %8831 = vmatprep.mubr.msk.f32.mxu1 %vm304_vm1, %v10373_v52 }
0x2696   :  { %8832 = vmatmul.mubr.msk.f32.vlgmr.msra.gmra.mxu1 %vm304_vm1, %v10375_v55 }
0x2697   :  { %8842 = vmatpush3.xpose.msk.msra.mxu1 %vm304_vm1, %v4292_v0 }
0x2698   :  { %8843 = vmatprep.subr.msk.mxu1 %vm304_vm1, %v4290_v56 }
0x2699   :  { %4287 = vrot.lane.b32.xlu1 %v10375_v55, %s9485_s28 }
0x269b   :  { %8844 = vmatpush3.xpose.msk.msra.mxu1 %vm304_vm1, %v4290_v56 }
0x2707   :  { %v4286_v57 = vpop.permute.xlu1 %4285 }
0x2708   :  { %8845 = vmatprep.mubr.msk.f32.mxu1 %vm304_vm1, %v4286_v57 }
0x270b   :  { %v4288_v58 = vpop.permute.xlu1 %4287 }
0x270c   :  { %8846 = vmatmul.mubr.msk.f32.vlgmr.msra.gmra.mxu1 %vm304_vm1, %v4288_v58 }
0x2756   :  { %v8833_v60 = vpop.f32.mrf.mxu1 }
0x2757   :  { %v4175_v54 = vsel %vm162_vm9, -1e+18, %v8833_v60 }
0x2758   :  { %v4179_v9 = vsel %vm392_vm3, %v4175_v54, -inf  ;;  %v4165_v24 = vpop.f32.mrf.mxu1 }
0x2759   :  { %v4174_v61 = vsel %vm161_vm10, -1e+18, %v4165_v24  ;;  %4180 = vmax.xlane.f32.xlu1 %v4179_v9 }
0x275a   :  { %v4176_v8 = vsel %vm392_vm3, %v4174_v61, -inf }
0x275b   :  { %4177 = vmax.xlane.f32.xlu0 %v4176_v8 }
0x276a   :  { %4198 = vrot.lane.b32.xlu1 %v10362_v12, %s9482_s0 }
0x276e   :  { %4402 = vrot.lane.b32.xlu1 %v10356_v28, %s9484_s13 }
0x2772   :  { %4400 = vrot.lane.b32.xlu1 %v10362_v12, %s9484_s13 }
0x27cc   :  { %v8847_v39 = vpop.f32.mrf.mxu1 }
0x27cd   :  { %v4377_v2 = vsel %vm162_vm9, -1e+18, %v8847_v39 }
0x27ce   :  { %v4367_v62 = vpop.f32.mrf.mxu1  ;;  %v4381_v3 = vsel %vm392_vm3, %v4377_v2, -inf }
0x27cf   :  { %v4376_v63 = vsel %vm161_vm10, -1e+18, %v4367_v62 }
0x27d0   :  { %v4378_v4 = vsel %vm392_vm3, %v4376_v63, -inf }
0x27d1   :  { %4379 = vmax.xlane.f32.xlu0 %v4378_v4 }
0x27d5   :  { %4382 = vmax.xlane.f32.xlu0 %v4381_v3 }
0x27e2   :  { %v4181_v5 = vpop.xlane.xlu1 %4180 }
0x27e3   :  { %v4183_v6 = vsub.f32 %v4175_v54, %v4181_v5 }
0x27e4   :  { %v4178_v7 = vpop.xlane.xlu0 %4177 }
0x27e5   :  { %v4186_v41 = vmul.f32 1.442695, %v4183_v6  ;;  %v4182_v14 = vsub.f32 %v4174_v61, %v4178_v7 }
0x27e6   :  { %v4199_v35 = vpop.permute.xlu1 %4198 }
0x27e7   :  { %9308 = vpow2.f32 %v4186_v41  ;;  %v4184_v1 = vmul.f32 1.442695, %v4182_v14 }
0x27e9   :  { %9310 = vpow2.f32 %v4184_v1 }
0x27ea   :  { %v4403_v33 = vpop.permute.xlu1 %4402 }
0x27eb   :  { %4200 = vrot.lane.b32.xlu0 %v10356_v28, %s9482_s0 }
0x27ee   :  { %v4401_v27 = vpop.permute.xlu1 %4400 }
0x27f4   :  { %v9309_v15 = vpop.eup %9308 }
0x27f5   :  { %v4191_v16 = vsel %vm392_vm3, %v9309_v15, 0.0 }
0x27f6   :  { %4192 = vadd.xlane.f32.xlu1 %v4191_v16  ;;  %v9311_v17 = vpop.eup %9310 }
0x27f7   :  { %v4188_v18 = vsel %vm392_vm3, %v9311_v17, 0.0 }
0x280a   :  { %4189 = vadd.xlane.f32.xlu0 %v4188_v18 }
0x285a   :  { %v4380_v19 = vpop.xlane.xlu0 %4379 }
0x285b   :  { %v4384_v22 = vsub.f32 %v4376_v63, %v4380_v19 }
0x285d   :  { %v4386_v20 = vmul.f32 1.442695, %v4384_v22 }
0x285e   :  { %v4383_v21 = vpop.xlane.xlu0 %4382 }
0x285f   :  { %9312 = vpow2.f32 %v4386_v20  ;;  %v4385_v26 = vsub.f32 %v4377_v2, %v4383_v21 }
0x2861   :  { %v4388_v29 = vmul.f32 1.442695, %v4385_v26 }
0x2862   :  { %v4201_v32 = vpop.permute.xlu0 %4200 }
0x2863   :  { %9314 = vpow2.f32 %v4388_v29  ;;  %8834 = vmatprep.subr.mxu0 %v4201_v32 }
0x2864   :  { %8835 = vmatpush3.msra.mxu0 %v4201_v32 }
0x2865   :  { %8836 = vmatprep.subr.mxu0 %v4199_v35 }
0x2866   :  { %8837 = vmatpush3.msra.mxu0 %v4199_v35 }
0x2867   :  { %8848 = vmatprep.subr.mxu0 %v4403_v33 }
0x286c   :  { %v9313_v37 = vpop.eup %9312 }
0x286d   :  { %v4390_v38 = vsel %vm392_vm3, %v9313_v37, 0.0 }
0x286e   :  { %4391 = vadd.xlane.f32.xlu0 %v4390_v38 }
0x2870   :  { %v9315_v40 = vpop.eup %9314 }
0x2871   :  { %v4393_v34 = vsel %vm392_vm3, %v9315_v40, 0.0 }
0x2872   :  { %4394 = vadd.xlane.f32.xlu1 %v4393_v34 }
0x287f   :  { %v4193_v48 = vpop.xlane.xlu1 %4192 }
0x2880   :  { %9316 = vrcp.f32 %v4193_v48 }
0x2883   :  { %4491 = vrot.lane.b32.xlu1 %v10362_v12, %s9488_s7 }
0x2884   :  { %4493 = vrot.lane.b32.xlu0 %v10356_v28, %s9488_s7 }
0x2887   :  { %4489 = vrot.lane.b32.xlu1 %v10375_v55, %s9488_s7 }
0x2888   :  { %4487 = vrot.lane.b32.xlu0 %v10373_v52, %s9488_s7 }
0x288d   :  { %v9317_v10 = vpop.eup %9316 }
0x288e   :  { %v4197_v44 = vmul.f32 %v9317_v10, %v9309_v15 }
0x2893   :  { %v4190_v36 = vpop.xlane.xlu0 %4189 }
0x2894   :  { %9318 = vrcp.f32 %v4190_v36 }
0x28a1   :  { %v9319_v42 = vpop.eup %9318 }
0x28a2   :  { %v4196_v43 = vmul.f32 %v9319_v42, %v9311_v17 }
0x28a4   :  { %8838 = vmatprep.mubr.msk.f32.mxu0 %vm392_vm3, %v4196_v43 }
0x28a5   :  { %8839 = vmatmul.mubr.msk.f32.vlgmr.msra.gmra.mxu0 %vm392_vm3, %v4197_v44 }
0x28a6   :  { %8849 = vmatpush3.msra.mxu0 %v4403_v33 }
0x28a7   :  { %8850 = vmatprep.subr.mxu0 %v4401_v27 }
0x28a8   :  { %8851 = vmatpush3.msra.mxu0 %v4401_v27 }
0x28f7   :  { %v4392_v45 = vpop.xlane.xlu0 %4391 }
0x28f8   :  { %9320 = vrcp.f32 %v4392_v45 }
0x28fb   :  { %v4395_v46 = vpop.xlane.xlu1 %4394  ;;  %v4494_v13 = vpop.permute.xlu0 %4493 }
0x28fc   :  { %9322 = vrcp.f32 %v4395_v46  ;;  %8855 = vmatprep.subr.msk.mxu0 %vm304_vm1, %v4494_v13 }
0x28ff   :  { %v4488_v56 = vpop.permute.xlu0 %4487  ;;  %v4492_v57 = vpop.permute.xlu1 %4491 }
0x2903   :  { %v4490_v58 = vpop.permute.xlu1 %4489 }
0x2905   :  { %v9321_v47 = vpop.eup %9320 }
0x2906   :  { %v4398_v0 = vmul.f32 %v9321_v47, %v9313_v37 }
0x2908   :  { %8852 = vmatprep.mubr.msk.f32.mxu0 %vm392_vm3, %v4398_v0 }
0x2909   :  { %v9323_v49 = vpop.eup %9322 }
0x290a   :  { %v4399_v50 = vmul.f32 %v9323_v49, %v9315_v40 }
0x290c   :  { %8853 = vmatmul.mubr.msk.f32.vlgmr.msra.gmra.mxu0 %vm392_vm3, %v4399_v50 }
0x290d   :  { %8856 = vmatpush3.xpose.msk.msra.mxu0 %vm304_vm1, %v4494_v13  ;;  %8859 = vmatprep.mubr.msk.f32.mxu0 %vm304_vm1, %v4488_v56 }
0x290e   :  { %8857 = vmatprep.subr.msk.mxu0 %vm304_vm1, %v4492_v57 }
0x2911   :  { %8858 = vmatpush3.xpose.msk.msra.mxu0 %vm304_vm1, %v4492_v57 }
0x2914   :  { %8860 = vmatmul.mubr.msk.f32.vlgmr.msra.gmra.mxu0 %vm304_vm1, %v4490_v58 }
0x2965   :  { %v10440_v60 = vpop.f32.mrf.mxu0 }
0x2967   :  { %v10442_v54 = vpop.f32.mrf.mxu0 }
0x29cc   :  { %v10444_v9 = vpop.f32.mrf.mxu0 }
0x29ce   :  { %v10446_v24 = vpop.f32.mrf.mxu0 }
0x29d4   :  { %v8861_v61 = vpop.f32.mrf.mxu0 }
0x29d5   :  { %v4579_v8 = vsel %vm162_vm9, -1e+18, %v8861_v61  ;;  %v4924_v61 = vld [vmem:[%s11000_s26 + $0x18] sm:$0xff] }
0x29d6   :  { %v4583_v39 = vsel %vm392_vm3, %v4579_v8, -inf  ;;  %v4569_v62 = vpop.f32.mrf.mxu0 }
0x29d7   :  { %v4578_v63 = vsel %vm161_vm10, -1e+18, %v4569_v62  ;;  %4584 = vmax.xlane.f32.xlu1 %v4583_v39  ;;  %v4922_v39 = vld [vmem:[%s11000_s26 + $0x8] sm:$0xff]  ;;  %v4921_v62 = vld [vmem:[%s11000_s26] sm:$0xff] }
0x29d8   :  { %v4580_v4 = vsel %vm392_vm3, %v4578_v63, -inf }
0x29d9   :  { %4581 = vmax.xlane.f32.xlu0 %v4580_v4 }
0x29e8   :  { %4602 = vrot.lane.b32.xlu1 %v10362_v12, %s9487_s2 }
0x29ec   :  { %4695 = vrot.lane.b32.xlu1 %v10356_v28, %s9491_s15 }
0x29f0   :  { %4693 = vrot.lane.b32.xlu1 %v10362_v12, %s9491_s15 }
0x29f4   :  { %4691 = vrot.lane.b32.xlu1 %v10375_v55, %s9491_s15 }
0x2a60   :  { %v4585_v2 = vpop.xlane.xlu1 %4584 }
0x2a61   :  { %v4587_v3 = vsub.f32 %v4579_v8, %v4585_v2  ;;  %v4923_v8 = vld [vmem:[%s11000_s26 + $0x10] sm:$0xff] }
0x2a62   :  { %v4582_v5 = vpop.xlane.xlu0 %4581 }
0x2a63   :  { %v4590_v6 = vmul.f32 1.442695, %v4587_v3  ;;  %v4586_v41 = vsub.f32 %v4578_v63, %v4582_v5 }
0x2a64   :  { %v4603_v18 = vpop.permute.xlu1 %4602 }
0x2a65   :  { %9324 = vpow2.f32 %v4590_v6  ;;  %v4588_v7 = vmul.f32 1.442695, %v4586_v41 }
0x2a67   :  { %9326 = vpow2.f32 %v4588_v7 }
0x2a68   :  { %v4696_v22 = vpop.permute.xlu1 %4695 }
0x2a6c   :  { %v4694_v29 = vpop.permute.xlu1 %4693 }
0x2a70   :  { %v4692_v32 = vpop.permute.xlu1 %4691 }
0x2a72   :  { %v9325_v14 = vpop.eup %9324 }
0x2a73   :  { %v4595_v15 = vsel %vm392_vm3, %v9325_v14, 0.0 }
0x2a74   :  { %v9327_v1 = vpop.eup %9326  ;;  %4596 = vadd.xlane.f32.xlu0 %v4595_v15 }
0x2a75   :  { %v4592_v16 = vsel %vm392_vm3, %v9327_v1, 0.0 }
0x2a78   :  { %4593 = vadd.xlane.f32.xlu0 %v4592_v16 }
0x2a8e   :  { %4604 = vrot.lane.b32.xlu0 %v10356_v28, %s9487_s2 }
0x2a92   :  { %4689 = vrot.lane.b32.xlu0 %v10373_v52, %s9491_s15 }
0x2afd   :  { %v4597_v55 = vpop.xlane.xlu0 %4596 }
0x2afe   :  { %9328 = vrcp.f32 %v4597_v55 }
0x2b01   :  { %v4594_v17 = vpop.xlane.xlu0 %4593 }
0x2b02   :  { %9330 = vrcp.f32 %v4594_v17 }
0x2b05   :  { %v4605_v19 = vpop.permute.xlu0 %4604 }
0x2b06   :  { %8862 = vmatprep.subr.mxu1 %v4605_v19 }
0x2b07   :  { %8863 = vmatpush3.msra.mxu1 %v4605_v19 }
0x2b08   :  { %8864 = vmatprep.subr.mxu1 %v4603_v18 }
0x2b09   :  { %8865 = vmatpush3.msra.mxu1 %v4603_v18  ;;  %v4690_v52 = vpop.permute.xlu0 %4689 }
0x2b0a   :  { %8869 = vmatprep.subr.msk.mxu1 %vm304_vm1, %v4696_v22 }
0x2b0b   :  { %v9329_v20 = vpop.eup %9328 }
0x2b0c   :  { %v4601_v35 = vmul.f32 %v9329_v20, %v9325_v14 }
0x2b0f   :  { %v9331_v21 = vpop.eup %9330 }
0x2b10   :  { %v4600_v26 = vmul.f32 %v9331_v21, %v9327_v1 }
0x2b12   :  { %8866 = vmatprep.mubr.msk.f32.mxu1 %vm392_vm3, %v4600_v26 }
0x2b13   :  { %8867 = vmatmul.mubr.msk.f32.vlgmr.msra.gmra.mxu1 %vm392_vm3, %v4601_v35 }
0x2b14   :  { %8870 = vmatpush3.xpose.msk.msra.mxu1 %vm304_vm1, %v4696_v22  ;;  %8873 = vmatprep.mubr.msk.f32.mxu1 %vm304_vm1, %v4690_v52 }
0x2b15   :  { %8871 = vmatprep.subr.msk.mxu1 %vm304_vm1, %v4694_v29 }
0x2b18   :  { %8872 = vmatpush3.xpose.msk.msra.mxu1 %vm304_vm1, %v4694_v29 }
0x2b1b   :  { %8874 = vmatmul.mubr.msk.f32.vlgmr.msra.gmra.mxu1 %vm304_vm1, %v4692_v32 }
0x2bd3   :  { %v8868_v33 = vpop.f32.mrf.mxu1 }
0x2bd5   :  { %v4680_v37 = vpop.f32.mrf.mxu1 }
0x2bdb   :  { %v8875_v38 = vpop.f32.mrf.mxu1 }
0x2bdc   :  { %v4781_v40 = vsel %vm162_vm9, -1e+18, %v8875_v38  ;;  %v5055_v38 = vld [vmem:[%s11001_s29 + $0x18] sm:$0xff] }
0x2bdd   :  { %v4785_v34 = vsel %vm392_vm3, %v4781_v40, -inf  ;;  %v4771_v27 = vpop.f32.mrf.mxu1  ;;  %8894 = vmatprep.subr.mxu1 %v5055_v38 }
0x2bde   :  { %v4780_v48 = vsel %vm161_vm10, -1e+18, %v4771_v27  ;;  %4786 = vmax.xlane.f32.xlu1 %v4785_v34  ;;  %8895 = vmatpush3.msra.mxu1 %v5055_v38  ;;  %v5053_v34 = vld [vmem:[%s11001_s29 + $0x8] sm:$0xff]  ;;  %v5052_v27 = vld [vmem:[%s11001_s29] sm:$0xff] }
0x2bdf   :  { %v4782_v36 = vsel %vm392_vm3, %v4780_v48, -inf }
0x2be0   :  { %4783 = vmax.xlane.f32.xlu0 %v4782_v36  ;;  %v5152_v36 = vld [vmem:[%s11002_s14 + $0x30] sm:$0xff] }
0x2bef   :  { %4804 = vrot.lane.b32.xlu1 %v10362_v12, %s9490_s11 }
0x2bf3   :  { %4893 = vrot.lane.b32.xlu1 %v10446_v24, %s9493_s18 }
0x2bf7   :  { %4895 = vrot.lane.b32.xlu1 %v10444_v9, %s9493_s18 }
0x2bfb   :  { %4903 = vrot.lane.b32.xlu1 %v8868_v33, %s10968_s22 }
0x2c67   :  { %v4787_v10 = vpop.xlane.xlu1 %4786 }
0x2c68   :  { %v4789_v42 = vsub.f32 %v4781_v40, %v4787_v10  ;;  %v5054_v40 = vld [vmem:[%s11001_s29 + $0x10] sm:$0xff]  ;;  %v5151_v10 = vld [vmem:[%s11002_s14 + $0x28] sm:$0xff] }
0x2c69   :  { %v4784_v43 = vpop.xlane.xlu0 %4783  ;;  %8896 = vmatprep.subr.mxu1 %v5054_v40 }
0x2c6a   :  { %v4792_v44 = vmul.f32 1.442695, %v4789_v42  ;;  %v4788_v45 = vsub.f32 %v4780_v48, %v4784_v43  ;;  %8897 = vmatpush3.msra.mxu1 %v5054_v40  ;;  %v5153_v48 = vld [vmem:[%s11002_s14 + $0x38] sm:$0xff]  ;;  %v5150_v42 = vld [vmem:[%s11002_s14 + $0x20] sm:$0xff] }
0x2c6b   :  { %v4805_v57 = vpop.permute.xlu1 %4804  ;;  %8898 = vmatprep.subr.mxu1 %v5053_v34 }
0x2c6c   :  { %9332 = vpow2.f32 %v4792_v44  ;;  %v4790_v46 = vmul.f32 1.442695, %v4788_v45  ;;  %8899 = vmatpush3.msra.mxu1 %v5053_v34 }
0x2c6d   :  { %8900 = vmatprep.subr.mxu1 %v5052_v27 }
0x2c6e   :  { %9334 = vpow2.f32 %v4790_v46  ;;  %8901 = vmatpush3.msra.mxu1 %v5052_v27 }
0x2c6f   :  { %v4894_v2 = vpop.permute.xlu1 %4893 }
0x2c70   :  { %v4915_v41 = vsel %vm304_vm1, %v10442_v54, %v4894_v2 }
0x2c73   :  { %v4896_v3 = vpop.permute.xlu1 %4895 }
0x2c74   :  { %v4916_v14 = vsel %vm304_vm1, %v10440_v60, %v4896_v3 }
0x2c77   :  { %v4904_v5 = vpop.permute.xlu1 %4903 }
0x2c78   :  { %v4918_v16 = vsel %vm392_vm3, %v4916_v14, %v4904_v5 }
0x2c79   :  { %v9333_v13 = vpop.eup %9332 }
0x2c7a   :  { %v4797_v47 = vsel %vm392_vm3, %v9333_v13, 0.0 }
0x2c7b   :  { %v9335_v12 = vpop.eup %9334  ;;  %4798 = vadd.xlane.f32.xlu0 %v4797_v47 }
0x2c7c   :  { %v4794_v0 = vsel %vm392_vm3, %v9335_v12, 0.0 }
0x2c7f   :  { %4795 = vadd.xlane.f32.xlu0 %v4794_v0  ;;  %v8042_v0 = vld [vmem:[%s11003_s24] ss:$0 sm:$0xff] }
0x2c95   :  { %4806 = vrot.lane.b32.xlu0 %v10356_v28, %s9490_s11 }
0x2c99   :  { %4901 = vrot.lane.b32.xlu0 %v4680_v37, %s10968_s22  ;;  %s11006_s22 = sld [smem:[#allocation22_spill]] }
0x2c9f   :  { %v8049_v14 = vld [vmem:[%s11006_s22] ss:$0 sm:$0xff] }
0x2d04   :  { %v4799_v49 = vpop.xlane.xlu0 %4798 }
0x2d05   :  { %9336 = vrcp.f32 %v4799_v49 }
0x2d08   :  { %v4796_v50 = vpop.xlane.xlu0 %4795 }
0x2d09   :  { %9338 = vrcp.f32 %v4796_v50  ;;  %v8043_v50 = vld [vmem:[%s11004_s12] ss:$0 sm:$0xff] }
0x2d0c   :  { %v4807_v56 = vpop.permute.xlu0 %4806 }
0x2d0d   :  { %8876 = vmatprep.subr.mxu0 %v4807_v56 }
0x2d0e   :  { %8877 = vmatpush3.msra.mxu0 %v4807_v56 }
0x2d0f   :  { %8878 = vmatprep.subr.mxu0 %v4805_v57 }
0x2d10   :  { %8879 = vmatpush3.msra.mxu0 %v4805_v57  ;;  %v4902_v6 = vpop.permute.xlu0 %4901 }
0x2d11   :  { %8883 = vmatprep.subr.mxu0 %v4924_v61  ;;  %v4917_v15 = vsel %vm392_vm3, %v4915_v41, %v4902_v6 }
0x2d12   :  { %v9337_v58 = vpop.eup %9336 }
0x2d13   :  { %v4803_v28 = vmul.f32 %v9337_v58, %v9333_v13 }
0x2d16   :  { %v9339_v9 = vpop.eup %9338 }
0x2d17   :  { %v4802_v24 = vmul.f32 %v9339_v9, %v9335_v12 }
0x2d19   :  { %8880 = vmatprep.mubr.msk.f32.mxu0 %vm392_vm3, %v4802_v24 }
0x2d1a   :  { %8881 = vmatmul.mubr.msk.f32.vlgmr.msra.gmra.mxu0 %vm392_vm3, %v4803_v28 }
0x2d1b   :  { %8884 = vmatpush3.msra.mxu0 %v4924_v61  ;;  %v5149_v61 = vld [vmem:[%s11002_s14 + $0x18] sm:$0xff] }
0x2d1c   :  { %8885 = vmatprep.subr.mxu0 %v4923_v8 }
0x2d1d   :  { %8886 = vmatpush3.msra.mxu0 %v4923_v8  ;;  %v5148_v8 = vld [vmem:[%s11002_s14 + $0x10] sm:$0xff] }
0x2d1e   :  { %8887 = vmatprep.subr.mxu0 %v4922_v39 }
0x2d1f   :  { %8888 = vmatpush3.msra.mxu0 %v4922_v39  ;;  %v5147_v39 = vld [vmem:[%s11002_s14 + $0x8] sm:$0xff] }
0x2d20   :  { %8889 = vmatprep.subr.mxu0 %v4921_v62 }
0x2d21   :  { %8890 = vmatpush3.msra.mxu0 %v4921_v62  ;;  %v5146_v62 = vld [vmem:[%s11002_s14] sm:$0xff] }
0x2d22   :  { %8905 = vmatprep.subr.mxu0 %v5153_v48 }
0x2dda   :  { %v8882_v63 = vpop.f32.mrf.mxu0 }
0x2ddb   :  { %4911 = vrot.lane.b32.xlu1 %v8882_v63, %s10966_s23 }
0x2ddc   :  { %v4882_v4 = vpop.f32.mrf.mxu0 }
0x2ddd   :  { %4909 = vrot.lane.b32.xlu0 %v4882_v4, %s10966_s23  ;;  %s11005_s23 = sld [smem:[#allocation20_spill]] }
0x2de3   :  { %v8044_v63 = vld [vmem:[%s11005_s23] ss:$0 sm:$0xff] }
0x2e4d   :  { %v4912_v7 = vpop.permute.xlu1 %4911 }
0x2e4e   :  { %v4920_v17 = vsel %vm1136_vm5, %v4918_v16, %v4912_v7 }
0x2e4f   :  { %v4910_v1 = vpop.permute.xlu0 %4909 }
0x2e50   :  { %v4919_v55 = vsel %vm1136_vm5, %v4917_v15, %v4910_v1 }
0x2e51   :  { %8891 = vmatprep.mubr.msk.f32.mxu0 %vm167_vm0, %v4919_v55 }
0x2e52   :  { %8892 = vmatmul.mubr.msk.f32.vlgmr.msra.gmra.mxu0 %vm167_vm0, %v4920_v17 }
0x2e53   :  { %8906 = vmatpush3.msra.mxu0 %v5153_v48 }
0x2e54   :  { %8907 = vmatprep.subr.mxu0 %v5152_v36 }
0x2e55   :  { %8908 = vmatpush3.msra.mxu0 %v5152_v36 }
0x2e56   :  { %8909 = vmatprep.subr.mxu0 %v5151_v10 }
0x2e57   :  { %8910 = vmatpush3.msra.mxu0 %v5151_v10 }
0x2e58   :  { %8911 = vmatprep.subr.mxu0 %v5150_v42 }
0x2e59   :  { %8912 = vmatpush3.msra.mxu0 %v5150_v42  ;;  %v8052_v42 = vld [vmem:[%s10989_s9 + $0x1] ss:$0 sm:$0xff] }
0x2e5a   :  { %8913 = vmatprep.subr.mxu0 %v5149_v61 }
0x2e5b   :  { %8914 = vmatpush3.msra.mxu0 %v5149_v61 }
0x2e5c   :  { %8915 = vmatprep.subr.mxu0 %v5148_v8 }
0x2e5d   :  { %8916 = vmatpush3.msra.mxu0 %v5148_v8 }
0x2e5e   :  { %8917 = vmatprep.subr.mxu0 %v5147_v39 }
0x2e5f   :  { %8918 = vmatpush3.msra.mxu0 %v5147_v39 }
0x2e60   :  { %8919 = vmatprep.subr.mxu0 %v5146_v62 }
0x2e61   :  { %8920 = vmatpush3.msra.mxu0 %v5146_v62 }
0x2f12   :  { %v8893_v18 = vpop.f32.mrf.mxu0 }
0x2f13   :  { %v10513_v54 = vadd.f32 %v8893_v18, %v10323_v53 }
0x2f14   :  { %v4997_v19 = vpop.f32.mrf.mxu0 }
0x2f15   :  { %v10516_v60 = vadd.f32 %v4997_v19, %v10320_v25  ;;  %v5013_v22 = vsel %vm167_vm0, %v10513_v54, 0.0 }
0x2f16   :  { %5014 = vadd.xlane.f32.xlu1 %v5013_v22 }
0x2f17   :  { %v5010_v20 = vsel %vm167_vm0, %v10516_v60, 0.0 }
0x2f18   :  { %5011 = vadd.xlane.f32.xlu0 %v5010_v20 }
0x2f9f   :  { %v5015_v21 = vpop.xlane.xlu1 %5014 }
0x2fa0   :  { %v5017_v26 = vmul.f32 0.03125, %v5015_v21 }
0x2fa1   :  { %v5012_v35 = vpop.xlane.xlu0 %5011 }
0x2fa2   :  { %v5016_v53 = vmul.f32 0.03125, %v5012_v35  ;;  %v5019_v52 = vsub.f32 %v10513_v54, %v5017_v26 }
0x2fa4   :  { %v5018_v25 = vsub.f32 %v10516_v60, %v5016_v53  ;;  %v5021_v33 = vmul.f32 %v5019_v52, %v5019_v52 }
0x2fa6   :  { %v5020_v29 = vmul.f32 %v5018_v25, %v5018_v25  ;;  %v5025_v37 = vsel %vm167_vm0, %v5021_v33, 0.0  ;;  %v8055_v33 = vld [vmem:[%s9601_s20 + $0x28] sm:$0xff] }
0x2fa8   :  { %v5022_v32 = vsel %vm167_vm0, %v5020_v29, 0.0  ;;  %v8057_v29 = vld [vmem:[%s9601_s20 + $0x38] sm:$0xff] }
0x2fa9   :  { %5023 = vadd.xlane.f32.xlu0 %v5022_v32  ;;  %v8056_v32 = vld [vmem:[%s9601_s20 + $0x30] sm:$0xff]  ;;  %8924 = vmatprep.subr.mxu1 %v8057_v29 }
0x2fad   :  { %5026 = vadd.xlane.f32.xlu0 %v5025_v37  ;;  %v8054_v37 = vld [vmem:[%s9601_s20 + $0x20] sm:$0xff]  ;;  %s11007_s20 = smov 16  }
0x3032   :  { %v5024_v43 = vpop.xlane.xlu0 %5023 }
0x3033   :  { %v5028_v44 = vmul.f32 0.03125, %v5024_v43 }
0x3035   :  { %v5030_v45 = vadd.f32 1e-06, %v5028_v44 }
0x3036   :  { %v5027_v46 = vpop.xlane.xlu0 %5026 }
0x3037   :  { %9340 = vrsqrt.f32 %v5030_v45  ;;  %v5029_v13 = vmul.f32 0.03125, %v5027_v46 }
0x3039   :  { %v5031_v47 = vadd.f32 1e-06, %v5029_v13  ;;  %v8053_v13 = vld [vmem:[%s10990_s25 + $0x1] ss:$0 sm:$0xff] }
0x303b   :  { %9342 = vrsqrt.f32 %v5031_v47 }
0x3044   :  { %v9341_v12 = vpop.eup %9340 }
0x3045   :  { %v5034_v49 = vmul.f32 %v9341_v12, %v5018_v25 }
0x3047   :  { %v5042_v56 = vmul.f32 %v8042_v0, %v5034_v49 }
0x3048   :  { %v9343_v57 = vpop.eup %9342 }
0x3049   :  { %v5035_v58 = vmul.f32 %v9343_v57, %v5019_v52  ;;  %v5050_v9 = vadd.f32 %v8043_v50, %v5042_v56 }
0x304b   :  { %v5043_v24 = vmul.f32 %v8042_v0, %v5035_v58  ;;  %8902 = vmatprep.mubr.msk.f32.mxu1 %vm167_vm0, %v5050_v9 }
0x304d   :  { %v5051_v28 = vadd.f32 %v8043_v50, %v5043_v24 }
0x304f   :  { %8903 = vmatmul.mubr.msk.f32.vlgmr.msra.gmra.mxu1 %vm167_vm0, %v5051_v28 }
0x3050   :  { %8925 = vmatpush3.msra.mxu1 %v8057_v29 }
0x3051   :  { %8926 = vmatprep.subr.mxu1 %v8056_v32 }
0x3052   :  { %8927 = vmatpush3.msra.mxu1 %v8056_v32 }
0x3053   :  { %8928 = vmatprep.subr.mxu1 %v8055_v33 }
0x3054   :  { %8929 = vmatpush3.msra.mxu1 %v8055_v33 }
0x3055   :  { %8930 = vmatprep.subr.mxu1 %v8054_v37 }
0x3056   :  { %8931 = vmatpush3.msra.mxu1 %v8054_v37 }
0x310f   :  { %v8904_v4 = vpop.f32.mrf.mxu1 }
0x3110   :  { %v5141_v2 = vadd.f32 %v8904_v4, %v8044_v63 }
0x3111   :  { %v5135_v3 = vpop.f32.mrf.mxu1 }
0x3112   :  { %v5136_v5 = vadd.f32 %v8044_v63, %v5135_v3  ;;  %v5145_v41 = vmax.f32 %v5141_v2, 0.0 }
0x3114   :  { %v5144_v6 = vmax.f32 %v5136_v5, 0.0 }
0x3116   :  { %8921 = vmatprep.mubr.msk.f32.mxu0 %vm1372_vm6, %v5144_v6 }
0x3117   :  { %8922 = vmatmul.mubr.msk.f32.vlgmr.msra.gmra.mxu0 %vm1372_vm6, %v5145_v41 }
0x31d7   :  { %v8923_v7 = vpop.f32.mrf.mxu0 }
0x31d8   :  { %v5236_v15 = vadd.f32 %v8923_v7, %v10513_v54 }
0x31d9   :  { %v5226_v1 = vpop.f32.mrf.mxu0 }
0x31da   :  { %v10547_v16 = vadd.f32 %v8049_v14, %v5236_v15  ;;  %v5235_v55 = vadd.f32 %v5226_v1, %v10516_v60 }
0x31dc   :  { %v10550_v17 = vadd.f32 %v8049_v14, %v5235_v55  ;;  %v5253_v18 = vsel %vm167_vm0, %v10547_v16, 0.0 }
0x31dd   :  { %5254 = vadd.xlane.f32.xlu1 %v5253_v18 }
0x31de   :  { %v5250_v19 = vsel %vm167_vm0, %v10550_v17, 0.0 }
0x31df   :  { %5251 = vadd.xlane.f32.xlu0 %v5250_v19 }
0x3266   :  { %v5255_v22 = vpop.xlane.xlu1 %5254 }
0x3267   :  { %v5257_v54 = vmul.f32 0.03125, %v5255_v22 }
0x3268   :  { %v5252_v20 = vpop.xlane.xlu0 %5251 }
0x3269   :  { %v5259_v21 = vsub.f32 %v10547_v16, %v5257_v54  ;;  %v5256_v60 = vmul.f32 0.03125, %v5252_v20 }
0x326b   :  { %v5258_v26 = vsub.f32 %v10550_v17, %v5256_v60  ;;  %v5261_v35 = vmul.f32 %v5259_v21, %v5259_v21 }
0x326d   :  { %v5265_v53 = vsel %vm167_vm0, %v5261_v35, 0.0  ;;  %v5260_v52 = vmul.f32 %v5258_v26, %v5258_v26 }
0x326e   :  { %5266 = vadd.xlane.f32.xlu1 %v5265_v53 }
0x326f   :  { %v5262_v25 = vsel %vm167_vm0, %v5260_v52, 0.0 }
0x3270   :  { %5263 = vadd.xlane.f32.xlu0 %v5262_v25 }
0x32f7   :  { %v5267_v38 = vpop.xlane.xlu1 %5266 }
0x32f8   :  { %v5269_v40 = vmul.f32 0.03125, %v5267_v38 }
0x32f9   :  { %v5264_v34 = vpop.xlane.xlu0 %5263 }
0x32fa   :  { %v5271_v27 = vadd.f32 1e-06, %v5269_v40  ;;  %v5268_v48 = vmul.f32 0.03125, %v5264_v34 }
0x32fc   :  { %9344 = vrsqrt.f32 %v5271_v27  ;;  %v5270_v36 = vadd.f32 1e-06, %v5268_v48 }
0x32fe   :  { %9346 = vrsqrt.f32 %v5270_v36 }
0x3309   :  { %v9345_v10 = vpop.eup %9344 }
0x330a   :  { %v5275_v43 = vmul.f32 %v9345_v10, %v5259_v21 }
0x330b   :  { %v9347_v44 = vpop.eup %9346 }
0x330c   :  { %v5274_v45 = vmul.f32 %v9347_v44, %v5258_v26  ;;  %v5283_v46 = vmul.f32 %v8052_v42, %v5275_v43 }
0x330e   :  { %v5282_v47 = vmul.f32 %v8052_v42, %v5274_v45  ;;  %v5291_v0 = vadd.f32 %v8053_v13, %v5283_v46 }
0x3310   :  { %v5290_v12 = vadd.f32 %v8053_v13, %v5282_v47 }
0x3312   :  { %8932 = vmatprep.mubr.msk.f32.mxu1 %vm167_vm0, %v5290_v12 }
0x3313   :  { %8933 = vmatmul.mubr.msk.f32.vlgmr.msra.gmra.mxu1 %vm167_vm0, %v5291_v0 }
0x33d3   :  { %v10568_v49 = vpop.f32.mrf.mxu1 }
0x33d4   :  { %5384 = vrot.lane.b32.xlu0 %v10568_v49, %s9482_s0  ;;  %v10588_v57 = vmul.f32 0.35355338, %v10568_v49 }
0x33d5   :  { %v10572_v50 = vpop.f32.mrf.mxu1 }
0x33d6   :  { %5382 = vrot.lane.b32.xlu1 %v10572_v50, %s9482_s0  ;;  %v10577_v56 = vmul.f32 0.35355338, %v10572_v50 }
0x33d8   :  { %5582 = vrot.lane.b32.xlu0 %v10577_v56, %s9485_s28  ;;  %8939 = vmatprep.mubr.msk.f32.mxu1 %vm304_vm1, %v10577_v56 }
0x33da   :  { %5588 = vrot.lane.b32.xlu1 %v10568_v49, %s9484_s13 }
0x33de   :  { %5586 = vrot.lane.b32.xlu1 %v10572_v50, %s9484_s13 }
0x33e2   :  { %5584 = vrot.lane.b32.xlu1 %v10588_v57, %s9485_s28 }
0x3446   :  { %v5385_v58 = vpop.permute.xlu0 %5384 }
0x3447   :  { %8935 = vmatprep.subr.msk.mxu1 %vm304_vm1, %v5385_v58 }
0x3448   :  { %8936 = vmatpush3.xpose.msk.msra.mxu1 %vm304_vm1, %v5385_v58  ;;  %v5383_v9 = vpop.permute.xlu1 %5382 }
0x3449   :  { %8937 = vmatprep.subr.msk.mxu1 %vm304_vm1, %v5383_v9 }
0x344a   :  { %v5583_v28 = vpop.permute.xlu0 %5582 }
0x344c   :  { %8938 = vmatpush3.xpose.msk.msra.mxu1 %vm304_vm1, %v5383_v9  ;;  %v5589_v24 = vpop.permute.xlu1 %5588 }
0x344d   :  { %8949 = vmatprep.subr.msk.mxu1 %vm304_vm1, %v5589_v24 }
0x344f   :  { %8940 = vmatmul.mubr.msk.f32.vlgmr.msra.gmra.mxu1 %vm304_vm1, %v10588_v57 }
0x3450   :  { %v5587_v61 = vpop.permute.xlu1 %5586  ;;  %8950 = vmatpush3.xpose.msk.msra.mxu1 %vm304_vm1, %v5589_v24  ;;  %8953 = vmatprep.mubr.msk.f32.mxu1 %vm304_vm1, %v5583_v28 }
0x3451   :  { %8951 = vmatprep.subr.msk.mxu1 %vm304_vm1, %v5587_v61 }
0x3454   :  { %8952 = vmatpush3.xpose.msk.msra.mxu1 %vm304_vm1, %v5587_v61  ;;  %v5585_v8 = vpop.permute.xlu1 %5584 }
0x3457   :  { %8954 = vmatmul.mubr.msk.f32.vlgmr.msra.gmra.mxu1 %vm304_vm1, %v5585_v8 }
0x350f   :  { %v8941_v39 = vpop.f32.mrf.mxu1 }
0x3510   :  { %v5472_v62 = vsel %vm158_vm7, -1e+18, %v8941_v39 }
0x3511   :  { %v5476_v63 = vsel %vm392_vm3, %v5472_v62, -inf  ;;  %v5462_v4 = vpop.f32.mrf.mxu1 }
0x3512   :  { %v5471_v2 = vsel %vm157_vm8, -1e+18, %v5462_v4  ;;  %5477 = vmax.xlane.f32.xlu1 %v5476_v63 }
0x3513   :  { %v5473_v3 = vsel %vm392_vm3, %v5471_v2, -inf }
0x3514   :  { %5474 = vmax.xlane.f32.xlu0 %v5473_v3 }
0x3517   :  { %v8955_v5 = vpop.f32.mrf.mxu1 }
0x3518   :  { %v5674_v14 = vsel %vm158_vm7, -1e+18, %v8955_v5 }
0x3519   :  { %v5664_v6 = vpop.f32.mrf.mxu1  ;;  %v5678_v15 = vsel %vm392_vm3, %v5674_v14, -inf }
0x351a   :  { %v5673_v41 = vsel %vm157_vm8, -1e+18, %v5664_v6 }
0x351b   :  { %v5675_v7 = vsel %vm392_vm3, %v5673_v41, -inf }
0x351c   :  { %5676 = vmax.xlane.f32.xlu0 %v5675_v7 }
0x3520   :  { %5679 = vmax.xlane.f32.xlu0 %v5678_v15 }
0x3523   :  { %5495 = vrot.lane.b32.xlu1 %v10572_v50, %s9483_s5 }
0x3527   :  { %5699 = vrot.lane.b32.xlu1 %v10568_v49, %s9486_s1 }
0x352b   :  { %5697 = vrot.lane.b32.xlu1 %v10572_v50, %s9486_s1 }
0x3536   :  { %5497 = vrot.lane.b32.xlu0 %v10568_v49, %s9483_s5  ;;  %s11008_s5 = smov 24  }
0x359b   :  { %v5478_v1 = vpop.xlane.xlu1 %5477 }
0x359c   :  { %v5480_v55 = vsub.f32 %v5472_v62, %v5478_v1 }
0x359d   :  { %v5475_v18 = vpop.xlane.xlu0 %5474 }
0x359e   :  { %v5483_v19 = vmul.f32 1.442695, %v5480_v55  ;;  %v5479_v22 = vsub.f32 %v5471_v2, %v5475_v18 }
0x359f   :  { %v5496_v53 = vpop.permute.xlu1 %5495 }
0x35a0   :  { %9348 = vpow2.f32 %v5483_v19  ;;  %v5481_v54 = vmul.f32 1.442695, %v5479_v22 }
0x35a2   :  { %9350 = vpow2.f32 %v5481_v54 }
0x35a3   :  { %v5700_v38 = vpop.permute.xlu1 %5699 }
0x35a5   :  { %v5677_v20 = vpop.xlane.xlu0 %5676 }
0x35a6   :  { %v5681_v21 = vsub.f32 %v5673_v41, %v5677_v20 }
0x35a7   :  { %v5698_v36 = vpop.permute.xlu1 %5697 }
0x35a8   :  { %v5683_v60 = vmul.f32 1.442695, %v5681_v21 }
0x35a9   :  { %v5680_v26 = vpop.xlane.xlu0 %5679 }
0x35aa   :  { %9352 = vpow2.f32 %v5683_v60  ;;  %v5682_v35 = vsub.f32 %v5674_v14, %v5680_v26 }
0x35ac   :  { %v5685_v52 = vmul.f32 1.442695, %v5682_v35 }
0x35ad   :  { %v9349_v25 = vpop.eup %9348  ;;  %v5498_v29 = vpop.permute.xlu0 %5497 }
0x35ae   :  { %9354 = vpow2.f32 %v5685_v52  ;;  %8942 = vmatprep.subr.mxu0 %v5498_v29  ;;  %v5488_v32 = vsel %vm392_vm3, %v9349_v25, 0.0 }
0x35af   :  { %v9351_v33 = vpop.eup %9350  ;;  %5489 = vadd.xlane.f32.xlu1 %v5488_v32  ;;  %8943 = vmatpush3.msra.mxu0 %v5498_v29 }
0x35b0   :  { %8944 = vmatprep.subr.mxu0 %v5496_v53  ;;  %v5485_v37 = vsel %vm392_vm3, %v9351_v33, 0.0 }
0x35b1   :  { %5486 = vadd.xlane.f32.xlu0 %v5485_v37  ;;  %8945 = vmatpush3.msra.mxu0 %v5496_v53 }
0x35b2   :  { %8956 = vmatprep.subr.mxu0 %v5700_v38 }
0x35b7   :  { %v9353_v40 = vpop.eup %9352 }
0x35b8   :  { %v5687_v34 = vsel %vm392_vm3, %v9353_v40, 0.0 }
0x35b9   :  { %5688 = vadd.xlane.f32.xlu0 %v5687_v34 }
0x35bb   :  { %v9355_v27 = vpop.eup %9354 }
0x35bc   :  { %v5690_v48 = vsel %vm392_vm3, %v9355_v27, 0.0 }
0x35bd   :  { %5691 = vadd.xlane.f32.xlu1 %v5690_v48 }
0x35ce   :  { %5788 = vrot.lane.b32.xlu1 %v10572_v50, %s9487_s2 }
0x35cf   :  { %5790 = vrot.lane.b32.xlu0 %v10568_v49, %s9487_s2 }
0x35d2   :  { %5786 = vrot.lane.b32.xlu1 %v10588_v57, %s9488_s7 }
0x35d3   :  { %5784 = vrot.lane.b32.xlu0 %v10577_v56, %s9488_s7 }
0x3638   :  { %v5490_v10 = vpop.xlane.xlu1 %5489 }
0x3639   :  { %9356 = vrcp.f32 %v5490_v10 }
0x363a   :  { %v5487_v42 = vpop.xlane.xlu0 %5486 }
0x363b   :  { %9358 = vrcp.f32 %v5487_v42 }
0x3642   :  { %v5689_v43 = vpop.xlane.xlu0 %5688 }
0x3643   :  { %9360 = vrcp.f32 %v5689_v43 }
0x3646   :  { %v5692_v44 = vpop.xlane.xlu1 %5691  ;;  %v9357_v45 = vpop.eup %9356 }
0x3647   :  { %9362 = vrcp.f32 %v5692_v44  ;;  %v5494_v47 = vmul.f32 %v9357_v45, %v9349_v25  ;;  %v5791_v12 = vpop.permute.xlu0 %5790 }
0x3648   :  { %v9359_v46 = vpop.eup %9358 }
0x3649   :  { %v5493_v13 = vmul.f32 %v9359_v46, %v9351_v33 }
0x364a   :  { %v5789_v61 = vpop.permute.xlu1 %5788 }
0x364b   :  { %8946 = vmatprep.mubr.msk.f32.mxu0 %vm392_vm3, %v5493_v13  ;;  %v5785_v28 = vpop.permute.xlu0 %5784 }
0x364c   :  { %8947 = vmatmul.mubr.msk.f32.vlgmr.msra.gmra.mxu0 %vm392_vm3, %v5494_v47 }
0x364d   :  { %8957 = vmatpush3.msra.mxu0 %v5700_v38 }
0x364e   :  { %8958 = vmatprep.subr.mxu0 %v5698_v36  ;;  %v5787_v8 = vpop.permute.xlu1 %5786 }
0x364f   :  { %8959 = vmatpush3.msra.mxu0 %v5698_v36 }
0x3650   :  { %v9361_v0 = vpop.eup %9360  ;;  %8963 = vmatprep.subr.msk.mxu0 %vm304_vm1, %v5791_v12 }
0x3651   :  { %v5695_v58 = vmul.f32 %v9361_v0, %v9353_v40 }
0x3653   :  { %8960 = vmatprep.mubr.msk.f32.mxu0 %vm392_vm3, %v5695_v58 }
0x3654   :  { %v9363_v9 = vpop.eup %9362 }
0x3655   :  { %v5696_v24 = vmul.f32 %v9363_v9, %v9355_v27 }
0x3657   :  { %8961 = vmatmul.mubr.msk.f32.vlgmr.msra.gmra.mxu0 %vm392_vm3, %v5696_v24 }
0x3658   :  { %8964 = vmatpush3.xpose.msk.msra.mxu0 %vm304_vm1, %v5791_v12  ;;  %8967 = vmatprep.mubr.msk.f32.mxu0 %vm304_vm1, %v5785_v28 }
0x3659   :  { %8965 = vmatprep.subr.msk.mxu0 %vm304_vm1, %v5789_v61 }
0x365c   :  { %8966 = vmatpush3.xpose.msk.msra.mxu0 %vm304_vm1, %v5789_v61 }
0x365f   :  { %8968 = vmatmul.mubr.msk.f32.vlgmr.msra.gmra.mxu0 %vm304_vm1, %v5787_v8 }
0x370c   :  { %v10646_v39 = vpop.f32.mrf.mxu0 }
0x370e   :  { %v10648_v62 = vpop.f32.mrf.mxu0 }
0x3717   :  { %v10650_v63 = vpop.f32.mrf.mxu0 }
0x3719   :  { %v10652_v4 = vpop.f32.mrf.mxu0 }
0x371f   :  { %v8969_v2 = vpop.f32.mrf.mxu0 }
0x3720   :  { %v5876_v3 = vsel %vm158_vm7, -1e+18, %v8969_v2  ;;  %v8085_v2 = vld [vmem:[%s10992_s3 + $0x28] sm:$0xff] }
0x3721   :  { %v5880_v5 = vsel %vm392_vm3, %v5876_v3, -inf  ;;  %v5866_v6 = vpop.f32.mrf.mxu0 }
0x3722   :  { %v5875_v41 = vsel %vm157_vm8, -1e+18, %v5866_v6  ;;  %5881 = vmax.xlane.f32.xlu1 %v5880_v5  ;;  %v8101_v5 = vld [vmem:[%s10993_s8 + $0x38] sm:$0xff] }
0x3723   :  { %v5877_v7 = vsel %vm392_vm3, %v5875_v41, -inf }
0x3724   :  { %5878 = vmax.xlane.f32.xlu0 %v5877_v7 }
0x3733   :  { %5899 = vrot.lane.b32.xlu1 %v10572_v50, %s9489_s10 }
0x3737   :  { %5992 = vrot.lane.b32.xlu1 %v10568_v49, %s9490_s11 }
0x373b   :  { %5990 = vrot.lane.b32.xlu1 %v10572_v50, %s9490_s11 }
0x373f   :  { %5988 = vrot.lane.b32.xlu1 %v10588_v57, %s9491_s15 }
0x37ab   :  { %v5882_v14 = vpop.xlane.xlu1 %5881 }
0x37ac   :  { %v5884_v15 = vsub.f32 %v5876_v3, %v5882_v14  ;;  %v8084_v3 = vld [vmem:[%s10992_s3 + $0x20] sm:$0xff] }
0x37ad   :  { %v5879_v1 = vpop.xlane.xlu0 %5878 }
0x37ae   :  { %v5887_v55 = vmul.f32 1.442695, %v5884_v15  ;;  %v5883_v18 = vsub.f32 %v5875_v41, %v5879_v1 }
0x37af   :  { %v5900_v26 = vpop.permute.xlu1 %5899 }
0x37b0   :  { %9364 = vpow2.f32 %v5887_v55  ;;  %v5885_v19 = vmul.f32 1.442695, %v5883_v18 }
0x37b2   :  { %9366 = vpow2.f32 %v5885_v19 }
0x37b3   :  { %v5993_v53 = vpop.permute.xlu1 %5992 }
0x37b7   :  { %v5991_v33 = vpop.permute.xlu1 %5990 }
0x37bb   :  { %v5989_v37 = vpop.permute.xlu1 %5988 }
0x37bd   :  { %v9365_v22 = vpop.eup %9364 }
0x37be   :  { %v5892_v54 = vsel %vm392_vm3, %v9365_v22, 0.0 }
0x37bf   :  { %v9367_v20 = vpop.eup %9366  ;;  %5893 = vadd.xlane.f32.xlu0 %v5892_v54 }
0x37c0   :  { %v5889_v21 = vsel %vm392_vm3, %v9367_v20, 0.0 }
0x37c3   :  { %5890 = vadd.xlane.f32.xlu0 %v5889_v21 }
0x37d9   :  { %5901 = vrot.lane.b32.xlu0 %v10568_v49, %s9489_s10 }
0x37dd   :  { %5986 = vrot.lane.b32.xlu0 %v10577_v56, %s9491_s15 }
0x3848   :  { %v5894_v57 = vpop.xlane.xlu0 %5893 }
0x3849   :  { %9368 = vrcp.f32 %v5894_v57 }
0x384c   :  { %v5891_v60 = vpop.xlane.xlu0 %5890 }
0x384d   :  { %9370 = vrcp.f32 %v5891_v60  ;;  %v8100_v60 = vld [vmem:[%s10993_s8 + $0x30] sm:$0xff] }
0x3850   :  { %v5902_v35 = vpop.permute.xlu0 %5901 }
0x3851   :  { %8970 = vmatprep.subr.mxu1 %v5902_v35 }
0x3852   :  { %8971 = vmatpush3.msra.mxu1 %v5902_v35  ;;  %v8096_v35 = vld [vmem:[%s10995_s19 + $0x30] sm:$0xff] }
0x3853   :  { %8972 = vmatprep.subr.mxu1 %v5900_v26 }
0x3854   :  { %8973 = vmatpush3.msra.mxu1 %v5900_v26  ;;  %v5987_v56 = vpop.permute.xlu0 %5986  ;;  %v8097_v26 = vld [vmem:[%s10995_s19 + $0x38] sm:$0xff] }
0x3855   :  { %8977 = vmatprep.subr.msk.mxu1 %vm304_vm1, %v5993_v53 }
0x3856   :  { %v9369_v52 = vpop.eup %9368 }
0x3857   :  { %v5898_v32 = vmul.f32 %v9369_v52, %v9365_v22 }
0x385a   :  { %v9371_v25 = vpop.eup %9370 }
0x385b   :  { %v5897_v29 = vmul.f32 %v9371_v25, %v9367_v20 }
0x385d   :  { %8974 = vmatprep.mubr.msk.f32.mxu1 %vm392_vm3, %v5897_v29 }
0x385e   :  { %8975 = vmatmul.mubr.msk.f32.vlgmr.msra.gmra.mxu1 %vm392_vm3, %v5898_v32 }
0x385f   :  { %8978 = vmatpush3.xpose.msk.msra.mxu1 %vm304_vm1, %v5993_v53  ;;  %8981 = vmatprep.mubr.msk.f32.mxu1 %vm304_vm1, %v5987_v56  ;;  %v8095_v53 = vld [vmem:[%s10995_s19 + $0x28] sm:$0xff] }
0x3860   :  { %8979 = vmatprep.subr.msk.mxu1 %vm304_vm1, %v5991_v33 }
0x3863   :  { %8980 = vmatpush3.xpose.msk.msra.mxu1 %vm304_vm1, %v5991_v33 }
0x3864   :  { %9002 = vmatprep.subr.mxu1 %v8097_v26 }
0x3866   :  { %8982 = vmatmul.mubr.msk.f32.vlgmr.msra.gmra.mxu1 %vm304_vm1, %v5989_v37 }
0x3867   :  { %9003 = vmatpush3.msra.mxu1 %v8097_v26 }
0x3868   :  { %9004 = vmatprep.subr.mxu1 %v8096_v35 }
0x3869   :  { %9005 = vmatpush3.msra.mxu1 %v8096_v35 }
0x386a   :  { %9006 = vmatprep.subr.mxu1 %v8095_v53 }
0x386b   :  { %9007 = vmatpush3.msra.mxu1 %v8095_v53 }
0x391e   :  { %v8976_v38 = vpop.f32.mrf.mxu1 }
0x3920   :  { %v5977_v40 = vpop.f32.mrf.mxu1 }
0x3926   :  { %v8983_v34 = vpop.f32.mrf.mxu1 }
0x3927   :  { %v6078_v27 = vsel %vm158_vm7, -1e+18, %v8983_v34 }
0x3928   :  { %v6082_v48 = vsel %vm392_vm3, %v6078_v27, -inf  ;;  %v6068_v36 = vpop.f32.mrf.mxu1 }
0x3929   :  { %v6077_v10 = vsel %vm157_vm8, -1e+18, %v6068_v36  ;;  %6083 = vmax.xlane.f32.xlu1 %v6082_v48 }
0x392a   :  { %v6079_v42 = vsel %vm392_vm3, %v6077_v10, -inf }
0x392b   :  { %6080 = vmax.xlane.f32.xlu0 %v6079_v42 }
0x393a   :  { %6101 = vrot.lane.b32.xlu1 %v10572_v50, %s9492_s16 }
0x393e   :  { %6190 = vrot.lane.b32.xlu1 %v10652_v4, %s9493_s18  ;;  %v8086_v4 = vld [vmem:[%s10992_s3 + $0x30] sm:$0xff] }
0x3942   :  { %6192 = vrot.lane.b32.xlu1 %v10650_v63, %s9493_s18  ;;  %v8087_v63 = vld [vmem:[%s10992_s3 + $0x38] sm:$0xff] }
0x3946   :  { %6200 = vrot.lane.b32.xlu1 %v8976_v38, %s11007_s20 }
0x39b2   :  { %v6084_v11 = vpop.xlane.xlu1 %6083 }
0x39b3   :  { %v6086_v43 = vsub.f32 %v6078_v27, %v6084_v11 }
0x39b4   :  { %v6081_v44 = vpop.xlane.xlu0 %6080 }
0x39b5   :  { %v6089_v23 = vmul.f32 1.442695, %v6086_v43  ;;  %v6085_v45 = vsub.f32 %v6077_v10, %v6081_v44 }
0x39b6   :  { %v6102_v24 = vpop.permute.xlu1 %6101 }
0x39b7   :  { %9372 = vpow2.f32 %v6089_v23  ;;  %v6087_v46 = vmul.f32 1.442695, %v6085_v45 }
0x39b9   :  { %9374 = vpow2.f32 %v6087_v46 }
0x39ba   :  { %v6191_v7 = vpop.permute.xlu1 %6190 }
0x39bb   :  { %v6212_v55 = vsel %vm304_vm1, %v10648_v62, %v6191_v7  ;;  %v8098_v62 = vld [vmem:[%s10993_s8 + $0x20] sm:$0xff] }
0x39be   :  { %v6193_v14 = vpop.permute.xlu1 %6192 }
0x39bf   :  { %v6213_v19 = vsel %vm304_vm1, %v10646_v39, %v6193_v14  ;;  %v8099_v39 = vld [vmem:[%s10993_s8 + $0x28] sm:$0xff] }
0x39c2   :  { %v6201_v15 = vpop.permute.xlu1 %6200 }
0x39c3   :  { %v6215_v20 = vsel %vm392_vm3, %v6213_v19, %v6201_v15 }
0x39c4   :  { %v9373_v13 = vpop.eup %9372 }
0x39c5   :  { %v6094_v47 = vsel %vm392_vm3, %v9373_v13, 0.0 }
0x39c6   :  { %v9375_v50 = vpop.eup %9374  ;;  %6095 = vadd.xlane.f32.xlu0 %v6094_v47  ;;  %v8092_v47 = vld [vmem:[%s10997_s30 + $0x1] ss:$0 sm:$0xff] }
0x39c7   :  { %v6091_v12 = vsel %vm392_vm3, %v9375_v50, 0.0 }
0x39ca   :  { %6092 = vadd.xlane.f32.xlu0 %v6091_v12  ;;  %v8093_v12 = vld [vmem:[%s10998_s6 + $0x1] ss:$0 sm:$0xff] }
0x39e0   :  { %6103 = vrot.lane.b32.xlu0 %v10568_v49, %s9492_s16 }
0x39e4   :  { %6198 = vrot.lane.b32.xlu0 %v5977_v40, %s11007_s20 }
0x3a4f   :  { %v6096_v0 = vpop.xlane.xlu0 %6095 }
0x3a50   :  { %9376 = vrcp.f32 %v6096_v0 }
0x3a53   :  { %v6093_v58 = vpop.xlane.xlu0 %6092 }
0x3a54   :  { %9378 = vrcp.f32 %v6093_v58 }
0x3a57   :  { %v6104_v9 = vpop.permute.xlu0 %6103 }
0x3a58   :  { %8984 = vmatprep.subr.mxu0 %v6104_v9 }
0x3a59   :  { %8985 = vmatpush3.msra.mxu0 %v6104_v9 }
0x3a5a   :  { %8986 = vmatprep.subr.mxu0 %v6102_v24 }
0x3a5b   :  { %8987 = vmatpush3.msra.mxu0 %v6102_v24  ;;  %v6199_v1 = vpop.permute.xlu0 %6198 }
0x3a5c   :  { %8991 = vmatprep.subr.mxu0 %v8087_v63  ;;  %v6214_v22 = vsel %vm392_vm3, %v6212_v55, %v6199_v1 }
0x3a5d   :  { %v9377_v28 = vpop.eup %9376 }
0x3a5e   :  { %v6100_v49 = vmul.f32 %v9377_v28, %v9373_v13 }
0x3a61   :  { %v9379_v61 = vpop.eup %9378 }
0x3a62   :  { %v6099_v8 = vmul.f32 %v9379_v61, %v9375_v50 }
0x3a64   :  { %8988 = vmatprep.mubr.msk.f32.mxu0 %vm392_vm3, %v6099_v8 }
0x3a65   :  { %8989 = vmatmul.mubr.msk.f32.vlgmr.msra.gmra.mxu0 %vm392_vm3, %v6100_v49 }
0x3a66   :  { %8992 = vmatpush3.msra.mxu0 %v8087_v63 }
0x3a67   :  { %8993 = vmatprep.subr.mxu0 %v8086_v4 }
0x3a68   :  { %8994 = vmatpush3.msra.mxu0 %v8086_v4 }
0x3a69   :  { %8995 = vmatprep.subr.mxu0 %v8085_v2 }
0x3a6a   :  { %8996 = vmatpush3.msra.mxu0 %v8085_v2 }
0x3a6b   :  { %8997 = vmatprep.subr.mxu0 %v8084_v3 }
0x3a6c   :  { %8998 = vmatpush3.msra.mxu0 %v8084_v3 }
0x3a6d   :  { %9013 = vmatprep.subr.mxu0 %v8101_v5 }
0x3b25   :  { %v8990_v6 = vpop.f32.mrf.mxu0 }
0x3b26   :  { %6208 = vrot.lane.b32.xlu1 %v8990_v6, %s11008_s5 }
0x3b27   :  { %v6179_v41 = vpop.f32.mrf.mxu0 }
0x3b28   :  { %6206 = vrot.lane.b32.xlu0 %v6179_v41, %s11008_s5 }
0x3b98   :  { %v6209_v18 = vpop.permute.xlu1 %6208 }
0x3b99   :  { %v6217_v57 = vsel %vm1136_vm5, %v6215_v20, %v6209_v18 }
0x3b9a   :  { %v6207_v54 = vpop.permute.xlu0 %6206 }
0x3b9b   :  { %v6216_v21 = vsel %vm1136_vm5, %v6214_v22, %v6207_v54 }
0x3b9c   :  { %8999 = vmatprep.mubr.msk.f32.mxu0 %vm167_vm0, %v6216_v21 }
0x3b9d   :  { %9000 = vmatmul.mubr.msk.f32.vlgmr.msra.gmra.mxu0 %vm167_vm0, %v6217_v57 }
0x3b9e   :  { %9014 = vmatpush3.msra.mxu0 %v8101_v5  ;;  %9021 = vmatprep.mubr.msk.f32.mxu0 %vm167_vm0, %v10343_v30  ;;  %v8094_v30 = vld [vmem:[%s10995_s19 + $0x20] sm:$0xff] }
0x3b9f   :  { %9015 = vmatprep.subr.mxu0 %v8100_v60  ;;  %9008 = vmatprep.subr.mxu1 %v8094_v30 }
0x3ba0   :  { %9016 = vmatpush3.msra.mxu0 %v8100_v60  ;;  %9009 = vmatpush3.msra.mxu1 %v8094_v30 }
0x3ba1   :  { %9017 = vmatprep.subr.mxu0 %v8099_v39 }
0x3ba2   :  { %9018 = vmatpush3.msra.mxu0 %v8099_v39 }
0x3ba3   :  { %9019 = vmatprep.subr.mxu0 %v8098_v62 }
0x3ba4   :  { %9020 = vmatpush3.msra.mxu0 %v8098_v62 }
0x3ba5   :  { %9022 = vmatmul.mubr.msk.f32.vlgmr.msra.gmra.mxu0 %vm167_vm0, %v10345_v31 }
0x3c5d   :  { %v9001_v52 = vpop.f32.mrf.mxu0 }
0x3c5e   :  { %v10731_v25 = vadd.f32 %v9001_v52, %v10547_v16 }
0x3c5f   :  { %v6295_v29 = vpop.f32.mrf.mxu0 }
0x3c60   :  { %v10734_v32 = vadd.f32 %v6295_v29, %v10550_v17  ;;  %v6313_v31 = vsel %vm167_vm0, %v10731_v25, 0.0 }
0x3c61   :  { %6314 = vadd.xlane.f32.xlu1 %v6313_v31 }
0x3c62   :  { %v6310_v56 = vsel %vm167_vm0, %v10734_v32, 0.0 }
0x3c63   :  { %6311 = vadd.xlane.f32.xlu0 %v6310_v56 }
0x3c65   :  { %v10740_v33 = vpop.f32.mrf.mxu0 }
0x3c66   :  { %9024 = vmatprep.subr.msk.mxu1 %vm304_vm1, %v10740_v33 }
0x3c67   :  { %v10744_v37 = vpop.f32.mrf.mxu0 }
0x3c72   :  { %6722 = vrot.lane.b32.xlu1 %v10744_v37, %s9485_s28 }
0x3cea   :  { %v6315_v16 = vpop.xlane.xlu1 %6314 }
0x3ceb   :  { %v6317_v17 = vmul.f32 0.03125, %v6315_v16 }
0x3cec   :  { %v6312_v38 = vpop.xlane.xlu0 %6311 }
0x3ced   :  { %v6316_v40 = vmul.f32 0.03125, %v6312_v38  ;;  %v6319_v34 = vsub.f32 %v10731_v25, %v6317_v17 }
0x3cee   :  { %v6723_v3 = vpop.permute.xlu1 %6722 }
0x3cef   :  { %v6318_v27 = vsub.f32 %v10734_v32, %v6316_v40  ;;  %v6321_v10 = vmul.f32 %v6319_v34, %v6319_v34 }
0x3cf1   :  { %v6320_v48 = vmul.f32 %v6318_v27, %v6318_v27  ;;  %v6325_v42 = vsel %vm167_vm0, %v6321_v10, 0.0 }
0x3cf3   :  { %v6322_v36 = vsel %vm167_vm0, %v6320_v48, 0.0 }
0x3cf4   :  { %6323 = vadd.xlane.f32.xlu0 %v6322_v36 }
0x3cf8   :  { %6326 = vadd.xlane.f32.xlu0 %v6325_v42 }
0x3d0e   :  { %6724 = vrot.lane.b32.xlu0 %v10740_v33, %s9485_s28 }
0x3d7d   :  { %v6324_v11 = vpop.xlane.xlu0 %6323 }
0x3d7e   :  { %v6328_v43 = vmul.f32 0.03125, %v6324_v11 }
0x3d80   :  { %v6330_v44 = vadd.f32 1e-06, %v6328_v43 }
0x3d81   :  { %v6327_v23 = vpop.xlane.xlu0 %6326 }
0x3d82   :  { %9380 = vrsqrt.f32 %v6330_v44  ;;  %v6329_v45 = vmul.f32 0.03125, %v6327_v23 }
0x3d84   :  { %v6331_v46 = vadd.f32 1e-06, %v6329_v45 }
0x3d85   :  { %v6725_v8 = vpop.permute.xlu0 %6724 }
0x3d86   :  { %9382 = vrsqrt.f32 %v6331_v46 }
0x3d8f   :  { %v9381_v13 = vpop.eup %9380 }
0x3d90   :  { %v6334_v50 = vmul.f32 %v9381_v13, %v6318_v27 }
0x3d92   :  { %v6342_v0 = vmul.f32 %v8092_v47, %v6334_v50 }
0x3d93   :  { %v9383_v58 = vpop.eup %9382 }
0x3d94   :  { %v6335_v9 = vmul.f32 %v9383_v58, %v6319_v34  ;;  %v6350_v24 = vadd.f32 %v8093_v12, %v6342_v0 }
0x3d96   :  { %v6343_v28 = vmul.f32 %v8092_v47, %v6335_v9  ;;  %9010 = vmatprep.mubr.msk.f32.mxu1 %vm167_vm0, %v6350_v24 }
0x3d98   :  { %v6351_v61 = vadd.f32 %v8093_v12, %v6343_v28 }
0x3d9a   :  { %9011 = vmatmul.mubr.msk.f32.vlgmr.msra.gmra.mxu1 %vm167_vm0, %v6351_v61 }
0x3d9b   :  { %9025 = vmatpush3.xpose.msk.msra.mxu1 %vm304_vm1, %v10740_v33 }
0x3d9c   :  { %9026 = vmatprep.subr.msk.mxu1 %vm304_vm1, %v10744_v37 }
0x3d9f   :  { %9027 = vmatpush3.xpose.msk.msra.mxu1 %vm304_vm1, %v10744_v37 }
0x3da0   :  { %9038 = vmatprep.subr.msk.mxu1 %vm304_vm1, %v6725_v8 }
0x3e5a   :  { %v9012_v49 = vpop.f32.mrf.mxu1 }
0x3e5b   :  { %v10767_v2 = vmul.f32 0.35355338, %v9012_v49 }
0x3e5c   :  { %v6434_v63 = vpop.f32.mrf.mxu1 }
0x3e5d   :  { %v10765_v4 = vmul.f32 0.35355338, %v6434_v63 }
0x3e5f   :  { %6718 = vrot.lane.b32.xlu1 %v10765_v4, %s9485_s28  ;;  %9028 = vmatprep.mubr.msk.f32.mxu1 %vm304_vm1, %v10765_v4 }
0x3e60   :  { %9029 = vmatmul.mubr.msk.f32.vlgmr.msra.gmra.mxu1 %vm304_vm1, %v10767_v2 }
0x3e61   :  { %9039 = vmatpush3.xpose.msk.msra.mxu1 %vm304_vm1, %v6725_v8 }
0x3e62   :  { %9040 = vmatprep.subr.msk.mxu1 %vm304_vm1, %v6723_v3 }
0x3e63   :  { %6720 = vrot.lane.b32.xlu1 %v10767_v2, %s9485_s28 }
0x3e65   :  { %9041 = vmatpush3.xpose.msk.msra.mxu1 %vm304_vm1, %v6723_v3 }
0x3ed1   :  { %v6719_v5 = vpop.permute.xlu1 %6718 }
0x3ed2   :  { %9042 = vmatprep.mubr.msk.f32.mxu1 %vm304_vm1, %v6719_v5 }
0x3ed5   :  { %v6721_v6 = vpop.permute.xlu1 %6720 }
0x3ed6   :  { %9043 = vmatmul.mubr.msk.f32.vlgmr.msra.gmra.mxu1 %vm304_vm1, %v6721_v6 }
0x3f20   :  { %v9030_v41 = vpop.f32.mrf.mxu1 }
0x3f21   :  { %v6608_v7 = vsel %vm162_vm9, -1e+18, %v9030_v41 }
0x3f22   :  { %v6612_v14 = vsel %vm392_vm3, %v6608_v7, -inf  ;;  %v6598_v15 = vpop.f32.mrf.mxu1 }
0x3f23   :  { %v6607_v1 = vsel %vm161_vm10, -1e+18, %v6598_v15  ;;  %6613 = vmax.xlane.f32.xlu1 %v6612_v14 }
0x3f24   :  { %v6609_v55 = vsel %vm392_vm3, %v6607_v1, -inf }
0x3f25   :  { %6610 = vmax.xlane.f32.xlu0 %v6609_v55 }
0x3f34   :  { %6631 = vrot.lane.b32.xlu1 %v10744_v37, %s9482_s0 }
0x3f38   :  { %6835 = vrot.lane.b32.xlu1 %v10740_v33, %s9484_s13 }
0x3f3c   :  { %6833 = vrot.lane.b32.xlu1 %v10744_v37, %s9484_s13 }
0x3f96   :  { %v9044_v18 = vpop.f32.mrf.mxu1 }
0x3f97   :  { %v6810_v20 = vsel %vm162_vm9, -1e+18, %v9044_v18 }
0x3f98   :  { %v6800_v19 = vpop.f32.mrf.mxu1  ;;  %v6814_v21 = vsel %vm392_vm3, %v6810_v20, -inf }
0x3f99   :  { %v6809_v22 = vsel %vm161_vm10, -1e+18, %v6800_v19 }
0x3f9a   :  { %v6811_v54 = vsel %vm392_vm3, %v6809_v22, -inf }
0x3f9b   :  { %6812 = vmax.xlane.f32.xlu0 %v6811_v54 }
0x3f9f   :  { %6815 = vmax.xlane.f32.xlu0 %v6814_v21 }
0x3fac   :  { %v6614_v57 = vpop.xlane.xlu1 %6613 }
0x3fad   :  { %v6616_v60 = vsub.f32 %v6608_v7, %v6614_v57 }
0x3fae   :  { %v6611_v62 = vpop.xlane.xlu0 %6610 }
0x3faf   :  { %v6619_v39 = vmul.f32 1.442695, %v6616_v60  ;;  %v6615_v26 = vsub.f32 %v6607_v1, %v6611_v62 }
0x3fb0   :  { %v6632_v40 = vpop.permute.xlu1 %6631 }
0x3fb1   :  { %9384 = vpow2.f32 %v6619_v39  ;;  %v6617_v53 = vmul.f32 1.442695, %v6615_v26 }
0x3fb3   :  { %9386 = vpow2.f32 %v6617_v53 }
0x3fb4   :  { %v6836_v48 = vpop.permute.xlu1 %6835 }
0x3fb5   :  { %6633 = vrot.lane.b32.xlu0 %v10740_v33, %s9482_s0  ;;  %s11009_s0 = sld [smem:[#allocation23_spill]] }
0x3fb8   :  { %v6834_v43 = vpop.permute.xlu1 %6833 }
0x3fbe   :  { %v9385_v35 = vpop.eup %9384 }
0x3fbf   :  { %v6624_v30 = vsel %vm392_vm3, %v9385_v35, 0.0 }
0x3fc0   :  { %6625 = vadd.xlane.f32.xlu1 %v6624_v30  ;;  %v9387_v52 = vpop.eup %9386 }
0x3fc1   :  { %v6621_v29 = vsel %vm392_vm3, %v9387_v52, 0.0 }
0x3fd4   :  { %6622 = vadd.xlane.f32.xlu0 %v6621_v29 }
0x4024   :  { %v6813_v31 = vpop.xlane.xlu0 %6812 }
0x4025   :  { %v6817_v56 = vsub.f32 %v6809_v22, %v6813_v31 }
0x4027   :  { %v6819_v16 = vmul.f32 1.442695, %v6817_v56 }
0x4028   :  { %v6816_v17 = vpop.xlane.xlu0 %6815 }
0x4029   :  { %9388 = vpow2.f32 %v6819_v16  ;;  %v6818_v38 = vsub.f32 %v6810_v20, %v6816_v17 }
0x402b   :  { %v6821_v34 = vmul.f32 1.442695, %v6818_v38 }
0x402c   :  { %v6634_v27 = vpop.permute.xlu0 %6633 }
0x402d   :  { %9390 = vpow2.f32 %v6821_v34  ;;  %9031 = vmatprep.subr.mxu0 %v6634_v27 }
0x402e   :  { %9032 = vmatpush3.msra.mxu0 %v6634_v27 }
0x402f   :  { %9033 = vmatprep.subr.mxu0 %v6632_v40 }
0x4030   :  { %9034 = vmatpush3.msra.mxu0 %v6632_v40 }
0x4031   :  { %9045 = vmatprep.subr.mxu0 %v6836_v48 }
0x4036   :  { %v9389_v36 = vpop.eup %9388 }
0x4037   :  { %v6823_v10 = vsel %vm392_vm3, %v9389_v36, 0.0 }
0x4038   :  { %6824 = vadd.xlane.f32.xlu0 %v6823_v10 }
0x403a   :  { %v9391_v42 = vpop.eup %9390 }
0x403b   :  { %v6826_v11 = vsel %vm392_vm3, %v9391_v42, 0.0 }
0x403c   :  { %6827 = vadd.xlane.f32.xlu1 %v6826_v11 }
0x4049   :  { %v6626_v44 = vpop.xlane.xlu1 %6625 }
0x404a   :  { %9392 = vrcp.f32 %v6626_v44 }
0x404d   :  { %6924 = vrot.lane.b32.xlu1 %v10744_v37, %s9488_s7 }
0x404e   :  { %6926 = vrot.lane.b32.xlu0 %v10740_v33, %s9488_s7 }
0x4051   :  { %6922 = vrot.lane.b32.xlu1 %v10767_v2, %s9488_s7 }
0x4052   :  { %6920 = vrot.lane.b32.xlu0 %v10765_v4, %s9488_s7 }
0x4057   :  { %v9393_v45 = vpop.eup %9392 }
0x4058   :  { %v6630_v47 = vmul.f32 %v9393_v45, %v9385_v35 }
0x405d   :  { %v6623_v23 = vpop.xlane.xlu0 %6622 }
0x405e   :  { %9394 = vrcp.f32 %v6623_v23 }
0x406b   :  { %v9395_v46 = vpop.eup %9394 }
0x406c   :  { %v6629_v13 = vmul.f32 %v9395_v46, %v9387_v52 }
0x406e   :  { %9035 = vmatprep.mubr.msk.f32.mxu0 %vm392_vm3, %v6629_v13 }
0x406f   :  { %9036 = vmatmul.mubr.msk.f32.vlgmr.msra.gmra.mxu0 %vm392_vm3, %v6630_v47 }
0x4070   :  { %9046 = vmatpush3.msra.mxu0 %v6836_v48 }
0x4071   :  { %9047 = vmatprep.subr.mxu0 %v6834_v43 }
0x4072   :  { %9048 = vmatpush3.msra.mxu0 %v6834_v43 }
0x40c1   :  { %v6825_v50 = vpop.xlane.xlu0 %6824 }
0x40c2   :  { %9396 = vrcp.f32 %v6825_v50 }
0x40c5   :  { %v6828_v12 = vpop.xlane.xlu1 %6827  ;;  %v6927_v0 = vpop.permute.xlu0 %6926 }
0x40c6   :  { %9398 = vrcp.f32 %v6828_v12  ;;  %9052 = vmatprep.subr.msk.mxu0 %vm304_vm1, %v6927_v0 }
0x40c9   :  { %v6921_v61 = vpop.permute.xlu0 %6920  ;;  %v6925_v8 = vpop.permute.xlu1 %6924 }
0x40cd   :  { %v6923_v49 = vpop.permute.xlu1 %6922 }
0x40cf   :  { %v9397_v58 = vpop.eup %9396 }
0x40d0   :  { %v6831_v9 = vmul.f32 %v9397_v58, %v9389_v36 }
0x40d2   :  { %9049 = vmatprep.mubr.msk.f32.mxu0 %vm392_vm3, %v6831_v9 }
0x40d3   :  { %v9399_v24 = vpop.eup %9398 }
0x40d4   :  { %v6832_v28 = vmul.f32 %v9399_v24, %v9391_v42 }
0x40d6   :  { %9050 = vmatmul.mubr.msk.f32.vlgmr.msra.gmra.mxu0 %vm392_vm3, %v6832_v28  ;;  %v8133_v28 = vld [vmem:[%s11000_s26 + $0x38] sm:$0xff] }
0x40d7   :  { %9053 = vmatpush3.xpose.msk.msra.mxu0 %vm304_vm1, %v6927_v0  ;;  %9056 = vmatprep.mubr.msk.f32.mxu0 %vm304_vm1, %v6921_v61  ;;  %v8132_v61 = vld [vmem:[%s11000_s26 + $0x30] sm:$0xff] }
0x40d8   :  { %9054 = vmatprep.subr.msk.mxu0 %vm304_vm1, %v6925_v8 }
0x40db   :  { %9055 = vmatpush3.xpose.msk.msra.mxu0 %vm304_vm1, %v6925_v8  ;;  %v8131_v8 = vld [vmem:[%s11000_s26 + $0x28] sm:$0xff] }
0x40de   :  { %9057 = vmatmul.mubr.msk.f32.vlgmr.msra.gmra.mxu0 %vm304_vm1, %v6923_v49  ;;  %v8130_v49 = vld [vmem:[%s11000_s26 + $0x20] sm:$0xff] }
0x412f   :  { %v10824_v63 = vpop.f32.mrf.mxu0 }
0x4131   :  { %v10826_v3 = vpop.f32.mrf.mxu0 }
0x4196   :  { %v10828_v5 = vpop.f32.mrf.mxu0 }
0x4198   :  { %v10830_v6 = vpop.f32.mrf.mxu0 }
0x419e   :  { %v9058_v41 = vpop.f32.mrf.mxu0 }
0x419f   :  { %v7012_v7 = vsel %vm162_vm9, -1e+18, %v9058_v41 }
0x41a0   :  { %v7016_v14 = vsel %vm392_vm3, %v7012_v7, -inf  ;;  %v7002_v15 = vpop.f32.mrf.mxu0 }
0x41a1   :  { %v7011_v1 = vsel %vm161_vm10, -1e+18, %v7002_v15  ;;  %7017 = vmax.xlane.f32.xlu1 %v7016_v14 }
0x41a2   :  { %v7013_v55 = vsel %vm392_vm3, %v7011_v1, -inf }
0x41a3   :  { %7014 = vmax.xlane.f32.xlu0 %v7013_v55 }
0x41b2   :  { %7035 = vrot.lane.b32.xlu1 %v10744_v37, %s9487_s2 }
0x41b6   :  { %7128 = vrot.lane.b32.xlu1 %v10740_v33, %s9491_s15 }
0x41ba   :  { %7126 = vrot.lane.b32.xlu1 %v10744_v37, %s9491_s15 }
0x41be   :  { %7124 = vrot.lane.b32.xlu1 %v10767_v2, %s9491_s15 }
0x422a   :  { %v7018_v18 = vpop.xlane.xlu1 %7017 }
0x422b   :  { %v7020_v19 = vsub.f32 %v7012_v7, %v7018_v18 }
0x422c   :  { %v7015_v22 = vpop.xlane.xlu0 %7014 }
0x422d   :  { %v7023_v54 = vmul.f32 1.442695, %v7020_v19  ;;  %v7019_v20 = vsub.f32 %v7011_v1, %v7015_v22 }
0x422e   :  { %v7036_v35 = vpop.permute.xlu1 %7035 }
0x422f   :  { %9400 = vpow2.f32 %v7023_v54  ;;  %v7021_v21 = vmul.f32 1.442695, %v7019_v20 }
0x4231   :  { %9402 = vpow2.f32 %v7021_v21 }
0x4232   :  { %v7129_v30 = vpop.permute.xlu1 %7128 }
0x4236   :  { %v7127_v16 = vpop.permute.xlu1 %7126 }
0x423a   :  { %v7125_v17 = vpop.permute.xlu1 %7124 }
0x423c   :  { %v9401_v57 = vpop.eup %9400 }
0x423d   :  { %v7028_v60 = vsel %vm392_vm3, %v9401_v57, 0.0 }
0x423e   :  { %v9403_v39 = vpop.eup %9402  ;;  %7029 = vadd.xlane.f32.xlu0 %v7028_v60 }
0x423f   :  { %v7025_v62 = vsel %vm392_vm3, %v9403_v39, 0.0 }
0x4242   :  { %7026 = vadd.xlane.f32.xlu0 %v7025_v62 }
0x4258   :  { %7037 = vrot.lane.b32.xlu0 %v10740_v33, %s9487_s2 }
0x425c   :  { %7122 = vrot.lane.b32.xlu0 %v10765_v4, %s9491_s15 }
0x42c7   :  { %v7030_v2 = vpop.xlane.xlu0 %7029 }
0x42c8   :  { %9404 = vrcp.f32 %v7030_v2 }
0x42cb   :  { %v7027_v26 = vpop.xlane.xlu0 %7026 }
0x42cc   :  { %9406 = vrcp.f32 %v7027_v26 }
0x42cf   :  { %v7038_v53 = vpop.permute.xlu0 %7037 }
0x42d0   :  { %9059 = vmatprep.subr.mxu1 %v7038_v53 }
0x42d1   :  { %9060 = vmatpush3.msra.mxu1 %v7038_v53 }
0x42d2   :  { %9061 = vmatprep.subr.mxu1 %v7036_v35 }
0x42d3   :  { %9062 = vmatpush3.msra.mxu1 %v7036_v35  ;;  %v7123_v4 = vpop.permute.xlu0 %7122 }
0x42d4   :  { %9066 = vmatprep.subr.msk.mxu1 %vm304_vm1, %v7129_v30 }
0x42d5   :  { %v9405_v52 = vpop.eup %9404 }
0x42d6   :  { %v7034_v56 = vmul.f32 %v9405_v52, %v9401_v57 }
0x42d9   :  { %v9407_v29 = vpop.eup %9406 }
0x42da   :  { %v7033_v31 = vmul.f32 %v9407_v29, %v9403_v39 }
0x42dc   :  { %9063 = vmatprep.mubr.msk.f32.mxu1 %vm392_vm3, %v7033_v31 }
0x42dd   :  { %9064 = vmatmul.mubr.msk.f32.vlgmr.msra.gmra.mxu1 %vm392_vm3, %v7034_v56  ;;  %v8143_v56 = vld [vmem:[%s11001_s29 + $0x38] sm:$0xff] }
0x42de   :  { %9067 = vmatpush3.xpose.msk.msra.mxu1 %vm304_vm1, %v7129_v30  ;;  %9070 = vmatprep.mubr.msk.f32.mxu1 %vm304_vm1, %v7123_v4  ;;  %v8142_v4 = vld [vmem:[%s11001_s29 + $0x30] sm:$0xff] }
0x42df   :  { %9068 = vmatprep.subr.msk.mxu1 %vm304_vm1, %v7127_v16 }
0x42e2   :  { %9069 = vmatpush3.xpose.msk.msra.mxu1 %vm304_vm1, %v7127_v16  ;;  %v8141_v16 = vld [vmem:[%s11001_s29 + $0x28] sm:$0xff] }
0x42e3   :  { %9091 = vmatprep.subr.mxu1 %v8143_v56 }
0x42e5   :  { %9071 = vmatmul.mubr.msk.f32.vlgmr.msra.gmra.mxu1 %vm304_vm1, %v7125_v17  ;;  %v8140_v17 = vld [vmem:[%s11001_s29 + $0x20] sm:$0xff] }
0x42e6   :  { %9092 = vmatpush3.msra.mxu1 %v8143_v56 }
0x42e7   :  { %9093 = vmatprep.subr.mxu1 %v8142_v4 }
0x42e8   :  { %9094 = vmatpush3.msra.mxu1 %v8142_v4  ;;  %v8160_v4 = vld [vmem:[%s11009_s0] ss:$0 sm:$0xff] }
0x42e9   :  { %9095 = vmatprep.subr.mxu1 %v8141_v16 }
0x42ea   :  { %9096 = vmatpush3.msra.mxu1 %v8141_v16 }
0x42eb   :  { %9097 = vmatprep.subr.mxu1 %v8140_v17 }
0x42ec   :  { %9098 = vmatpush3.msra.mxu1 %v8140_v17 }
0x439d   :  { %v9065_v38 = vpop.f32.mrf.mxu1 }
0x439f   :  { %v7113_v40 = vpop.f32.mrf.mxu1 }
0x43a5   :  { %v9072_v34 = vpop.f32.mrf.mxu1 }
0x43a6   :  { %v7214_v27 = vsel %vm162_vm9, -1e+18, %v9072_v34  ;;  %v8153_v34 = vld [vmem:[%s11002_s14 + $0x68] sm:$0xff] }
0x43a7   :  { %v7218_v48 = vsel %vm392_vm3, %v7214_v27, -inf  ;;  %v7204_v36 = vpop.f32.mrf.mxu1 }
0x43a8   :  { %v7213_v10 = vsel %vm161_vm10, -1e+18, %v7204_v36  ;;  %7219 = vmax.xlane.f32.xlu1 %v7218_v48 }
0x43a9   :  { %v7215_v42 = vsel %vm392_vm3, %v7213_v10, -inf }
0x43aa   :  { %7216 = vmax.xlane.f32.xlu0 %v7215_v42 }
0x43b9   :  { %7237 = vrot.lane.b32.xlu1 %v10744_v37, %s9490_s11 }
0x43bd   :  { %7326 = vrot.lane.b32.xlu1 %v10830_v6, %s9493_s18 }
0x43c1   :  { %7328 = vrot.lane.b32.xlu1 %v10828_v5, %s9493_s18 }
0x43c5   :  { %7336 = vrot.lane.b32.xlu1 %v9065_v38, %s11007_s20  ;;  %v8155_v38 = vld [vmem:[%s11002_s14 + $0x78] sm:$0xff] }
0x4431   :  { %v7220_v59 = vpop.xlane.xlu1 %7219 }
0x4432   :  { %v7222_v11 = vsub.f32 %v7214_v27, %v7220_v59  ;;  %v8152_v27 = vld [vmem:[%s11002_s14 + $0x60] sm:$0xff] }
0x4433   :  { %v7217_v43 = vpop.xlane.xlu0 %7216 }
0x4434   :  { %v7225_v51 = vmul.f32 1.442695, %v7222_v11  ;;  %v7221_v44 = vsub.f32 %v7213_v10, %v7217_v43 }
0x4435   :  { %v7238_v0 = vpop.permute.xlu1 %7237 }
0x4436   :  { %9408 = vpow2.f32 %v7225_v51  ;;  %v7223_v23 = vmul.f32 1.442695, %v7221_v44  ;;  %v8138_v51 = vld [vmem:[%s11003_s24 + $0x1] ss:$0 sm:$0xff] }
0x4438   :  { %9410 = vpow2.f32 %v7223_v23  ;;  %v8139_v23 = vld [vmem:[%s11004_s12 + $0x1] ss:$0 sm:$0xff] }
0x4439   :  { %v7327_v41 = vpop.permute.xlu1 %7326 }
0x443a   :  { %v7348_v1 = vsel %vm304_vm1, %v10826_v3, %v7327_v41  ;;  %v8159_v41 = vld [vmem:[%s11006_s22 + $0x1] ss:$0 sm:$0xff] }
0x443d   :  { %v7329_v7 = vpop.permute.xlu1 %7328 }
0x443e   :  { %v7349_v18 = vsel %vm304_vm1, %v10824_v63, %v7329_v7 }
0x4441   :  { %v7337_v14 = vpop.permute.xlu1 %7336 }
0x4442   :  { %v7351_v54 = vsel %vm392_vm3, %v7349_v18, %v7337_v14 }
0x4443   :  { %v9409_v45 = vpop.eup %9408 }
0x4444   :  { %v7230_v46 = vsel %vm392_vm3, %v9409_v45, 0.0 }
0x4445   :  { %v9411_v37 = vpop.eup %9410  ;;  %7231 = vadd.xlane.f32.xlu0 %v7230_v46 }
0x4446   :  { %v7227_v13 = vsel %vm392_vm3, %v9411_v37, 0.0 }
0x4449   :  { %7228 = vadd.xlane.f32.xlu0 %v7227_v13 }
0x445f   :  { %7239 = vrot.lane.b32.xlu0 %v10740_v33, %s9490_s11 }
0x4463   :  { %7334 = vrot.lane.b32.xlu0 %v7113_v40, %s11007_s20  ;;  %v8154_v40 = vld [vmem:[%s11002_s14 + $0x70] sm:$0xff] }
0x44ce   :  { %v7232_v47 = vpop.xlane.xlu0 %7231 }
0x44cf   :  { %9412 = vrcp.f32 %v7232_v47 }
0x44d2   :  { %v7229_v50 = vpop.xlane.xlu0 %7228 }
0x44d3   :  { %9414 = vrcp.f32 %v7229_v50 }
0x44d6   :  { %v7240_v12 = vpop.permute.xlu0 %7239 }
0x44d7   :  { %9073 = vmatprep.subr.mxu0 %v7240_v12 }
0x44d8   :  { %9074 = vmatpush3.msra.mxu0 %v7240_v12  ;;  %v8151_v12 = vld [vmem:[%s11002_s14 + $0x58] sm:$0xff] }
0x44d9   :  { %9075 = vmatprep.subr.mxu0 %v7238_v0 }
0x44da   :  { %9076 = vmatpush3.msra.mxu0 %v7238_v0  ;;  %v7335_v15 = vpop.permute.xlu0 %7334  ;;  %v8150_v0 = vld [vmem:[%s11002_s14 + $0x50] sm:$0xff] }
0x44db   :  { %9080 = vmatprep.subr.mxu0 %v8133_v28  ;;  %v7350_v19 = vsel %vm392_vm3, %v7348_v1, %v7335_v15 }
0x44dc   :  { %v9413_v58 = vpop.eup %9412 }
0x44dd   :  { %v7236_v33 = vmul.f32 %v9413_v58, %v9409_v45  ;;  %v8149_v58 = vld [vmem:[%s11002_s14 + $0x48] sm:$0xff] }
0x44e0   :  { %v9415_v9 = vpop.eup %9414 }
0x44e1   :  { %v7235_v24 = vmul.f32 %v9415_v9, %v9411_v37  ;;  %v8148_v9 = vld [vmem:[%s11002_s14 + $0x40] sm:$0xff] }
0x44e3   :  { %9077 = vmatprep.mubr.msk.f32.mxu0 %vm392_vm3, %v7235_v24  ;;  %v8145_v24 = vld [vmem:[%s11005_s23 + $0x1] ss:$0 sm:$0xff] }
0x44e4   :  { %9078 = vmatmul.mubr.msk.f32.vlgmr.msra.gmra.mxu0 %vm392_vm3, %v7236_v33 }
0x44e5   :  { %9081 = vmatpush3.msra.mxu0 %v8133_v28 }
0x44e6   :  { %9082 = vmatprep.subr.mxu0 %v8132_v61 }
0x44e7   :  { %9083 = vmatpush3.msra.mxu0 %v8132_v61 }
0x44e8   :  { %9084 = vmatprep.subr.mxu0 %v8131_v8 }
0x44e9   :  { %9085 = vmatpush3.msra.mxu0 %v8131_v8 }
0x44ea   :  { %9086 = vmatprep.subr.mxu0 %v8130_v49 }
0x44eb   :  { %9087 = vmatpush3.msra.mxu0 %v8130_v49 }
0x44ec   :  { %9102 = vmatprep.subr.mxu0 %v8155_v38 }
0x45a4   :  { %v9079_v5 = vpop.f32.mrf.mxu0 }
0x45a5   :  { %7344 = vrot.lane.b32.xlu1 %v9079_v5, %s11008_s5 }
0x45a6   :  { %v7315_v6 = vpop.f32.mrf.mxu0 }
0x45a7   :  { %7342 = vrot.lane.b32.xlu0 %v7315_v6, %s11008_s5 }
0x4617   :  { %v7345_v55 = vpop.permute.xlu1 %7344 }
0x4618   :  { %v7353_v21 = vsel %vm1136_vm5, %v7351_v54, %v7345_v55 }
0x4619   :  { %v7343_v22 = vpop.permute.xlu0 %7342 }
0x461a   :  { %v7352_v20 = vsel %vm1136_vm5, %v7350_v19, %v7343_v22 }
0x461b   :  { %9088 = vmatprep.mubr.msk.f32.mxu0 %vm167_vm0, %v7352_v20 }
0x461c   :  { %9089 = vmatmul.mubr.msk.f32.vlgmr.msra.gmra.mxu0 %vm167_vm0, %v7353_v21 }
0x461d   :  { %9103 = vmatpush3.msra.mxu0 %v8155_v38 }
0x461e   :  { %9104 = vmatprep.subr.mxu0 %v8154_v40 }
0x461f   :  { %9105 = vmatpush3.msra.mxu0 %v8154_v40 }
0x4620   :  { %9106 = vmatprep.subr.mxu0 %v8153_v34 }
0x4621   :  { %9107 = vmatpush3.msra.mxu0 %v8153_v34  ;;  %v8161_v34 = vld [vmem:[%s9671_s17] ss:$0 sm:$0xff] }
0x4622   :  { %9108 = vmatprep.subr.mxu0 %v8152_v27 }
0x4623   :  { %9109 = vmatpush3.msra.mxu0 %v8152_v27 }
0x4624   :  { %9110 = vmatprep.subr.mxu0 %v8151_v12 }
0x4625   :  { %9111 = vmatpush3.msra.mxu0 %v8151_v12 }
0x4626   :  { %9112 = vmatprep.subr.mxu0 %v8150_v0 }
0x4627   :  { %9113 = vmatpush3.msra.mxu0 %v8150_v0 }
0x4628   :  { %9114 = vmatprep.subr.mxu0 %v8149_v58 }
0x4629   :  { %9115 = vmatpush3.msra.mxu0 %v8149_v58 }
0x462a   :  { %9116 = vmatprep.subr.mxu0 %v8148_v9 }
0x462b   :  { %9117 = vmatpush3.msra.mxu0 %v8148_v9 }
0x46dc   :  { %v9090_v57 = vpop.f32.mrf.mxu0 }
0x46dd   :  { %v10897_v3 = vadd.f32 %v9090_v57, %v10731_v25 }
0x46de   :  { %v7431_v60 = vpop.f32.mrf.mxu0 }
0x46df   :  { %v10900_v63 = vadd.f32 %v7431_v60, %v10734_v32  ;;  %v7449_v39 = vsel %vm167_vm0, %v10897_v3, 0.0 }
0x46e0   :  { %7450 = vadd.xlane.f32.xlu1 %v7449_v39 }
0x46e1   :  { %v7446_v62 = vsel %vm167_vm0, %v10900_v63, 0.0 }
0x46e2   :  { %7447 = vadd.xlane.f32.xlu0 %v7446_v62 }
0x4769   :  { %v7451_v2 = vpop.xlane.xlu1 %7450 }
0x476a   :  { %v7453_v26 = vmul.f32 0.03125, %v7451_v2  ;;  %v7733_v2 = vld [vmem:[%s9676_s21 + $0x18] sm:$0xff] }
0x476b   :  { %v7448_v35 = vpop.xlane.xlu0 %7447  ;;  %9121 = vmatprep.subr.mxu1 %v7733_v2 }
0x476c   :  { %v7452_v25 = vmul.f32 0.03125, %v7448_v35  ;;  %v7455_v53 = vsub.f32 %v10897_v3, %v7453_v26  ;;  %v7732_v26 = vld [vmem:[%s9676_s21 + $0x10] sm:$0xff]  ;;  %v7731_v35 = vld [vmem:[%s9676_s21 + $0x8] sm:$0xff] }
0x476e   :  { %v7454_v32 = vsub.f32 %v10900_v63, %v7452_v25  ;;  %v7457_v29 = vmul.f32 %v7455_v53, %v7455_v53  ;;  %v7730_v25 = vld [vmem:[%s9676_s21] sm:$0xff]  ;;  %s9496_s21 = smov [#allocation2]  }
0x476f   :  { %s7829_s13 = sshll.u32 %s9496_s21, 4  ;;  %s7830_s13 = int_to_ptr.vmem [resolvable:$true] %s7829_s13 }
0x4770   :  { %v7456_v30 = vmul.f32 %v7454_v32, %v7454_v32  ;;  %v7461_v31 = vsel %vm167_vm0, %v7457_v29, 0.0  ;;  %s9424_s17 = scalar_lea.vmem %s7830_s13, 256  ;;  %p9429_p1 = scmp.lt.s32.totalorder %s7830_s13, %s7830_s13 }
0x4771   :  { %p9425_p0 = scmp.ne.s32.totalorder %s7830_s13, %s9424_s17  ;;  %p9430_p2 = scmp.lt.s32.totalorder %s9424_s17, %s9424_s17 }
0x4772   :  { %v7458_v52 = vsel %vm167_vm0, %v7456_v30, 0.0 }
0x4773   :  { %7459 = vadd.xlane.f32.xlu0 %v7458_v52  ;;  %p9431_p3 = por %p9430_p2, %p9429_p1 }
0x4775   :  { %p9432_p4 = pnand %p9431_p3, %p9425_p0 }
0x4777   :  { %7462 = vadd.xlane.f32.xlu0 %v7461_v31 }
0x47fc   :  { %v7460_v48 = vpop.xlane.xlu0 %7459 }
0x47fd   :  { %v7464_v36 = vmul.f32 0.03125, %v7460_v48 }
0x47ff   :  { %v7466_v10 = vadd.f32 1e-06, %v7464_v36 }
0x4800   :  { %v7463_v42 = vpop.xlane.xlu0 %7462 }
0x4801   :  { %9416 = vrsqrt.f32 %v7466_v10  ;;  %v7465_v59 = vmul.f32 0.03125, %v7463_v42  ;;  %v8162_v10 = vld [vmem:[%s9681_s4] ss:$0 sm:$0xff] }
0x4803   :  { %v7467_v11 = vadd.f32 1e-06, %v7465_v59 }
0x4805   :  { %9418 = vrsqrt.f32 %v7467_v11 }
0x480e   :  { %v9417_v43 = vpop.eup %9416 }
0x480f   :  { %v7470_v44 = vmul.f32 %v9417_v43, %v7454_v32 }
0x4811   :  { %v7478_v45 = vmul.f32 %v8138_v51, %v7470_v44 }
0x4812   :  { %v9419_v46 = vpop.eup %9418 }
0x4813   :  { %v7471_v37 = vmul.f32 %v9419_v46, %v7455_v53  ;;  %v7486_v13 = vadd.f32 %v8139_v23, %v7478_v45 }
0x4815   :  { %v7479_v47 = vmul.f32 %v8138_v51, %v7471_v37  ;;  %9099 = vmatprep.mubr.msk.f32.mxu1 %vm167_vm0, %v7486_v13 }
0x4817   :  { %v7487_v50 = vadd.f32 %v8139_v23, %v7479_v47 }
0x4819   :  { %9100 = vmatmul.mubr.msk.f32.vlgmr.msra.gmra.mxu1 %vm167_vm0, %v7487_v50 }
0x481a   :  { %9122 = vmatpush3.msra.mxu1 %v7733_v2 }
0x481b   :  { %9123 = vmatprep.subr.mxu1 %v7732_v26 }
0x481c   :  { %9124 = vmatpush3.msra.mxu1 %v7732_v26 }
0x481d   :  { %9125 = vmatprep.subr.mxu1 %v7731_v35 }
0x481e   :  { %9126 = vmatpush3.msra.mxu1 %v7731_v35 }
0x481f   :  { %9127 = vmatprep.subr.mxu1 %v7730_v25 }
0x4820   :  { %9128 = vmatpush3.msra.mxu1 %v7730_v25 }
0x48d9   :  { %v9101_v33 = vpop.f32.mrf.mxu1 }
0x48da   :  { %v7579_v28 = vadd.f32 %v9101_v33, %v8145_v24 }
0x48db   :  { %v7573_v61 = vpop.f32.mrf.mxu1 }
0x48dc   :  { %v7574_v8 = vadd.f32 %v8145_v24, %v7573_v61  ;;  %v7583_v5 = vmax.f32 %v7579_v28, 0.0 }
0x48de   :  { %v7582_v49 = vmax.f32 %v7574_v8, 0.0 }
0x48e0   :  { %9118 = vmatprep.mubr.msk.f32.mxu0 %vm1372_vm6, %v7582_v49 }
0x48e1   :  { %9119 = vmatmul.mubr.msk.f32.vlgmr.msra.gmra.mxu0 %vm1372_vm6, %v7583_v5 }
0x49a1   :  { %v9120_v6 = vpop.f32.mrf.mxu0 }
0x49a2   :  { %v7675_v7 = vadd.f32 %v9120_v6, %v10897_v3 }
0x49a3   :  { %v7665_v14 = vpop.f32.mrf.mxu0 }
0x49a4   :  { %v7685_v15 = vadd.f32 %v8159_v41, %v7675_v7  ;;  %v7674_v1 = vadd.f32 %v7665_v14, %v10900_v63 }
0x49a6   :  { %v7684_v55 = vadd.f32 %v8159_v41, %v7674_v1  ;;  %v7691_v18 = vsel %vm167_vm0, %v7685_v15, 0.0 }
0x49a7   :  { %7692 = vadd.xlane.f32.xlu1 %v7691_v18 }
0x49a8   :  { %v7688_v19 = vsel %vm167_vm0, %v7684_v55, 0.0 }
0x49a9   :  { %7689 = vadd.xlane.f32.xlu0 %v7688_v19 }
0x4a30   :  { %v7693_v22 = vpop.xlane.xlu1 %7692 }
0x4a31   :  { %v7695_v54 = vmul.f32 0.03125, %v7693_v22 }
0x4a32   :  { %v7690_v20 = vpop.xlane.xlu0 %7689 }
0x4a33   :  { %v7697_v21 = vsub.f32 %v7685_v15, %v7695_v54  ;;  %v7694_v57 = vmul.f32 0.03125, %v7690_v20 }
0x4a35   :  { %v7696_v3 = vsub.f32 %v7684_v55, %v7694_v57  ;;  %v7699_v60 = vmul.f32 %v7697_v21, %v7697_v21 }
0x4a37   :  { %v7703_v63 = vsel %vm167_vm0, %v7699_v60, 0.0  ;;  %v7698_v39 = vmul.f32 %v7696_v3, %v7696_v3 }
0x4a38   :  { %7704 = vadd.xlane.f32.xlu1 %v7703_v63 }
0x4a39   :  { %v7700_v62 = vsel %vm167_vm0, %v7698_v39, 0.0 }
0x4a3a   :  { %7701 = vadd.xlane.f32.xlu0 %v7700_v62 }
0x4ac1   :  { %v7705_v53 = vpop.xlane.xlu1 %7704 }
0x4ac2   :  { %v7707_v32 = vmul.f32 0.03125, %v7705_v53 }
0x4ac3   :  { %v7702_v30 = vpop.xlane.xlu0 %7701 }
0x4ac4   :  { %v7709_v52 = vadd.f32 1e-06, %v7707_v32  ;;  %v7706_v29 = vmul.f32 0.03125, %v7702_v30 }
0x4ac6   :  { %9420 = vrsqrt.f32 %v7709_v52  ;;  %v7708_v31 = vadd.f32 1e-06, %v7706_v29 }
0x4ac8   :  { %9422 = vrsqrt.f32 %v7708_v31 }
0x4ad3   :  { %v9421_v56 = vpop.eup %9420 }
0x4ad4   :  { %v7713_v16 = vmul.f32 %v9421_v56, %v7697_v21 }
0x4ad5   :  { %v9423_v17 = vpop.eup %9422 }
0x4ad6   :  { %v7712_v38 = vmul.f32 %v9423_v17, %v7696_v3  ;;  %v7721_v40 = vmul.f32 %v8160_v4, %v7713_v16 }
0x4ad8   :  { %v7720_v27 = vmul.f32 %v8160_v4, %v7712_v38  ;;  %v7729_v36 = vadd.f32 %v8161_v34, %v7721_v40 }
0x4ada   :  { %v7728_v48 = vadd.f32 %v8161_v34, %v7720_v27 }
0x4adc   :  { %9129 = vmatprep.mubr.msk.f32.mxu1 %vm167_vm0, %v7728_v48 }
0x4add   :  { %9130 = vmatmul.mubr.msk.f32.vlgmr.msra.gmra.mxu1 %vm167_vm0, %v7729_v36 }
0x4b9d   :  { %v9131_v42 = vpop.f32.mrf.mxu1 }
0x4b9e   :  { %v7819_v59 = vadd.f32 %v9131_v42, %v8162_v10 }
0x4b9f   :  { %v7813_v11 = vpop.f32.mrf.mxu1 }
0x4ba0   :  { %7823 = vst.msk [vmem:[#allocation2 + $0x8] sm:$0xff] %vm392_vm3, %v7819_v59  ;;  %v7814_v43 = vadd.f32 %v8162_v10, %v7813_v11 }
0x4ba2   :  { %7822 = vst.msk [vmem:[#allocation2] sm:$0xff] %vm392_vm3, %v7814_v43 }
0x4ba3   :  { %9435 = shalt.err (!%p9432_p4)
}
0x4ba4   :  { %s9497_s28 = smov 128  }
0x4ba5   :  { %7835 = dma.vmem_to_hbm [thread:$0]  %s7830_s13, 256, %s9686_s27, [#allocation3], %s9497_s28, %s9497_s28, %s9493_s18  }
0x4ba6   :  { %9444 = dma.done.wait [#allocation3], 256  }
0x4ba7   :  { %9445 = vsyncadd [#allocation3], 4294967040 }
0x4ba8   :  { %7839 = vsyncpa [#allocation3], 1 }

</bundles_post_ra>
